<compile_context>
chip_gen: v6e
topology: v6e:2x2x1
jax: 0.10.0
libtpu: 0.0.40
codegen_flags: <defaults>
</compile_context>

<pallas_src>
import functools
import math

import jax
import jax.numpy as jnp
from jax import lax
from jax.experimental import pallas as pl
from jax.experimental.pallas import tpu as pltpu

EPS = 1e-5

CFG = dict(
    emb_dim=128,
    context_length=16,
    n_heads=4,
    n_kv_groups=2,
    hidden_dim=256,
    rope_base=10000.0,
    rope_freq=None,
    dtype=jnp.bfloat16,
)


def precompute_rope_params(head_dim, theta_base=10000.0, context_length=4096):
    assert head_dim % 2 == 0, "Embedding dimension must be even"
    inv_freq = 1.0 / theta_base ** (
        jnp.arange(0, head_dim // 2, dtype=jnp.float32) / (head_dim // 2)
    )
    positions = jnp.arange(context_length, dtype=jnp.float32)
    angles = positions[:, None] * inv_freq[None, :]
    angles = jnp.concatenate([angles, angles], axis=1)
    return jnp.cos(angles), jnp.sin(angles)


def _rms_norm(x, w):
    ms = jnp.mean(x * x, axis=-1, keepdims=True)
    return x * lax.rsqrt(ms + EPS) * w


def transformer_block_kernel(x_ref, n1_ref, n2_ref, wqkv_ref, wo_ref,
                             wgate_ref, wdown_ref, cos_ref, sin_ref,
                             o_ref, *, num_heads, num_kv_groups):
    f32, bf16 = jnp.float32, jnp.bfloat16
    blk_b, T, D = x_ref.shape
    M = blk_b * T
    head_dim = D // num_heads
    half = head_dim // 2
    kv_dim = num_kv_groups * head_dim
    group_size = num_heads // num_kv_groups
    qkv_w = D + 2 * kv_dim
    hidden = wdown_ref.shape[0]

    x = x_ref[...].reshape(M, D).astype(f32)                     # (M, D)

    # ---- RMSNorm 1 + fused QKV projection (one MXU pass, N = D + 2*kv_dim) --
    h = _rms_norm(x, n1_ref[...].astype(f32)).astype(bf16)
    qkv = jnp.dot(h, wqkv_ref[...], preferred_element_type=f32)  # (M, qkv_w)

    # ---- RoPE over the whole fused slab (V lanes pass through: cos=1, sin=0).
    # rotate_half = select(first-half lane, roll(x, -half), roll(x, +half));
    # the rotate_half sign and the 1/sqrt(head_dim) scale (Q lanes only) are
    # folded into the single bf16 cos/sin tables, which arrive at (T, qkv_w)
    # and are replicated over the block's batch elements here (no block_b
    # pre-tiling in HBM).
    r_minus = pltpu.roll(qkv, qkv_w - half, axis=1)   # [:, j] = qkv[:, j + half]
    r_plus = pltpu.roll(qkv, half, axis=1)            # [:, j] = qkv[:, j - half]
    lane = lax.broadcasted_iota(jnp.int32, (1, qkv_w), 1)
    first_half = (lane % head_dim) < half
    r = jnp.where(first_half, r_minus, r_plus)
    cos_t = jnp.tile(cos_ref[...], (blk_b, 1)).astype(f32)       # (M, qkv_w)
    sin_t = jnp.tile(sin_ref[...], (blk_b, 1)).astype(f32)
    qkv = (qkv * cos_t + r * sin_t).astype(bf16)

    # Causal mask (diagonal=1), shared by every head / batch element in block.
    row = lax.broadcasted_iota(jnp.int32, (blk_b, T, T), 1)
    col = lax.broadcasted_iota(jnp.int32, (blk_b, T, T), 2)
    causal = col > row

    # Slice the KV heads once (hoisted out of the query-head loop).
    k_heads = [qkv[:, D + g * head_dim:D + (g + 1) * head_dim]
               .reshape(blk_b, T, head_dim) for g in range(num_kv_groups)]
    v_heads = [qkv[:, D + kv_dim + g * head_dim:D + kv_dim + (g + 1) * head_dim]
               .reshape(blk_b, T, head_dim) for g in range(num_kv_groups)]

    attn = None
    for hh in range(num_heads):                       # static unrolled loop
        g = hh // group_size                          # repeat_interleave mapping
        qh = qkv[:, hh * head_dim:(hh + 1) * head_dim].reshape(blk_b, T, head_dim)
        s = jnp.einsum('btd,bsd->bts', qh, k_heads[g],
                       preferred_element_type=f32)    # already scaled via tables
        s = jnp.where(causal, -jnp.inf, s)
        s = s - jnp.max(s, axis=-1, keepdims=True)
        e = jnp.exp(s)
        p = e * pl.reciprocal(jnp.sum(e, axis=-1, keepdims=True), approx=True)
        ctx = jnp.einsum('bts,bsd->btd', p.astype(bf16), v_heads[g],
                         preferred_element_type=f32)  # (blk_b, T, head_dim)
        # Output projection accumulated per head (block-matrix form of
        # concat_h(ctx_h) @ W_o) -- avoids lane-concatenating head contexts.
        part = jnp.dot(ctx.reshape(M, head_dim).astype(bf16),
                       wo_ref[hh * head_dim:(hh + 1) * head_dim, :],
                       preferred_element_type=f32)
        attn = part if attn is None else attn + part

    x = x + attn                                      # residual 1

    # ---- RMSNorm 2 + SwiGLU FFN with fused gate/up projection (N = 2*hidden)
    h2 = _rms_norm(x, n2_ref[...].astype(f32)).astype(bf16)
    gu = jnp.dot(h2, wgate_ref[...], preferred_element_type=f32)  # (M, 2*hidden)
    a = gu[:, :hidden]
    b = gu[:, hidden:]
    gated = (a * jax.nn.sigmoid(a) * b).astype(bf16)  # silu(fc1(x)) * fc2(x)
    ff = jnp.dot(gated, wdown_ref[...], preferred_element_type=f32)

    o_ref[...] = (x + ff).reshape(blk_b, T, D).astype(o_ref.dtype)  # residual 2


def _pick_block_b(batch, seq_len, *, row_cap=512, min_rows_per_step=256):
    """Batch elements per grid step.

    Maximize M = block_b*seq_len per step (v5e/v6e have a single TensorCore,
    so extra grid steps are pure ~0.35us/step overhead); only split into >= 2
    grid steps (useful for v7x's two TensorCores) when every step still feeds
    the MXU at least `min_rows_per_step` rows."""
    bb = max(1, min(batch, max(1, row_cap // seq_len)))
    while batch % bb:
        bb -= 1
    if bb == batch and batch > 1:
        for d in range(batch // 2, 0, -1):
            if batch % d == 0 and d * seq_len >= min_rows_per_step:
                return d
    return bb


def transformer_block(x, params, cos, sin, *, num_heads, num_kv_groups,
                      block_b=None):
    B, T, D = x.shape
    head_dim = D // num_heads
    half = head_dim // 2
    kv_dim = num_kv_groups * head_dim
    hidden = params["fc1"].shape[1]
    qkv_w = D + 2 * kv_dim

    if block_b is None:
        block_b = _pick_block_b(B, T)
    assert B % block_b == 0

    # One-time weight packing (fused QKV, fused gate/up projections).
    w_qkv = jnp.concatenate([params["wq"], params["wk"], params["wv"]], axis=1)
    w_gate_up = jnp.concatenate([params["fc1"], params["fc2"]], axis=1)

    # RoPE tables at fused-QKV width, (T, qkv_w), bf16, NOT pre-tiled by
    # block_b.  The single sin table carries the rotate_half sign (-sin on
    # first-half lanes, +sin on second-half); 1/sqrt(head_dim) is folded into
    # the Q lanes; V lanes are identity (cos=1, sin=0).
    cos_hd = cos[:T].astype(jnp.float32)                 # (T, head_dim)
    sin_hd = sin[:T].astype(jnp.float32)
    first = jnp.arange(head_dim) < half
    sin_signed = jnp.where(first, -sin_hd, sin_hd)
    scale = 1.0 / math.sqrt(head_dim)

    def widen(tab, v_fill):
        return jnp.concatenate(
            [jnp.tile(tab, (1, num_heads)) * scale,             # Q lanes (scaled)
             jnp.tile(tab, (1, num_kv_groups)),                 # K lanes
             jnp.full((T, kv_dim), v_fill, jnp.float32)],       # V lanes
            axis=1).astype(jnp.bfloat16)

    cos_tab = widen(cos_hd, 1.0)
    sin_tab = widen(sin_signed, 0.0)

    kernel = functools.partial(transformer_block_kernel,
                               num_heads=num_heads,
                               num_kv_groups=num_kv_groups)

    def run(single_buffer):
        def rep(shape):
            # Constant-index operands: the same block is fetched every grid
            # step, so double-buffering it is wasted VMEM -> single-buffer.
            kwargs = {}
            if single_buffer:
                kwargs["pipeline_mode"] = pl.Buffered(1)
            return pl.BlockSpec(shape, lambda b: (0,) * len(shape), **kwargs)

        grid_spec = pltpu.PrefetchScalarGridSpec(
            num_scalar_prefetch=0,
            grid=(B // block_b,),
            in_specs=[
                pl.BlockSpec((block_b, T, D), lambda b: (b, 0, 0)),   # x
                rep((1, D)), rep((1, D)),                             # norm1 / norm2
                rep((D, qkv_w)), rep((D, D)),                         # w_qkv / w_o
                rep((D, 2 * hidden)), rep((hidden, D)),               # gate_up / down
                rep((T, qkv_w)), rep((T, qkv_w)),                     # cos / signed sin
            ],
            out_specs=pl.BlockSpec((block_b, T, D), lambda b: (b, 0, 0)),
        )
        out = pl.pallas_call(
            kernel,
            out_shape=jax.ShapeDtypeStruct((B, T, D), jnp.bfloat16),
            grid_spec=grid_spec,
            compiler_params=pltpu.CompilerParams(
                dimension_semantics=("parallel",)),
        )(x, params["norm1"], params["norm2"], w_qkv, params["wo"],
          w_gate_up, params["fc3"], cos_tab, sin_tab)
        return jax.block_until_ready(out)

    try:
        return run(single_buffer=True)
    except Exception:
        # pl.Buffered(1) single-buffering unsupported on this JAX build;
        # fall back to default double-buffered specs (correctness identical).
        return run(single_buffer=False)


def init_params(key, cfg):
    D = cfg["emb_dim"]
    H = cfg["hidden_dim"]
    n_heads = cfg["n_heads"]
    n_kv = cfg["n_kv_groups"]
    hd = D // n_heads
    kv_dim = n_kv * hd
    dt = cfg["dtype"]
    ks = jax.random.split(key, 7)

    def w(k, shape):
        return (0.02 * jax.random.normal(k, shape, dtype=jnp.float32)).astype(dt)

    return dict(
        wq=w(ks[0], (D, D)),        # (in, out) == W_q^T
        wk=w(ks[1], (D, kv_dim)),
        wv=w(ks[2], (D, kv_dim)),
        wo=w(ks[3], (D, D)),
        fc1=w(ks[4], (D, H)),
        fc2=w(ks[5], (D, H)),
        fc3=w(ks[6], (H, D)),
        norm1=jnp.ones((1, D), dtype=jnp.float32),   # RMSNorm weights init to ones
        norm2=jnp.ones((1, D), dtype=jnp.float32),
    )


if __name__ == "__main__":
    key = jax.random.PRNGKey(0)
    k_x, k_p = jax.random.split(key)

    B, T = 2, 8
    D = CFG["emb_dim"]
    hd = D // CFG["n_heads"]

    x = jax.random.normal(k_x, (B, T, D), dtype=jnp.float32).astype(CFG["dtype"])
    params = init_params(k_p, CFG)

    cos_full, sin_full = precompute_rope_params(
        hd, CFG["rope_base"], CFG["context_length"]
    )

    out = transformer_block(
        x, params, cos_full, sin_full,
        num_heads=CFG["n_heads"], num_kv_groups=CFG["n_kv_groups"],
    )
    out = jax.block_until_ready(out)
    assert out.shape == (B, T, D) and out.dtype == jnp.bfloat16
    assert bool(jnp.all(jnp.isfinite(out.astype(jnp.float32))))
    print("KERNEL_OK")
</pallas_src>

<mosaic_0001>
module attributes {stable_mosaic.version = 11 : i64} {
  func.func @transformer_block_kernel(%arg0: i32, %arg1: memref<2x8x128xbf16, #tpu.memory_space<vmem>>, %arg2: memref<1x128xf32, #tpu.memory_space<vmem>>, %arg3: memref<1x128xf32, #tpu.memory_space<vmem>>, %arg4: memref<128x256xbf16, #tpu.memory_space<vmem>>, %arg5: memref<128x128xbf16, #tpu.memory_space<vmem>>, %arg6: memref<128x512xbf16, #tpu.memory_space<vmem>>, %arg7: memref<256x128xbf16, #tpu.memory_space<vmem>>, %arg8: memref<8x256xbf16, #tpu.memory_space<vmem>>, %arg9: memref<8x256xbf16, #tpu.memory_space<vmem>>, %arg10: memref<2x8x128xbf16, #tpu.memory_space<vmem>>) attributes {dimension_semantics = [#tpu.dimension_semantics<parallel>], iteration_bounds = array<i64: 1>, scalar_prefetch = 0 : i64, scratch_operands = 0 : i64, tpu.core_type = #tpu.core_type<tc>, window_params = [{transform_indices = @transform_0, window_bounds = array<i64: 2, 8, 128>}, {pipeline_mode = #tpu.pipeline_mode<synchronous>, transform_indices = @transform_1, window_bounds = array<i64: 1, 128>}, {pipeline_mode = #tpu.pipeline_mode<synchronous>, transform_indices = @transform_2, window_bounds = array<i64: 1, 128>}, {pipeline_mode = #tpu.pipeline_mode<synchronous>, transform_indices = @transform_3, window_bounds = array<i64: 128, 256>}, {pipeline_mode = #tpu.pipeline_mode<synchronous>, transform_indices = @transform_4, window_bounds = array<i64: 128, 128>}, {pipeline_mode = #tpu.pipeline_mode<synchronous>, transform_indices = @transform_5, window_bounds = array<i64: 128, 512>}, {pipeline_mode = #tpu.pipeline_mode<synchronous>, transform_indices = @transform_6, window_bounds = array<i64: 256, 128>}, {pipeline_mode = #tpu.pipeline_mode<synchronous>, transform_indices = @transform_7, window_bounds = array<i64: 8, 256>}, {pipeline_mode = #tpu.pipeline_mode<synchronous>, transform_indices = @transform_8, window_bounds = array<i64: 8, 256>}, {transform_indices = @transform_9, window_bounds = array<i64: 2, 8, 128>}]} {
    %c0 = arith.constant 0 : index
    %c0_0 = arith.constant 0 : index
    %c0_1 = arith.constant 0 : index
    %0 = vector.load %arg1[%c0, %c0_0, %c0_1] : memref<2x8x128xbf16, #tpu.memory_space<vmem>>, vector<2x8x128xbf16>
    %1 = vector.shape_cast %0 : vector<2x8x128xbf16> to vector<16x128xbf16>
    %2 = arith.extf %1 : vector<16x128xbf16> to vector<16x128xf32>
    %c0_2 = arith.constant 0 : index
    %c0_3 = arith.constant 0 : index
    %3 = vector.load %arg2[%c0_2, %c0_3] : memref<1x128xf32, #tpu.memory_space<vmem>>, vector<1x128xf32>
    %4 = arith.mulf %2, %2 : vector<16x128xf32>
    %cst = arith.constant dense<0.000000e+00> : vector<16xf32>
    %5 = vector.multi_reduction <add>, %4, %cst [1] : vector<16x128xf32> to vector<16xf32>
    %6 = vector.shape_cast %5 : vector<16xf32> to vector<16x1xf32>
    %cst_4 = arith.constant 1.280000e+02 : f32
    %7 = vector.broadcast %cst_4 : f32 to vector<16x1xf32>
    %8 = arith.divf %6, %7 : vector<16x1xf32>
    %cst_5 = arith.constant 9.99999974E-6 : f32
    %9 = vector.broadcast %cst_5 : f32 to vector<16x1xf32>
    %10 = arith.addf %8, %9 : vector<16x1xf32>
    %11 = math.rsqrt %10 : vector<16x1xf32>
    %12 = vector.broadcast %11 : vector<16x1xf32> to vector<16x128xf32>
    %13 = arith.mulf %2, %12 : vector<16x128xf32>
    %14 = vector.broadcast %3 : vector<1x128xf32> to vector<16x128xf32>
    %15 = arith.mulf %13, %14 : vector<16x128xf32>
    %16 = arith.truncf %15 : vector<16x128xf32> to vector<16x128xbf16>
    %c0_6 = arith.constant 0 : index
    %c0_7 = arith.constant 0 : index
    %17 = vector.load %arg4[%c0_6, %c0_7] : memref<128x256xbf16, #tpu.memory_space<vmem>>, vector<128x256xbf16>
    %cst_8 = arith.constant dense<0.000000e+00> : vector<16x256xf32>
    %18 = tpu.matmul %16, %17, %cst_8 {dimension_numbers = #tpu.dot_dimension_numbers<[1], [0], [0], [1], [0, 0, 1, 1], [], []>} : vector<16x128xbf16>, vector<128x256xbf16>, vector<16x256xf32> -> vector<16x256xf32>
    %c240_i32 = arith.constant 240 : i32
    %19 = tpu.dynamic_rotate %18 by %c240_i32 dim 1 : vector<16x256xf32>, i32 -> vector<16x256xf32>
    %c16_i32 = arith.constant 16 : i32
    %20 = tpu.dynamic_rotate %18 by %c16_i32 dim 1 : vector<16x256xf32>, i32 -> vector<16x256xf32>
    %21 = tpu.iota {dimensions = array<i32: 1>} : vector<1x256xi32>
    %c32_i32 = arith.constant 32 : i32
    %c0_i32 = arith.constant 0 : i32
    %22 = arith.cmpi eq, %c32_i32, %c0_i32 : i32
    %c1_i32 = arith.constant 1 : i32
    %23 = arith.select %22, %c1_i32, %c32_i32 : i32
    %24 = vector.broadcast %23 : i32 to vector<1x256xi32>
    %25 = arith.remsi %21, %24 : vector<1x256xi32>
    %c0_i32_9 = arith.constant 0 : i32
    %26 = vector.broadcast %c0_i32_9 : i32 to vector<1x256xi32>
    %27 = arith.cmpi ne, %25, %26 : vector<1x256xi32>
    %c0_i32_10 = arith.constant 0 : i32
    %28 = vector.broadcast %c0_i32_10 : i32 to vector<1x256xi32>
    %29 = arith.cmpi slt, %25, %28 : vector<1x256xi32>
    %c0_i32_11 = arith.constant 0 : i32
    %30 = arith.cmpi slt, %23, %c0_i32_11 : i32
    %31 = vector.broadcast %30 : i1 to vector<1x256xi1>
    %32 = vector.broadcast %31 : vector<1x256xi1> to vector<1x256xi1>
    %33 = arith.xori %29, %32 : vector<1x256xi1>
    %34 = arith.andi %33, %27 : vector<1x256xi1>
    %35 = vector.broadcast %23 : i32 to vector<1x256xi32>
    %36 = arith.addi %25, %35 : vector<1x256xi32>
    %37 = arith.select %34, %36, %25 : vector<1x256xi1>, vector<1x256xi32>
    %c16_i32_12 = arith.constant 16 : i32
    %38 = vector.broadcast %c16_i32_12 : i32 to vector<1x256xi32>
    %39 = arith.cmpi slt, %37, %38 : vector<1x256xi32>
    %40 = vector.shape_cast %39 : vector<1x256xi1> to vector<1x256xi1>
    %41 = vector.broadcast %40 : vector<1x256xi1> to vector<16x256xi1>
    %42 = arith.select %41, %19, %20 : vector<16x256xi1>, vector<16x256xf32>
    %c0_13 = arith.constant 0 : index
    %c0_14 = arith.constant 0 : index
    %43 = vector.load %arg8[%c0_13, %c0_14] : memref<8x256xbf16, #tpu.memory_space<vmem>>, vector<8x256xbf16>
    %44 = tpu.concatenate %43, %43 in 0 : vector<8x256xbf16>, vector<8x256xbf16> -> vector<16x256xbf16>
    %45 = arith.extf %44 : vector<16x256xbf16> to vector<16x256xf32>
    %c0_15 = arith.constant 0 : index
    %c0_16 = arith.constant 0 : index
    %46 = vector.load %arg9[%c0_15, %c0_16] : memref<8x256xbf16, #tpu.memory_space<vmem>>, vector<8x256xbf16>
    %47 = tpu.concatenate %46, %46 in 0 : vector<8x256xbf16>, vector<8x256xbf16> -> vector<16x256xbf16>
    %48 = arith.extf %47 : vector<16x256xbf16> to vector<16x256xf32>
    %49 = arith.mulf %18, %45 : vector<16x256xf32>
    %50 = arith.mulf %42, %48 : vector<16x256xf32>
    %51 = arith.addf %49, %50 : vector<16x256xf32>
    %52 = arith.truncf %51 : vector<16x256xf32> to vector<16x256xbf16>
    %53 = tpu.iota {dimensions = array<i32: 1>} : vector<2x8x8xi32>
    %54 = tpu.iota {dimensions = array<i32: 2>} : vector<2x8x8xi32>
    %55 = arith.cmpi sgt, %54, %53 : vector<2x8x8xi32>
    %56 = vector.extract_strided_slice %52 {offsets = [0, 128], sizes = [16, 32], strides = [1, 1]} : vector<16x256xbf16> to vector<16x32xbf16>
    %57 = vector.shape_cast %56 : vector<16x32xbf16> to vector<2x8x32xbf16>
    %58 = vector.extract_strided_slice %52 {offsets = [0, 160], sizes = [16, 32], strides = [1, 1]} : vector<16x256xbf16> to vector<16x32xbf16>
    %59 = vector.shape_cast %58 : vector<16x32xbf16> to vector<2x8x32xbf16>
    %60 = vector.extract_strided_slice %52 {offsets = [0, 192], sizes = [16, 32], strides = [1, 1]} : vector<16x256xbf16> to vector<16x32xbf16>
    %61 = vector.shape_cast %60 : vector<16x32xbf16> to vector<2x8x32xbf16>
    %62 = vector.extract_strided_slice %52 {offsets = [0, 224], sizes = [16, 32], strides = [1, 1]} : vector<16x256xbf16> to vector<16x32xbf16>
    %63 = vector.shape_cast %62 : vector<16x32xbf16> to vector<2x8x32xbf16>
    %64 = vector.extract_strided_slice %52 {offsets = [0, 0], sizes = [16, 32], strides = [1, 1]} : vector<16x256xbf16> to vector<16x32xbf16>
    %65 = vector.shape_cast %64 : vector<16x32xbf16> to vector<2x8x32xbf16>
    "tpu.trace_start"() <{level = 10 : i32, message = "btd,bsd->bts"}> : () -> ()
    %cst_17 = arith.constant dense<0.000000e+00> : vector<2x8x8xf32>
    %66 = tpu.matmul %65, %57, %cst_17 {dimension_numbers = #tpu.dot_dimension_numbers<[2], [2], [1], [1], [0, 0, 0, 1, 1, 1], [0], [0]>} : vector<2x8x32xbf16>, vector<2x8x32xbf16>, vector<2x8x8xf32> -> vector<2x8x8xf32>
    %cst_18 = arith.constant 0xFF800000 : f32
    "tpu.trace_stop"() : () -> ()
    %67 = vector.broadcast %cst_18 : f32 to vector<2x8x8xf32>
    %68 = arith.select %55, %67, %66 : vector<2x8x8xi1>, vector<2x8x8xf32>
    %cst_19 = arith.constant dense<0xFF800000> : vector<2x8xf32>
    %69 = vector.multi_reduction <maximumf>, %68, %cst_19 [2] : vector<2x8x8xf32> to vector<2x8xf32>
    %70 = vector.shape_cast %69 : vector<2x8xf32> to vector<2x8x1xf32>
    %71 = vector.broadcast %70 : vector<2x8x1xf32> to vector<2x8x8xf32>
    %72 = arith.subf %68, %71 : vector<2x8x8xf32>
    %73 = math.exp %72 : vector<2x8x8xf32>
    %cst_20 = arith.constant dense<0.000000e+00> : vector<2x8xf32>
    %74 = vector.multi_reduction <add>, %73, %cst_20 [2] : vector<2x8x8xf32> to vector<2x8xf32>
    %75 = vector.shape_cast %74 : vector<2x8xf32> to vector<2x8x1xf32>
    %76 = tpu.reciprocal %75 {approx = true} : vector<2x8x1xf32> -> vector<2x8x1xf32>
    %77 = vector.broadcast %76 : vector<2x8x1xf32> to vector<2x8x8xf32>
    %78 = arith.mulf %73, %77 : vector<2x8x8xf32>
    %79 = arith.truncf %78 : vector<2x8x8xf32> to vector<2x8x8xbf16>
    "tpu.trace_start"() <{level = 10 : i32, message = "bts,bsd->btd"}> : () -> ()
    %cst_21 = arith.constant dense<0.000000e+00> : vector<2x8x32xf32>
    %80 = tpu.matmul %79, %61, %cst_21 {dimension_numbers = #tpu.dot_dimension_numbers<[2], [1], [1], [2], [0, 0, 0, 1, 1, 2], [0], [0]>} : vector<2x8x8xbf16>, vector<2x8x32xbf16>, vector<2x8x32xf32> -> vector<2x8x32xf32>
    "tpu.trace_stop"() : () -> ()
    %81 = vector.shape_cast %80 : vector<2x8x32xf32> to vector<16x32xf32>
    %82 = arith.truncf %81 : vector<16x32xf32> to vector<16x32xbf16>
    %c0_22 = arith.constant 0 : index
    %c0_23 = arith.constant 0 : index
    %83 = vector.load %arg5[%c0_22, %c0_23] : memref<128x128xbf16, #tpu.memory_space<vmem>>, vector<32x128xbf16>
    %cst_24 = arith.constant dense<0.000000e+00> : vector<16x128xf32>
    %84 = tpu.matmul %82, %83, %cst_24 {dimension_numbers = #tpu.dot_dimension_numbers<[1], [0], [0], [1], [0, 0, 1, 1], [], []>} : vector<16x32xbf16>, vector<32x128xbf16>, vector<16x128xf32> -> vector<16x128xf32>
    %85 = vector.extract_strided_slice %52 {offsets = [0, 32], sizes = [16, 32], strides = [1, 1]} : vector<16x256xbf16> to vector<16x32xbf16>
    %86 = vector.shape_cast %85 : vector<16x32xbf16> to vector<2x8x32xbf16>
    "tpu.trace_start"() <{level = 10 : i32, message = "btd,bsd->bts"}> : () -> ()
    %cst_25 = arith.constant dense<0.000000e+00> : vector<2x8x8xf32>
    %87 = tpu.matmul %86, %57, %cst_25 {dimension_numbers = #tpu.dot_dimension_numbers<[2], [2], [1], [1], [0, 0, 0, 1, 1, 1], [0], [0]>} : vector<2x8x32xbf16>, vector<2x8x32xbf16>, vector<2x8x8xf32> -> vector<2x8x8xf32>
    %cst_26 = arith.constant 0xFF800000 : f32
    "tpu.trace_stop"() : () -> ()
    %88 = vector.broadcast %cst_26 : f32 to vector<2x8x8xf32>
    %89 = arith.select %55, %88, %87 : vector<2x8x8xi1>, vector<2x8x8xf32>
    %cst_27 = arith.constant dense<0xFF800000> : vector<2x8xf32>
    %90 = vector.multi_reduction <maximumf>, %89, %cst_27 [2] : vector<2x8x8xf32> to vector<2x8xf32>
    %91 = vector.shape_cast %90 : vector<2x8xf32> to vector<2x8x1xf32>
    %92 = vector.broadcast %91 : vector<2x8x1xf32> to vector<2x8x8xf32>
    %93 = arith.subf %89, %92 : vector<2x8x8xf32>
    %94 = math.exp %93 : vector<2x8x8xf32>
    %cst_28 = arith.constant dense<0.000000e+00> : vector<2x8xf32>
    %95 = vector.multi_reduction <add>, %94, %cst_28 [2] : vector<2x8x8xf32> to vector<2x8xf32>
    %96 = vector.shape_cast %95 : vector<2x8xf32> to vector<2x8x1xf32>
    %97 = tpu.reciprocal %96 {approx = true} : vector<2x8x1xf32> -> vector<2x8x1xf32>
    %98 = vector.broadcast %97 : vector<2x8x1xf32> to vector<2x8x8xf32>
    %99 = arith.mulf %94, %98 : vector<2x8x8xf32>
    %100 = arith.truncf %99 : vector<2x8x8xf32> to vector<2x8x8xbf16>
    "tpu.trace_start"() <{level = 10 : i32, message = "bts,bsd->btd"}> : () -> ()
    %cst_29 = arith.constant dense<0.000000e+00> : vector<2x8x32xf32>
    %101 = tpu.matmul %100, %61, %cst_29 {dimension_numbers = #tpu.dot_dimension_numbers<[2], [1], [1], [2], [0, 0, 0, 1, 1, 2], [0], [0]>} : vector<2x8x8xbf16>, vector<2x8x32xbf16>, vector<2x8x32xf32> -> vector<2x8x32xf32>
    "tpu.trace_stop"() : () -> ()
    %102 = vector.shape_cast %101 : vector<2x8x32xf32> to vector<16x32xf32>
    %103 = arith.truncf %102 : vector<16x32xf32> to vector<16x32xbf16>
    %c32 = arith.constant 32 : index
    %c0_30 = arith.constant 0 : index
    %104 = vector.load %arg5[%c32, %c0_30] : memref<128x128xbf16, #tpu.memory_space<vmem>>, vector<32x128xbf16>
    %cst_31 = arith.constant dense<0.000000e+00> : vector<16x128xf32>
    %105 = tpu.matmul %103, %104, %cst_31 {dimension_numbers = #tpu.dot_dimension_numbers<[1], [0], [0], [1], [0, 0, 1, 1], [], []>} : vector<16x32xbf16>, vector<32x128xbf16>, vector<16x128xf32> -> vector<16x128xf32>
    %106 = arith.addf %84, %105 : vector<16x128xf32>
    %107 = vector.extract_strided_slice %52 {offsets = [0, 64], sizes = [16, 32], strides = [1, 1]} : vector<16x256xbf16> to vector<16x32xbf16>
    %108 = vector.shape_cast %107 : vector<16x32xbf16> to vector<2x8x32xbf16>
    "tpu.trace_start"() <{level = 10 : i32, message = "btd,bsd->bts"}> : () -> ()
    %cst_32 = arith.constant dense<0.000000e+00> : vector<2x8x8xf32>
    %109 = tpu.matmul %108, %59, %cst_32 {dimension_numbers = #tpu.dot_dimension_numbers<[2], [2], [1], [1], [0, 0, 0, 1, 1, 1], [0], [0]>} : vector<2x8x32xbf16>, vector<2x8x32xbf16>, vector<2x8x8xf32> -> vector<2x8x8xf32>
    %cst_33 = arith.constant 0xFF800000 : f32
    "tpu.trace_stop"() : () -> ()
    %110 = vector.broadcast %cst_33 : f32 to vector<2x8x8xf32>
    %111 = arith.select %55, %110, %109 : vector<2x8x8xi1>, vector<2x8x8xf32>
    %cst_34 = arith.constant dense<0xFF800000> : vector<2x8xf32>
    %112 = vector.multi_reduction <maximumf>, %111, %cst_34 [2] : vector<2x8x8xf32> to vector<2x8xf32>
    %113 = vector.shape_cast %112 : vector<2x8xf32> to vector<2x8x1xf32>
    %114 = vector.broadcast %113 : vector<2x8x1xf32> to vector<2x8x8xf32>
    %115 = arith.subf %111, %114 : vector<2x8x8xf32>
    %116 = math.exp %115 : vector<2x8x8xf32>
    %cst_35 = arith.constant dense<0.000000e+00> : vector<2x8xf32>
    %117 = vector.multi_reduction <add>, %116, %cst_35 [2] : vector<2x8x8xf32> to vector<2x8xf32>
    %118 = vector.shape_cast %117 : vector<2x8xf32> to vector<2x8x1xf32>
    %119 = tpu.reciprocal %118 {approx = true} : vector<2x8x1xf32> -> vector<2x8x1xf32>
    %120 = vector.broadcast %119 : vector<2x8x1xf32> to vector<2x8x8xf32>
    %121 = arith.mulf %116, %120 : vector<2x8x8xf32>
    %122 = arith.truncf %121 : vector<2x8x8xf32> to vector<2x8x8xbf16>
    "tpu.trace_start"() <{level = 10 : i32, message = "bts,bsd->btd"}> : () -> ()
    %cst_36 = arith.constant dense<0.000000e+00> : vector<2x8x32xf32>
    %123 = tpu.matmul %122, %63, %cst_36 {dimension_numbers = #tpu.dot_dimension_numbers<[2], [1], [1], [2], [0, 0, 0, 1, 1, 2], [0], [0]>} : vector<2x8x8xbf16>, vector<2x8x32xbf16>, vector<2x8x32xf32> -> vector<2x8x32xf32>
    "tpu.trace_stop"() : () -> ()
    %124 = vector.shape_cast %123 : vector<2x8x32xf32> to vector<16x32xf32>
    %125 = arith.truncf %124 : vector<16x32xf32> to vector<16x32xbf16>
    %c64 = arith.constant 64 : index
    %c0_37 = arith.constant 0 : index
    %126 = vector.load %arg5[%c64, %c0_37] : memref<128x128xbf16, #tpu.memory_space<vmem>>, vector<32x128xbf16>
    %cst_38 = arith.constant dense<0.000000e+00> : vector<16x128xf32>
    %127 = tpu.matmul %125, %126, %cst_38 {dimension_numbers = #tpu.dot_dimension_numbers<[1], [0], [0], [1], [0, 0, 1, 1], [], []>} : vector<16x32xbf16>, vector<32x128xbf16>, vector<16x128xf32> -> vector<16x128xf32>
    %128 = arith.addf %106, %127 : vector<16x128xf32>
    %129 = vector.extract_strided_slice %52 {offsets = [0, 96], sizes = [16, 32], strides = [1, 1]} : vector<16x256xbf16> to vector<16x32xbf16>
    %130 = vector.shape_cast %129 : vector<16x32xbf16> to vector<2x8x32xbf16>
    "tpu.trace_start"() <{level = 10 : i32, message = "btd,bsd->bts"}> : () -> ()
    %cst_39 = arith.constant dense<0.000000e+00> : vector<2x8x8xf32>
    %131 = tpu.matmul %130, %59, %cst_39 {dimension_numbers = #tpu.dot_dimension_numbers<[2], [2], [1], [1], [0, 0, 0, 1, 1, 1], [0], [0]>} : vector<2x8x32xbf16>, vector<2x8x32xbf16>, vector<2x8x8xf32> -> vector<2x8x8xf32>
    %cst_40 = arith.constant 0xFF800000 : f32
    "tpu.trace_stop"() : () -> ()
    %132 = vector.broadcast %cst_40 : f32 to vector<2x8x8xf32>
    %133 = arith.select %55, %132, %131 : vector<2x8x8xi1>, vector<2x8x8xf32>
    %cst_41 = arith.constant dense<0xFF800000> : vector<2x8xf32>
    %134 = vector.multi_reduction <maximumf>, %133, %cst_41 [2] : vector<2x8x8xf32> to vector<2x8xf32>
    %135 = vector.shape_cast %134 : vector<2x8xf32> to vector<2x8x1xf32>
    %136 = vector.broadcast %135 : vector<2x8x1xf32> to vector<2x8x8xf32>
    %137 = arith.subf %133, %136 : vector<2x8x8xf32>
    %138 = math.exp %137 : vector<2x8x8xf32>
    %cst_42 = arith.constant dense<0.000000e+00> : vector<2x8xf32>
    %139 = vector.multi_reduction <add>, %138, %cst_42 [2] : vector<2x8x8xf32> to vector<2x8xf32>
    %140 = vector.shape_cast %139 : vector<2x8xf32> to vector<2x8x1xf32>
    %141 = tpu.reciprocal %140 {approx = true} : vector<2x8x1xf32> -> vector<2x8x1xf32>
    %142 = vector.broadcast %141 : vector<2x8x1xf32> to vector<2x8x8xf32>
    %143 = arith.mulf %138, %142 : vector<2x8x8xf32>
    %144 = arith.truncf %143 : vector<2x8x8xf32> to vector<2x8x8xbf16>
    "tpu.trace_start"() <{level = 10 : i32, message = "bts,bsd->btd"}> : () -> ()
    %cst_43 = arith.constant dense<0.000000e+00> : vector<2x8x32xf32>
    %145 = tpu.matmul %144, %63, %cst_43 {dimension_numbers = #tpu.dot_dimension_numbers<[2], [1], [1], [2], [0, 0, 0, 1, 1, 2], [0], [0]>} : vector<2x8x8xbf16>, vector<2x8x32xbf16>, vector<2x8x32xf32> -> vector<2x8x32xf32>
    "tpu.trace_stop"() : () -> ()
    %146 = vector.shape_cast %145 : vector<2x8x32xf32> to vector<16x32xf32>
    %147 = arith.truncf %146 : vector<16x32xf32> to vector<16x32xbf16>
    %c96 = arith.constant 96 : index
    %c0_44 = arith.constant 0 : index
    %148 = vector.load %arg5[%c96, %c0_44] : memref<128x128xbf16, #tpu.memory_space<vmem>>, vector<32x128xbf16>
    %cst_45 = arith.constant dense<0.000000e+00> : vector<16x128xf32>
    %149 = tpu.matmul %147, %148, %cst_45 {dimension_numbers = #tpu.dot_dimension_numbers<[1], [0], [0], [1], [0, 0, 1, 1], [], []>} : vector<16x32xbf16>, vector<32x128xbf16>, vector<16x128xf32> -> vector<16x128xf32>
    %150 = arith.addf %128, %149 : vector<16x128xf32>
    %151 = arith.addf %2, %150 : vector<16x128xf32>
    %c0_46 = arith.constant 0 : index
    %c0_47 = arith.constant 0 : index
    %152 = vector.load %arg3[%c0_46, %c0_47] : memref<1x128xf32, #tpu.memory_space<vmem>>, vector<1x128xf32>
    %153 = arith.mulf %151, %151 : vector<16x128xf32>
    %cst_48 = arith.constant dense<0.000000e+00> : vector<16xf32>
    %154 = vector.multi_reduction <add>, %153, %cst_48 [1] : vector<16x128xf32> to vector<16xf32>
    %155 = vector.shape_cast %154 : vector<16xf32> to vector<16x1xf32>
    %cst_49 = arith.constant 1.280000e+02 : f32
    %156 = vector.broadcast %cst_49 : f32 to vector<16x1xf32>
    %157 = arith.divf %155, %156 : vector<16x1xf32>
    %cst_50 = arith.constant 9.99999974E-6 : f32
    %158 = vector.broadcast %cst_50 : f32 to vector<16x1xf32>
    %159 = arith.addf %157, %158 : vector<16x1xf32>
    %160 = math.rsqrt %159 : vector<16x1xf32>
    %161 = vector.broadcast %160 : vector<16x1xf32> to vector<16x128xf32>
    %162 = arith.mulf %151, %161 : vector<16x128xf32>
    %163 = vector.broadcast %152 : vector<1x128xf32> to vector<16x128xf32>
    %164 = arith.mulf %162, %163 : vector<16x128xf32>
    %165 = arith.truncf %164 : vector<16x128xf32> to vector<16x128xbf16>
    %c0_51 = arith.constant 0 : index
    %c0_52 = arith.constant 0 : index
    %166 = vector.load %arg6[%c0_51, %c0_52] : memref<128x512xbf16, #tpu.memory_space<vmem>>, vector<128x512xbf16>
    %cst_53 = arith.constant dense<0.000000e+00> : vector<16x512xf32>
    %167 = tpu.matmul %165, %166, %cst_53 {dimension_numbers = #tpu.dot_dimension_numbers<[1], [0], [0], [1], [0, 0, 1, 1], [], []>} : vector<16x128xbf16>, vector<128x512xbf16>, vector<16x512xf32> -> vector<16x512xf32>
    %168 = vector.extract_strided_slice %167 {offsets = [0, 0], sizes = [16, 256], strides = [1, 1]} : vector<16x512xf32> to vector<16x256xf32>
    %169 = vector.extract_strided_slice %167 {offsets = [0, 256], sizes = [16, 256], strides = [1, 1]} : vector<16x512xf32> to vector<16x256xf32>
    %170 = arith.negf %168 : vector<16x256xf32>
    %171 = math.exp %170 : vector<16x256xf32>
    %cst_54 = arith.constant 1.000000e+00 : f32
    %172 = vector.broadcast %cst_54 : f32 to vector<16x256xf32>
    %173 = arith.addf %172, %171 : vector<16x256xf32>
    %174 = arith.divf %172, %173 : vector<16x256xf32>
    %175 = arith.mulf %168, %174 : vector<16x256xf32>
    %176 = arith.mulf %175, %169 : vector<16x256xf32>
    %177 = arith.truncf %176 : vector<16x256xf32> to vector<16x256xbf16>
    %c0_55 = arith.constant 0 : index
    %c0_56 = arith.constant 0 : index
    %178 = vector.load %arg7[%c0_55, %c0_56] : memref<256x128xbf16, #tpu.memory_space<vmem>>, vector<256x128xbf16>
    %cst_57 = arith.constant dense<0.000000e+00> : vector<16x128xf32>
    %179 = tpu.matmul %177, %178, %cst_57 {dimension_numbers = #tpu.dot_dimension_numbers<[1], [0], [0], [1], [0, 0, 1, 1], [], []>} : vector<16x256xbf16>, vector<256x128xbf16>, vector<16x128xf32> -> vector<16x128xf32>
    %180 = arith.addf %151, %179 : vector<16x128xf32>
    %181 = vector.shape_cast %180 : vector<16x128xf32> to vector<2x8x128xf32>
    %182 = arith.truncf %181 : vector<2x8x128xf32> to vector<2x8x128xbf16>
    %c0_58 = arith.constant 0 : index
    %c0_59 = arith.constant 0 : index
    %c0_60 = arith.constant 0 : index
    %183 = vector.load %arg10[%c0_58, %c0_59, %c0_60] : memref<2x8x128xbf16, #tpu.memory_space<vmem>>, vector<2x8x128xbf16>
    tpu.vector_store %arg10[%c0_58, %c0_59, %c0_60], %182 {strides = array<i32>} : memref<2x8x128xbf16, #tpu.memory_space<vmem>>, vector<2x8x128xbf16>,
    return
  }
  func.func @transform_0(%arg0: i32) -> (i32, i32, i32) {
    %c0_i32 = arith.constant 0 : i32
    %c0_i32_0 = arith.constant 0 : i32
    %c0_i32_1 = arith.constant 0 : i32
    return %arg0, %c0_i32, %c0_i32_0 : i32, i32, i32
  }
  func.func @transform_1(%arg0: i32) -> (i32, i32) {
    %c0_i32 = arith.constant 0 : i32
    %c0_i32_0 = arith.constant 0 : i32
    %c0_i32_1 = arith.constant 0 : i32
    return %c0_i32, %c0_i32_0 : i32, i32
  }
  func.func @transform_2(%arg0: i32) -> (i32, i32) {
    %c0_i32 = arith.constant 0 : i32
    %c0_i32_0 = arith.constant 0 : i32
    %c0_i32_1 = arith.constant 0 : i32
    return %c0_i32, %c0_i32_0 : i32, i32
  }
  func.func @transform_3(%arg0: i32) -> (i32, i32) {
    %c0_i32 = arith.constant 0 : i32
    %c0_i32_0 = arith.constant 0 : i32
    %c0_i32_1 = arith.constant 0 : i32
    return %c0_i32, %c0_i32_0 : i32, i32
  }
  func.func @transform_4(%arg0: i32) -> (i32, i32) {
    %c0_i32 = arith.constant 0 : i32
    %c0_i32_0 = arith.constant 0 : i32
    %c0_i32_1 = arith.constant 0 : i32
    return %c0_i32, %c0_i32_0 : i32, i32
  }
  func.func @transform_5(%arg0: i32) -> (i32, i32) {
    %c0_i32 = arith.constant 0 : i32
    %c0_i32_0 = arith.constant 0 : i32
    %c0_i32_1 = arith.constant 0 : i32
    return %c0_i32, %c0_i32_0 : i32, i32
  }
  func.func @transform_6(%arg0: i32) -> (i32, i32) {
    %c0_i32 = arith.constant 0 : i32
    %c0_i32_0 = arith.constant 0 : i32
    %c0_i32_1 = arith.constant 0 : i32
    return %c0_i32, %c0_i32_0 : i32, i32
  }
  func.func @transform_7(%arg0: i32) -> (i32, i32) {
    %c0_i32 = arith.constant 0 : i32
    %c0_i32_0 = arith.constant 0 : i32
    %c0_i32_1 = arith.constant 0 : i32
    return %c0_i32, %c0_i32_0 : i32, i32
  }
  func.func @transform_8(%arg0: i32) -> (i32, i32) {
    %c0_i32 = arith.constant 0 : i32
    %c0_i32_0 = arith.constant 0 : i32
    %c0_i32_1 = arith.constant 0 : i32
    return %c0_i32, %c0_i32_0 : i32, i32
  }
  func.func @transform_9(%arg0: i32) -> (i32, i32, i32) {
    %c0_i32 = arith.constant 0 : i32
    %c0_i32_0 = arith.constant 0 : i32
    %c0_i32_1 = arith.constant 0 : i32
    return %arg0, %c0_i32, %c0_i32_0 : i32, i32, i32
  }
}

module attributes {stable_mosaic.version = 11 : i64} {
  func.func @transformer_block_kernel(%arg0: i32, %arg1: memref<2x8x128xbf16, #tpu.memory_space<vmem>>, %arg2: memref<1x128xf32, #tpu.memory_space<vmem>>, %arg3: memref<1x128xf32, #tpu.memory_space<vmem>>, %arg4: memref<128x256xbf16, #tpu.memory_space<vmem>>, %arg5: memref<128x128xbf16, #tpu.memory_space<vmem>>, %arg6: memref<128x512xbf16, #tpu.memory_space<vmem>>, %arg7: memref<256x128xbf16, #tpu.memory_space<vmem>>, %arg8: memref<8x256xbf16, #tpu.memory_space<vmem>>, %arg9: memref<8x256xbf16, #tpu.memory_space<vmem>>, %arg10: memref<2x8x128xbf16, #tpu.memory_space<vmem>>) attributes {dimension_semantics = [#tpu.dimension_semantics<parallel>], iteration_bounds = array<i64: 1>, scalar_prefetch = 0 : i64, scratch_operands = 0 : i64, tpu.core_type = #tpu.core_type<tc>, window_params = [{transform_indices = @transform_0, window_bounds = array<i64: 2, 8, 128>}, {pipeline_mode = #tpu.pipeline_mode<synchronous>, transform_indices = @transform_1, window_bounds = array<i64: 1, 128>}, {pipeline_mode = #tpu.pipeline_mode<synchronous>, transform_indices = @transform_2, window_bounds = array<i64: 1, 128>}, {pipeline_mode = #tpu.pipeline_mode<synchronous>, transform_indices = @transform_3, window_bounds = array<i64: 128, 256>}, {pipeline_mode = #tpu.pipeline_mode<synchronous>, transform_indices = @transform_4, window_bounds = array<i64: 128, 128>}, {pipeline_mode = #tpu.pipeline_mode<synchronous>, transform_indices = @transform_5, window_bounds = array<i64: 128, 512>}, {pipeline_mode = #tpu.pipeline_mode<synchronous>, transform_indices = @transform_6, window_bounds = array<i64: 256, 128>}, {pipeline_mode = #tpu.pipeline_mode<synchronous>, transform_indices = @transform_7, window_bounds = array<i64: 8, 256>}, {pipeline_mode = #tpu.pipeline_mode<synchronous>, transform_indices = @transform_8, window_bounds = array<i64: 8, 256>}, {transform_indices = @transform_9, window_bounds = array<i64: 2, 8, 128>}]} {
    %c0 = arith.constant 0 : index
    %c0_0 = arith.constant 0 : index
    %c0_1 = arith.constant 0 : index
    %0 = vector.load %arg1[%c0, %c0_0, %c0_1] : memref<2x8x128xbf16, #tpu.memory_space<vmem>>, vector<2x8x128xbf16>
    %1 = vector.shape_cast %0 : vector<2x8x128xbf16> to vector<16x128xbf16>
    %2 = arith.extf %1 : vector<16x128xbf16> to vector<16x128xf32>
    %c0_2 = arith.constant 0 : index
    %c0_3 = arith.constant 0 : index
    %3 = vector.load %arg2[%c0_2, %c0_3] : memref<1x128xf32, #tpu.memory_space<vmem>>, vector<1x128xf32>
    %4 = arith.mulf %2, %2 : vector<16x128xf32>
    %cst = arith.constant dense<0.000000e+00> : vector<16xf32>
    %5 = vector.multi_reduction <add>, %4, %cst [1] : vector<16x128xf32> to vector<16xf32>
    %6 = vector.shape_cast %5 : vector<16xf32> to vector<16x1xf32>
    %cst_4 = arith.constant 1.280000e+02 : f32
    %7 = vector.broadcast %cst_4 : f32 to vector<16x1xf32>
    %8 = arith.divf %6, %7 : vector<16x1xf32>
    %cst_5 = arith.constant 9.99999974E-6 : f32
    %9 = vector.broadcast %cst_5 : f32 to vector<16x1xf32>
    %10 = arith.addf %8, %9 : vector<16x1xf32>
    %11 = math.rsqrt %10 : vector<16x1xf32>
    %12 = vector.broadcast %11 : vector<16x1xf32> to vector<16x128xf32>
    %13 = arith.mulf %2, %12 : vector<16x128xf32>
    %14 = vector.broadcast %3 : vector<1x128xf32> to vector<16x128xf32>
    %15 = arith.mulf %13, %14 : vector<16x128xf32>
    %16 = arith.truncf %15 : vector<16x128xf32> to vector<16x128xbf16>
    %c0_6 = arith.constant 0 : index
    %c0_7 = arith.constant 0 : index
    %17 = vector.load %arg4[%c0_6, %c0_7] : memref<128x256xbf16, #tpu.memory_space<vmem>>, vector<128x256xbf16>
    %cst_8 = arith.constant dense<0.000000e+00> : vector<16x256xf32>
    %18 = tpu.matmul %16, %17, %cst_8 {dimension_numbers = #tpu.dot_dimension_numbers<[1], [0], [0], [1], [0, 0, 1, 1], [], []>} : vector<16x128xbf16>, vector<128x256xbf16>, vector<16x256xf32> -> vector<16x256xf32>
    %c240_i32 = arith.constant 240 : i32
    %19 = tpu.dynamic_rotate %18 by %c240_i32 dim 1 : vector<16x256xf32>, i32 -> vector<16x256xf32>
    %c16_i32 = arith.constant 16 : i32
    %20 = tpu.dynamic_rotate %18 by %c16_i32 dim 1 : vector<16x256xf32>, i32 -> vector<16x256xf32>
    %21 = tpu.iota {dimensions = array<i32: 1>} : vector<1x256xi32>
    %c32_i32 = arith.constant 32 : i32
    %c0_i32 = arith.constant 0 : i32
    %22 = arith.cmpi eq, %c32_i32, %c0_i32 : i32
    %c1_i32 = arith.constant 1 : i32
    %23 = arith.select %22, %c1_i32, %c32_i32 : i32
    %24 = vector.broadcast %23 : i32 to vector<1x256xi32>
    %25 = arith.remsi %21, %24 : vector<1x256xi32>
    %c0_i32_9 = arith.constant 0 : i32
    %26 = vector.broadcast %c0_i32_9 : i32 to vector<1x256xi32>
    %27 = arith.cmpi ne, %25, %26 : vector<1x256xi32>
    %c0_i32_10 = arith.constant 0 : i32
    %28 = vector.broadcast %c0_i32_10 : i32 to vector<1x256xi32>
    %29 = arith.cmpi slt, %25, %28 : vector<1x256xi32>
    %c0_i32_11 = arith.constant 0 : i32
    %30 = arith.cmpi slt, %23, %c0_i32_11 : i32
    %31 = vector.broadcast %30 : i1 to vector<1x256xi1>
    %32 = vector.broadcast %31 : vector<1x256xi1> to vector<1x256xi1>
    %33 = arith.xori %29, %32 : vector<1x256xi1>
    %34 = arith.andi %33, %27 : vector<1x256xi1>
    %35 = vector.broadcast %23 : i32 to vector<1x256xi32>
    %36 = arith.addi %25, %35 : vector<1x256xi32>
    %37 = arith.select %34, %36, %25 : vector<1x256xi1>, vector<1x256xi32>
    %c16_i32_12 = arith.constant 16 : i32
    %38 = vector.broadcast %c16_i32_12 : i32 to vector<1x256xi32>
    %39 = arith.cmpi slt, %37, %38 : vector<1x256xi32>
    %40 = vector.shape_cast %39 : vector<1x256xi1> to vector<1x256xi1>
    %41 = vector.broadcast %40 : vector<1x256xi1> to vector<16x256xi1>
    %42 = arith.select %41, %19, %20 : vector<16x256xi1>, vector<16x256xf32>
    %c0_13 = arith.constant 0 : index
    %c0_14 = arith.constant 0 : index
    %43 = vector.load %arg8[%c0_13, %c0_14] : memref<8x256xbf16, #tpu.memory_space<vmem>>, vector<8x256xbf16>
    %44 = tpu.concatenate %43, %43 in 0 : vector<8x256xbf16>, vector<8x256xbf16> -> vector<16x256xbf16>
    %45 = arith.extf %44 : vector<16x256xbf16> to vector<16x256xf32>
    %c0_15 = arith.constant 0 : index
    %c0_16 = arith.constant 0 : index
    %46 = vector.load %arg9[%c0_15, %c0_16] : memref<8x256xbf16, #tpu.memory_space<vmem>>, vector<8x256xbf16>
    %47 = tpu.concatenate %46, %46 in 0 : vector<8x256xbf16>, vector<8x256xbf16> -> vector<16x256xbf16>
    %48 = arith.extf %47 : vector<16x256xbf16> to vector<16x256xf32>
    %49 = arith.mulf %18, %45 : vector<16x256xf32>
    %50 = arith.mulf %42, %48 : vector<16x256xf32>
    %51 = arith.addf %49, %50 : vector<16x256xf32>
    %52 = arith.truncf %51 : vector<16x256xf32> to vector<16x256xbf16>
    %53 = tpu.iota {dimensions = array<i32: 1>} : vector<2x8x8xi32>
    %54 = tpu.iota {dimensions = array<i32: 2>} : vector<2x8x8xi32>
    %55 = arith.cmpi sgt, %54, %53 : vector<2x8x8xi32>
    %56 = vector.extract_strided_slice %52 {offsets = [0, 128], sizes = [16, 32], strides = [1, 1]} : vector<16x256xbf16> to vector<16x32xbf16>
    %57 = vector.shape_cast %56 : vector<16x32xbf16> to vector<2x8x32xbf16>
    %58 = vector.extract_strided_slice %52 {offsets = [0, 160], sizes = [16, 32], strides = [1, 1]} : vector<16x256xbf16> to vector<16x32xbf16>
    %59 = vector.shape_cast %58 : vector<16x32xbf16> to vector<2x8x32xbf16>
    %60 = vector.extract_strided_slice %52 {offsets = [0, 192], sizes = [16, 32], strides = [1, 1]} : vector<16x256xbf16> to vector<16x32xbf16>
    %61 = vector.shape_cast %60 : vector<16x32xbf16> to vector<2x8x32xbf16>
    %62 = vector.extract_strided_slice %52 {offsets = [0, 224], sizes = [16, 32], strides = [1, 1]} : vector<16x256xbf16> to vector<16x32xbf16>
    %63 = vector.shape_cast %62 : vector<16x32xbf16> to vector<2x8x32xbf16>
    %64 = vector.extract_strided_slice %52 {offsets = [0, 0], sizes = [16, 32], strides = [1, 1]} : vector<16x256xbf16> to vector<16x32xbf16>
    %65 = vector.shape_cast %64 : vector<16x32xbf16> to vector<2x8x32xbf16>
    "tpu.trace_start"() <{level = 10 : i32, message = "btd,bsd->bts"}> : () -> ()
    %cst_17 = arith.constant dense<0.000000e+00> : vector<2x8x8xf32>
    %66 = tpu.matmul %65, %57, %cst_17 {dimension_numbers = #tpu.dot_dimension_numbers<[2], [2], [1], [1], [0, 0, 0, 1, 1, 1], [0], [0]>} : vector<2x8x32xbf16>, vector<2x8x32xbf16>, vector<2x8x8xf32> -> vector<2x8x8xf32>
    %cst_18 = arith.constant 0xFF800000 : f32
    "tpu.trace_stop"() : () -> ()
    %67 = vector.broadcast %cst_18 : f32 to vector<2x8x8xf32>
    %68 = arith.select %55, %67, %66 : vector<2x8x8xi1>, vector<2x8x8xf32>
    %cst_19 = arith.constant dense<0xFF800000> : vector<2x8xf32>
    %69 = vector.multi_reduction <maximumf>, %68, %cst_19 [2] : vector<2x8x8xf32> to vector<2x8xf32>
    %70 = vector.shape_cast %69 : vector<2x8xf32> to vector<2x8x1xf32>
    %71 = vector.broadcast %70 : vector<2x8x1xf32> to vector<2x8x8xf32>
    %72 = arith.subf %68, %71 : vector<2x8x8xf32>
    %73 = math.exp %72 : vector<2x8x8xf32>
    %cst_20 = arith.constant dense<0.000000e+00> : vector<2x8xf32>
    %74 = vector.multi_reduction <add>, %73, %cst_20 [2] : vector<2x8x8xf32> to vector<2x8xf32>
    %75 = vector.shape_cast %74 : vector<2x8xf32> to vector<2x8x1xf32>
    %76 = tpu.reciprocal %75 {approx = true} : vector<2x8x1xf32> -> vector<2x8x1xf32>
    %77 = vector.broadcast %76 : vector<2x8x1xf32> to vector<2x8x8xf32>
    %78 = arith.mulf %73, %77 : vector<2x8x8xf32>
    %79 = arith.truncf %78 : vector<2x8x8xf32> to vector<2x8x8xbf16>
    "tpu.trace_start"() <{level = 10 : i32, message = "bts,bsd->btd"}> : () -> ()
    %cst_21 = arith.constant dense<0.000000e+00> : vector<2x8x32xf32>
    %80 = tpu.matmul %79, %61, %cst_21 {dimension_numbers = #tpu.dot_dimension_numbers<[2], [1], [1], [2], [0, 0, 0, 1, 1, 2], [0], [0]>} : vector<2x8x8xbf16>, vector<2x8x32xbf16>, vector<2x8x32xf32> -> vector<2x8x32xf32>
    "tpu.trace_stop"() : () -> ()
    %81 = vector.shape_cast %80 : vector<2x8x32xf32> to vector<16x32xf32>
    %82 = arith.truncf %81 : vector<16x32xf32> to vector<16x32xbf16>
    %c0_22 = arith.constant 0 : index
    %c0_23 = arith.constant 0 : index
    %83 = vector.load %arg5[%c0_22, %c0_23] : memref<128x128xbf16, #tpu.memory_space<vmem>>, vector<32x128xbf16>
    %cst_24 = arith.constant dense<0.000000e+00> : vector<16x128xf32>
    %84 = tpu.matmul %82, %83, %cst_24 {dimension_numbers = #tpu.dot_dimension_numbers<[1], [0], [0], [1], [0, 0, 1, 1], [], []>} : vector<16x32xbf16>, vector<32x128xbf16>, vector<16x128xf32> -> vector<16x128xf32>
    %85 = vector.extract_strided_slice %52 {offsets = [0, 32], sizes = [16, 32], strides = [1, 1]} : vector<16x256xbf16> to vector<16x32xbf16>
    %86 = vector.shape_cast %85 : vector<16x32xbf16> to vector<2x8x32xbf16>
    "tpu.trace_start"() <{level = 10 : i32, message = "btd,bsd->bts"}> : () -> ()
    %cst_25 = arith.constant dense<0.000000e+00> : vector<2x8x8xf32>
    %87 = tpu.matmul %86, %57, %cst_25 {dimension_numbers = #tpu.dot_dimension_numbers<[2], [2], [1], [1], [0, 0, 0, 1, 1, 1], [0], [0]>} : vector<2x8x32xbf16>, vector<2x8x32xbf16>, vector<2x8x8xf32> -> vector<2x8x8xf32>
    %cst_26 = arith.constant 0xFF800000 : f32
    "tpu.trace_stop"() : () -> ()
    %88 = vector.broadcast %cst_26 : f32 to vector<2x8x8xf32>
    %89 = arith.select %55, %88, %87 : vector<2x8x8xi1>, vector<2x8x8xf32>
    %cst_27 = arith.constant dense<0xFF800000> : vector<2x8xf32>
    %90 = vector.multi_reduction <maximumf>, %89, %cst_27 [2] : vector<2x8x8xf32> to vector<2x8xf32>
    %91 = vector.shape_cast %90 : vector<2x8xf32> to vector<2x8x1xf32>
    %92 = vector.broadcast %91 : vector<2x8x1xf32> to vector<2x8x8xf32>
    %93 = arith.subf %89, %92 : vector<2x8x8xf32>
    %94 = math.exp %93 : vector<2x8x8xf32>
    %cst_28 = arith.constant dense<0.000000e+00> : vector<2x8xf32>
    %95 = vector.multi_reduction <add>, %94, %cst_28 [2] : vector<2x8x8xf32> to vector<2x8xf32>
    %96 = vector.shape_cast %95 : vector<2x8xf32> to vector<2x8x1xf32>
    %97 = tpu.reciprocal %96 {approx = true} : vector<2x8x1xf32> -> vector<2x8x1xf32>
    %98 = vector.broadcast %97 : vector<2x8x1xf32> to vector<2x8x8xf32>
    %99 = arith.mulf %94, %98 : vector<2x8x8xf32>
    %100 = arith.truncf %99 : vector<2x8x8xf32> to vector<2x8x8xbf16>
    "tpu.trace_start"() <{level = 10 : i32, message = "bts,bsd->btd"}> : () -> ()
    %cst_29 = arith.constant dense<0.000000e+00> : vector<2x8x32xf32>
    %101 = tpu.matmul %100, %61, %cst_29 {dimension_numbers = #tpu.dot_dimension_numbers<[2], [1], [1], [2], [0, 0, 0, 1, 1, 2], [0], [0]>} : vector<2x8x8xbf16>, vector<2x8x32xbf16>, vector<2x8x32xf32> -> vector<2x8x32xf32>
    "tpu.trace_stop"() : () -> ()
    %102 = vector.shape_cast %101 : vector<2x8x32xf32> to vector<16x32xf32>
    %103 = arith.truncf %102 : vector<16x32xf32> to vector<16x32xbf16>
    %c32 = arith.constant 32 : index
    %c0_30 = arith.constant 0 : index
    %104 = vector.load %arg5[%c32, %c0_30] : memref<128x128xbf16, #tpu.memory_space<vmem>>, vector<32x128xbf16>
    %cst_31 = arith.constant dense<0.000000e+00> : vector<16x128xf32>
    %105 = tpu.matmul %103, %104, %cst_31 {dimension_numbers = #tpu.dot_dimension_numbers<[1], [0], [0], [1], [0, 0, 1, 1], [], []>} : vector<16x32xbf16>, vector<32x128xbf16>, vector<16x128xf32> -> vector<16x128xf32>
    %106 = arith.addf %84, %105 : vector<16x128xf32>
    %107 = vector.extract_strided_slice %52 {offsets = [0, 64], sizes = [16, 32], strides = [1, 1]} : vector<16x256xbf16> to vector<16x32xbf16>
    %108 = vector.shape_cast %107 : vector<16x32xbf16> to vector<2x8x32xbf16>
    "tpu.trace_start"() <{level = 10 : i32, message = "btd,bsd->bts"}> : () -> ()
    %cst_32 = arith.constant dense<0.000000e+00> : vector<2x8x8xf32>
    %109 = tpu.matmul %108, %59, %cst_32 {dimension_numbers = #tpu.dot_dimension_numbers<[2], [2], [1], [1], [0, 0, 0, 1, 1, 1], [0], [0]>} : vector<2x8x32xbf16>, vector<2x8x32xbf16>, vector<2x8x8xf32> -> vector<2x8x8xf32>
    %cst_33 = arith.constant 0xFF800000 : f32
    "tpu.trace_stop"() : () -> ()
    %110 = vector.broadcast %cst_33 : f32 to vector<2x8x8xf32>
    %111 = arith.select %55, %110, %109 : vector<2x8x8xi1>, vector<2x8x8xf32>
    %cst_34 = arith.constant dense<0xFF800000> : vector<2x8xf32>
    %112 = vector.multi_reduction <maximumf>, %111, %cst_34 [2] : vector<2x8x8xf32> to vector<2x8xf32>
    %113 = vector.shape_cast %112 : vector<2x8xf32> to vector<2x8x1xf32>
    %114 = vector.broadcast %113 : vector<2x8x1xf32> to vector<2x8x8xf32>
    %115 = arith.subf %111, %114 : vector<2x8x8xf32>
    %116 = math.exp %115 : vector<2x8x8xf32>
    %cst_35 = arith.constant dense<0.000000e+00> : vector<2x8xf32>
    %117 = vector.multi_reduction <add>, %116, %cst_35 [2] : vector<2x8x8xf32> to vector<2x8xf32>
    %118 = vector.shape_cast %117 : vector<2x8xf32> to vector<2x8x1xf32>
    %119 = tpu.reciprocal %118 {approx = true} : vector<2x8x1xf32> -> vector<2x8x1xf32>
    %120 = vector.broadcast %119 : vector<2x8x1xf32> to vector<2x8x8xf32>
    %121 = arith.mulf %116, %120 : vector<2x8x8xf32>
    %122 = arith.truncf %121 : vector<2x8x8xf32> to vector<2x8x8xbf16>
    "tpu.trace_start"() <{level = 10 : i32, message = "bts,bsd->btd"}> : () -> ()
    %cst_36 = arith.constant dense<0.000000e+00> : vector<2x8x32xf32>
    %123 = tpu.matmul %122, %63, %cst_36 {dimension_numbers = #tpu.dot_dimension_numbers<[2], [1], [1], [2], [0, 0, 0, 1, 1, 2], [0], [0]>} : vector<2x8x8xbf16>, vector<2x8x32xbf16>, vector<2x8x32xf32> -> vector<2x8x32xf32>
    "tpu.trace_stop"() : () -> ()
    %124 = vector.shape_cast %123 : vector<2x8x32xf32> to vector<16x32xf32>
    %125 = arith.truncf %124 : vector<16x32xf32> to vector<16x32xbf16>
    %c64 = arith.constant 64 : index
    %c0_37 = arith.constant 0 : index
    %126 = vector.load %arg5[%c64, %c0_37] : memref<128x128xbf16, #tpu.memory_space<vmem>>, vector<32x128xbf16>
    %cst_38 = arith.constant dense<0.000000e+00> : vector<16x128xf32>
    %127 = tpu.matmul %125, %126, %cst_38 {dimension_numbers = #tpu.dot_dimension_numbers<[1], [0], [0], [1], [0, 0, 1, 1], [], []>} : vector<16x32xbf16>, vector<32x128xbf16>, vector<16x128xf32> -> vector<16x128xf32>
    %128 = arith.addf %106, %127 : vector<16x128xf32>
    %129 = vector.extract_strided_slice %52 {offsets = [0, 96], sizes = [16, 32], strides = [1, 1]} : vector<16x256xbf16> to vector<16x32xbf16>
    %130 = vector.shape_cast %129 : vector<16x32xbf16> to vector<2x8x32xbf16>
    "tpu.trace_start"() <{level = 10 : i32, message = "btd,bsd->bts"}> : () -> ()
    %cst_39 = arith.constant dense<0.000000e+00> : vector<2x8x8xf32>
    %131 = tpu.matmul %130, %59, %cst_39 {dimension_numbers = #tpu.dot_dimension_numbers<[2], [2], [1], [1], [0, 0, 0, 1, 1, 1], [0], [0]>} : vector<2x8x32xbf16>, vector<2x8x32xbf16>, vector<2x8x8xf32> -> vector<2x8x8xf32>
    %cst_40 = arith.constant 0xFF800000 : f32
    "tpu.trace_stop"() : () -> ()
    %132 = vector.broadcast %cst_40 : f32 to vector<2x8x8xf32>
    %133 = arith.select %55, %132, %131 : vector<2x8x8xi1>, vector<2x8x8xf32>
    %cst_41 = arith.constant dense<0xFF800000> : vector<2x8xf32>
    %134 = vector.multi_reduction <maximumf>, %133, %cst_41 [2] : vector<2x8x8xf32> to vector<2x8xf32>
    %135 = vector.shape_cast %134 : vector<2x8xf32> to vector<2x8x1xf32>
    %136 = vector.broadcast %135 : vector<2x8x1xf32> to vector<2x8x8xf32>
    %137 = arith.subf %133, %136 : vector<2x8x8xf32>
    %138 = math.exp %137 : vector<2x8x8xf32>
    %cst_42 = arith.constant dense<0.000000e+00> : vector<2x8xf32>
    %139 = vector.multi_reduction <add>, %138, %cst_42 [2] : vector<2x8x8xf32> to vector<2x8xf32>
    %140 = vector.shape_cast %139 : vector<2x8xf32> to vector<2x8x1xf32>
    %141 = tpu.reciprocal %140 {approx = true} : vector<2x8x1xf32> -> vector<2x8x1xf32>
    %142 = vector.broadcast %141 : vector<2x8x1xf32> to vector<2x8x8xf32>
    %143 = arith.mulf %138, %142 : vector<2x8x8xf32>
    %144 = arith.truncf %143 : vector<2x8x8xf32> to vector<2x8x8xbf16>
    "tpu.trace_start"() <{level = 10 : i32, message = "bts,bsd->btd"}> : () -> ()
    %cst_43 = arith.constant dense<0.000000e+00> : vector<2x8x32xf32>
    %145 = tpu.matmul %144, %63, %cst_43 {dimension_numbers = #tpu.dot_dimension_numbers<[2], [1], [1], [2], [0, 0, 0, 1, 1, 2], [0], [0]>} : vector<2x8x8xbf16>, vector<2x8x32xbf16>, vector<2x8x32xf32> -> vector<2x8x32xf32>
    "tpu.trace_stop"() : () -> ()
    %146 = vector.shape_cast %145 : vector<2x8x32xf32> to vector<16x32xf32>
    %147 = arith.truncf %146 : vector<16x32xf32> to vector<16x32xbf16>
    %c96 = arith.constant 96 : index
    %c0_44 = arith.constant 0 : index
    %148 = vector.load %arg5[%c96, %c0_44] : memref<128x128xbf16, #tpu.memory_space<vmem>>, vector<32x128xbf16>
    %cst_45 = arith.constant dense<0.000000e+00> : vector<16x128xf32>
    %149 = tpu.matmul %147, %148, %cst_45 {dimension_numbers = #tpu.dot_dimension_numbers<[1], [0], [0], [1], [0, 0, 1, 1], [], []>} : vector<16x32xbf16>, vector<32x128xbf16>, vector<16x128xf32> -> vector<16x128xf32>
    %150 = arith.addf %128, %149 : vector<16x128xf32>
    %151 = arith.addf %2, %150 : vector<16x128xf32>
    %c0_46 = arith.constant 0 : index
    %c0_47 = arith.constant 0 : index
    %152 = vector.load %arg3[%c0_46, %c0_47] : memref<1x128xf32, #tpu.memory_space<vmem>>, vector<1x128xf32>
    %153 = arith.mulf %151, %151 : vector<16x128xf32>
    %cst_48 = arith.constant dense<0.000000e+00> : vector<16xf32>
    %154 = vector.multi_reduction <add>, %153, %cst_48 [1] : vector<16x128xf32> to vector<16xf32>
    %155 = vector.shape_cast %154 : vector<16xf32> to vector<16x1xf32>
    %cst_49 = arith.constant 1.280000e+02 : f32
    %156 = vector.broadcast %cst_49 : f32 to vector<16x1xf32>
    %157 = arith.divf %155, %156 : vector<16x1xf32>
    %cst_50 = arith.constant 9.99999974E-6 : f32
    %158 = vector.broadcast %cst_50 : f32 to vector<16x1xf32>
    %159 = arith.addf %157, %158 : vector<16x1xf32>
    %160 = math.rsqrt %159 : vector<16x1xf32>
    %161 = vector.broadcast %160 : vector<16x1xf32> to vector<16x128xf32>
    %162 = arith.mulf %151, %161 : vector<16x128xf32>
    %163 = vector.broadcast %152 : vector<1x128xf32> to vector<16x128xf32>
    %164 = arith.mulf %162, %163 : vector<16x128xf32>
    %165 = arith.truncf %164 : vector<16x128xf32> to vector<16x128xbf16>
    %c0_51 = arith.constant 0 : index
    %c0_52 = arith.constant 0 : index
    %166 = vector.load %arg6[%c0_51, %c0_52] : memref<128x512xbf16, #tpu.memory_space<vmem>>, vector<128x512xbf16>
    %cst_53 = arith.constant dense<0.000000e+00> : vector<16x512xf32>
    %167 = tpu.matmul %165, %166, %cst_53 {dimension_numbers = #tpu.dot_dimension_numbers<[1], [0], [0], [1], [0, 0, 1, 1], [], []>} : vector<16x128xbf16>, vector<128x512xbf16>, vector<16x512xf32> -> vector<16x512xf32>
    %168 = vector.extract_strided_slice %167 {offsets = [0, 0], sizes = [16, 256], strides = [1, 1]} : vector<16x512xf32> to vector<16x256xf32>
    %169 = vector.extract_strided_slice %167 {offsets = [0, 256], sizes = [16, 256], strides = [1, 1]} : vector<16x512xf32> to vector<16x256xf32>
    %170 = arith.negf %168 : vector<16x256xf32>
    %171 = math.exp %170 : vector<16x256xf32>
    %cst_54 = arith.constant 1.000000e+00 : f32
    %172 = vector.broadcast %cst_54 : f32 to vector<16x256xf32>
    %173 = arith.addf %172, %171 : vector<16x256xf32>
    %174 = arith.divf %172, %173 : vector<16x256xf32>
    %175 = arith.mulf %168, %174 : vector<16x256xf32>
    %176 = arith.mulf %175, %169 : vector<16x256xf32>
    %177 = arith.truncf %176 : vector<16x256xf32> to vector<16x256xbf16>
    %c0_55 = arith.constant 0 : index
    %c0_56 = arith.constant 0 : index
    %178 = vector.load %arg7[%c0_55, %c0_56] : memref<256x128xbf16, #tpu.memory_space<vmem>>, vector<256x128xbf16>
    %cst_57 = arith.constant dense<0.000000e+00> : vector<16x128xf32>
    %179 = tpu.matmul %177, %178, %cst_57 {dimension_numbers = #tpu.dot_dimension_numbers<[1], [0], [0], [1], [0, 0, 1, 1], [], []>} : vector<16x256xbf16>, vector<256x128xbf16>, vector<16x128xf32> -> vector<16x128xf32>
    %180 = arith.addf %151, %179 : vector<16x128xf32>
    %181 = vector.shape_cast %180 : vector<16x128xf32> to vector<2x8x128xf32>
    %182 = arith.truncf %181 : vector<2x8x128xf32> to vector<2x8x128xbf16>
    %c0_58 = arith.constant 0 : index
    %c0_59 = arith.constant 0 : index
    %c0_60 = arith.constant 0 : index
    %183 = vector.load %arg10[%c0_58, %c0_59, %c0_60] : memref<2x8x128xbf16, #tpu.memory_space<vmem>>, vector<2x8x128xbf16>
    tpu.vector_store %arg10[%c0_58, %c0_59, %c0_60], %182 {strides = array<i32>} : memref<2x8x128xbf16, #tpu.memory_space<vmem>>, vector<2x8x128xbf16>,
    return
  }
  func.func @transform_0(%arg0: i32) -> (i32, i32, i32) {
    %c0_i32 = arith.constant 0 : i32
    %c0_i32_0 = arith.constant 0 : i32
    %c0_i32_1 = arith.constant 0 : i32
    return %arg0, %c0_i32, %c0_i32_0 : i32, i32, i32
  }
  func.func @transform_1(%arg0: i32) -> (i32, i32) {
    %c0_i32 = arith.constant 0 : i32
    %c0_i32_0 = arith.constant 0 : i32
    %c0_i32_1 = arith.constant 0 : i32
    return %c0_i32, %c0_i32_0 : i32, i32
  }
  func.func @transform_2(%arg0: i32) -> (i32, i32) {
    %c0_i32 = arith.constant 0 : i32
    %c0_i32_0 = arith.constant 0 : i32
    %c0_i32_1 = arith.constant 0 : i32
    return %c0_i32, %c0_i32_0 : i32, i32
  }
  func.func @transform_3(%arg0: i32) -> (i32, i32) {
    %c0_i32 = arith.constant 0 : i32
    %c0_i32_0 = arith.constant 0 : i32
    %c0_i32_1 = arith.constant 0 : i32
    return %c0_i32, %c0_i32_0 : i32, i32
  }
  func.func @transform_4(%arg0: i32) -> (i32, i32) {
    %c0_i32 = arith.constant 0 : i32
    %c0_i32_0 = arith.constant 0 : i32
    %c0_i32_1 = arith.constant 0 : i32
    return %c0_i32, %c0_i32_0 : i32, i32
  }
  func.func @transform_5(%arg0: i32) -> (i32, i32) {
    %c0_i32 = arith.constant 0 : i32
    %c0_i32_0 = arith.constant 0 : i32
    %c0_i32_1 = arith.constant 0 : i32
    return %c0_i32, %c0_i32_0 : i32, i32
  }
  func.func @transform_6(%arg0: i32) -> (i32, i32) {
    %c0_i32 = arith.constant 0 : i32
    %c0_i32_0 = arith.constant 0 : i32
    %c0_i32_1 = arith.constant 0 : i32
    return %c0_i32, %c0_i32_0 : i32, i32
  }
  func.func @transform_7(%arg0: i32) -> (i32, i32) {
    %c0_i32 = arith.constant 0 : i32
    %c0_i32_0 = arith.constant 0 : i32
    %c0_i32_1 = arith.constant 0 : i32
    return %c0_i32, %c0_i32_0 : i32, i32
  }
  func.func @transform_8(%arg0: i32) -> (i32, i32) {
    %c0_i32 = arith.constant 0 : i32
    %c0_i32_0 = arith.constant 0 : i32
    %c0_i32_1 = arith.constant 0 : i32
    return %c0_i32, %c0_i32_0 : i32, i32
  }
  func.func @transform_9(%arg0: i32) -> (i32, i32, i32) {
    %c0_i32 = arith.constant 0 : i32
    %c0_i32_0 = arith.constant 0 : i32
    %c0_i32_1 = arith.constant 0 : i32
    return %arg0, %c0_i32, %c0_i32_0 : i32, i32, i32
  }
}

</mosaic_0001>

<bundles_post_ra>
// kernel: tpu_custom_call.1
= control target key start
LH: loop header
LB: loop body
LE: loop exit
PB: predicated region body
PF: predicated region fallthrough
CT: control target
= control target key end

     0   :  { %14 = vsyncpa [#allocation3], 0  ;;  %s3029_s0 = inlined_call_operand.hbm [shape: bf16[2,8,128], index: 0, kind: input, shape index: {}]   ;;  %s3030_s1 = inlined_call_operand.vmem [shape: f32[1,128], index: 1, kind: input, shape index: {}]   ;;  %s3031_s2 = inlined_call_operand.vmem [shape: f32[1,128], index: 2, kind: input, shape index: {}]   ;;  %s3032_s3 = inlined_call_operand.hbm [shape: bf16[128,256], index: 3, kind: input, shape index: {}]   ;;  %s3033_s4 = inlined_call_operand.hbm [shape: bf16[128,128], index: 4, kind: input, shape index: {}]   ;;  %s3034_s5 = inlined_call_operand.hbm [shape: bf16[128,512], index: 5, kind: input, shape index: {}]   ;;  %s3035_s6 = inlined_call_operand.hbm [shape: bf16[256,128], index: 6, kind: input, shape index: {}]   ;;  %s3036_s7 = inlined_call_operand.vmem [shape: bf16[8,256], index: 7, kind: input, shape index: {}]   ;;  %s3037_s8 = inlined_call_operand.hbm [shape: bf16[8,256], index: 8, kind: input, shape index: {}]   ;;  %s3038_s9 = inlined_call_operand.hbm [shape: bf16[2,8,128], index: 9, kind: output, shape index: {}]  }
   0x1   :  { %15 = vsyncpa [#allocation6], 0 }
   0x2   :  { %16 = vsyncpa [#allocation9], 0 }
   0x3   :  { %17 = vsyncpa [#allocation12], 0 }
   0x4   :  { %18 = vsyncpa [#allocation4], 0  ;;  %s2666_s30 = smov [#allocation5]  }
   0x5   :  { %s40_s10 = sshll.u32 %s2666_s30, 4  ;;  %s41_s10 = int_to_ptr.vmem [resolvable:$true] %s40_s10 }
   0x6   :  { %s2524_s11 = scalar_lea.vmem %s41_s10, 2048  ;;  %p2529_p1 = scmp.lt.s32.totalorder %s41_s10, %s41_s10 }
   0x7   :  { %p2525_p0 = scmp.ne.s32.totalorder %s41_s10, %s2524_s11  ;;  %p2530_p2 = scmp.lt.s32.totalorder %s2524_s11, %s2524_s11 }
   0x9   :  { %p2531_p3 = por %p2530_p2, %p2529_p1 }
   0xb   :  { %p2532_p4 = pnand %p2531_p3, %p2525_p0 }
   0xd   :  { %2535 = shalt.err (!%p2532_p4)
}
   0xe   :  { %s2667_s12 = smov 128   ;;  %s2668_s13 = smov 8  }
   0xf   :  { %46 = dma.hbm_to_vmem [thread:$0]  %s3032_s3, 2048, %s41_s10, [#allocation6], %s2667_s12, %s2667_s12, %s2668_s13  }
  0x10   :  { %s2669_s16 = smov [#allocation8]  }
  0x11   :  { %s64_s17 = sshll.u32 %s2669_s16, 4  ;;  %s65_s17 = int_to_ptr.vmem [resolvable:$true] %s64_s17 }
  0x12   :  { %s2544_s18 = scalar_lea.vmem %s65_s17, 4096  ;;  %p2549_p6 = scmp.lt.s32.totalorder %s65_s17, %s65_s17 }
  0x13   :  { %p2545_p5 = scmp.ne.s32.totalorder %s65_s17, %s2544_s18  ;;  %p2550_p7 = scmp.lt.s32.totalorder %s2544_s18, %s2544_s18 }
  0x15   :  { %p2551_p8 = por %p2550_p7, %p2549_p6 }
  0x17   :  { %p2552_p9 = pnand %p2551_p8, %p2545_p5 }
  0x19   :  { %2555 = shalt.err (!%p2552_p9)
}
  0x1a   :  { %s2670_s19 = smov 256   ;;  %s2671_s20 = smov 16  }
  0x1b   :  { %70 = dma.hbm_to_vmem [thread:$0]  %s3034_s5, 4096, %s65_s17, [#allocation9], %s2670_s19, %s2670_s19, %s2671_s20  }
  0x1c   :  { %s2672_s23 = smov [#allocation2]  }
  0x1d   :  { %s24_s24 = sshll.u32 %s2672_s23, 4  ;;  %s25_s24 = int_to_ptr.vmem [resolvable:$true] %s24_s24 }
  0x1e   :  { %s2564_s3 = scalar_lea.vmem %s25_s24, 128  ;;  %p2569_p11 = scmp.lt.s32.totalorder %s25_s24, %s25_s24 }
  0x1f   :  { %p2565_p10 = scmp.ne.s32.totalorder %s25_s24, %s2564_s3  ;;  %p2570_p12 = scmp.lt.s32.totalorder %s2564_s3, %s2564_s3 }
  0x21   :  { %p2571_p13 = por %p2570_p12, %p2569_p11 }
  0x23   :  { %p2572_p0 = pnand %p2571_p13, %p2565_p10 }
  0x25   :  { %2575 = shalt.err (!%p2572_p0)
}
  0x26   :  { %s2673_s25 = smov 64   ;;  %s2674_s26 = smov 4  }
  0x27   :  { %30 = dma.hbm_to_vmem [thread:$0]  %s3029_s0, 128, %s25_s24, [#allocation3], %s2673_s25, %s2673_s25, %s2674_s26  }
  0x28   :  { %s2675_s5 = smov [#allocation7]   ;;  %s2676_s30 = smov [#allocation10]  }
  0x29   :  { %s52_s29 = sshll.u32 %s2675_s5, 4  ;;  %s76_s10 = sshll.u32 %s2676_s30, 4  ;;  %s53_s29 = int_to_ptr.vmem [resolvable:$true] %s52_s29  ;;  %s77_s10 = int_to_ptr.vmem [resolvable:$true] %s76_s10 }
  0x2a   :  { %s2584_s11 = scalar_lea.vmem %s53_s29, 1024  ;;  %p2589_p2 = scmp.lt.s32.totalorder %s53_s29, %s53_s29 }
  0x2b   :  { %p2585_p1 = scmp.ne.s32.totalorder %s53_s29, %s2584_s11  ;;  %p2590_p3 = scmp.lt.s32.totalorder %s2584_s11, %s2584_s11 }
  0x2d   :  { %p2591_p4 = por %p2590_p3, %p2589_p2 }
  0x2f   :  { %p2592_p5 = pnand %p2591_p4, %p2585_p1 }
  0x31   :  { %2595 = shalt.err (!%p2592_p5)
}
  0x32   :  { %58 = dma.hbm_to_vmem [thread:$0]  %s3033_s4, 1024, %s53_s29, [#allocation6], %s2673_s25, %s2673_s25, %s2674_s26  }
  0x33   :  { %s2604_s0 = scalar_lea.vmem %s77_s10, 2048  ;;  %p2609_p7 = scmp.lt.s32.totalorder %s77_s10, %s77_s10 }
  0x34   :  { %p2605_p6 = scmp.ne.s32.totalorder %s77_s10, %s2604_s0  ;;  %p2610_p8 = scmp.lt.s32.totalorder %s2604_s0, %s2604_s0 }
  0x36   :  { %p2611_p9 = por %p2610_p8, %p2609_p7 }
  0x38   :  { %p2612_p10 = pnand %p2611_p9, %p2605_p6 }
  0x3a   :  { %2615 = shalt.err (!%p2612_p10)
}
  0x3b   :  { %82 = dma.hbm_to_vmem [thread:$0]  %s3035_s6, 2048, %s77_s10, [#allocation9], %s2673_s25, %s2673_s25, %s2674_s26  }
  0x3c   :  { %s2677_s16 = smov [#allocation11]  }
  0x3d   :  { %s91_s17 = sshll.u32 %s2677_s16, 4  ;;  %s92_s17 = int_to_ptr.vmem [resolvable:$true] %s91_s17 }
  0x3e   :  { %s2624_s18 = scalar_lea.vmem %s92_s17, 128  ;;  %p2629_p12 = scmp.lt.s32.totalorder %s92_s17, %s92_s17 }
  0x3f   :  { %p2625_p11 = scmp.ne.s32.totalorder %s92_s17, %s2624_s18  ;;  %p2630_p13 = scmp.lt.s32.totalorder %s2624_s18, %s2624_s18 }
  0x41   :  { %p2631_p0 = por %p2630_p13, %p2629_p12 }
  0x43   :  { %p2632_p1 = pnand %p2631_p0, %p2625_p11 }
  0x45   :  { %2635 = shalt.err (!%p2632_p1)
}
  0x46   :  { %94 = dma.hbm_to_vmem [thread:$0]  %s3037_s8, 128, %s92_s17, [#allocation12]  }
  0x47   :  { %2656 = dma.done.wait [#allocation3], 128  }
  0x48   :  { %2657 = vsyncadd [#allocation3], 4294967168 }
  0x49   :  { %2658 = dma.done.wait [#allocation6], 3072  }
  0x4a   :  { %2659 = vsyncadd [#allocation6], 4294964224 }
  0x4b   :  { %2660 = dma.done.wait [#allocation9], 6144  }
  0x4c   :  { %2661 = vsyncadd [#allocation9], 4294961152 }
  0x4d   :  { %2662 = dma.done.wait [#allocation12], 128  }
  0x4e   :  { %2663 = vsyncadd [#allocation12], 4294967168  ;;  %v2139_v0 = vld [vmem:[#allocation2] sm:$0xff]   ;;  %v2363_v7 = vld [vmem:[#allocation5 + $0x64] ss:$8 sps:$4 sm:$0xff]   ;;  %v2678_v17 = vmov 0   ;;  %v290_v41 = vlaneseq }
  0x4f   :  { %v2763_v1 = vunpack.c.l.bf16 %v2139_v0  ;;  %v2765_v2 = vunpack.c.h.bf16 %v2139_v0  ;;  %v2360_v3 = vld [vmem:[#allocation5 + $0x74] ss:$8 sps:$4 sm:$0xff]   ;;  %v2362_v4 = vld [vmem:[#allocation5 + $0x70] ss:$8 sps:$4 sm:$0xff]   ;;  %v2365_v8 = vld [vmem:[#allocation5 + $0x60] ss:$8 sps:$4 sm:$0xff]   ;;  %271 = vmatprep.mubr.bf16.mxu0 %v2678_v17 }
  0x50   :  { %239 = vmatprep.subr.bf16.mxu0 %v2360_v3  ;;  %v2366_v9 = vld [vmem:[#allocation5 + $0x54] ss:$8 sps:$4 sm:$0xff]   ;;  %v2368_v10 = vld [vmem:[#allocation5 + $0x50] ss:$8 sps:$4 sm:$0xff]   ;;  %v2369_v11 = vld [vmem:[#allocation5 + $0x44] ss:$8 sps:$4 sm:$0xff]  }
  0x51   :  { %v119_v5 = vmul.f32 %v2763_v1, %v2763_v1  ;;  %240 = vmatpush1.bf16.msra.mxu0 %v2362_v4  ;;  %v120_v6 = vmul.f32 %v2765_v2, %v2765_v2  ;;  %v2371_v12 = vld [vmem:[#allocation5 + $0x40] ss:$8 sps:$4 sm:$0xff]   ;;  %v2372_v13 = vld [vmem:[#allocation5 + $0x34] ss:$8 sps:$4 sm:$0xff]   ;;  %v2374_v14 = vld [vmem:[#allocation5 + $0x30] ss:$8 sps:$4 sm:$0xff]  }
  0x52   :  { %241 = vmatprep.subr.bf16.mxu0 %v2363_v7  ;;  %v2375_v15 = vld [vmem:[#allocation5 + $0x24] ss:$8 sps:$4 sm:$0xff]   ;;  %v2377_v16 = vld [vmem:[#allocation5 + $0x20] ss:$8 sps:$4 sm:$0xff]   ;;  %v2378_v18 = vld [vmem:[#allocation5 + $0x14] ss:$8 sps:$4 sm:$0xff]  }
  0x53   :  { %121 = vadd.xlane.f32.xlu0 %v119_v5  ;;  %v2380_v19 = vld [vmem:[#allocation5 + $0x10] ss:$8 sps:$4 sm:$0xff]   ;;  %v2381_v20 = vld [vmem:[#allocation5 + $0x4] ss:$8 sps:$4 sm:$0xff]   ;;  %v2383_v21 = vld [vmem:[#allocation5] ss:$8 sps:$4 sm:$0xff]  }
  0x54   :  { %v2028_v31 = vld [vmem:[%s3030_s1] ss:$0 sm:$0xff]  ;;  %s2679_s21 = smov 112   ;;  %v2680_v38 = vmov 0.0   ;;  %vm2681_vm0 = vmmov 0   ;;  %v291_v42 = vand.u32 127, %v290_v41 }
  0x55   :  { %242 = vmatpush1.bf16.msra.mxu0 %v2365_v8  ;;  %2213 = vmatprep.subr.bf16.mxu1 %v2680_v38  ;;  %v393_v43 = vshrl.u32 %v290_v41, 7  ;;  %v362_v47 = vld [vmem:[#allocation11] sm:$0xff]  ;;  %v345_v48 = vld [vmem:[%s3036_s7] sm:$0xff]  ;;  %vm405_vm6 = vcmask 261120   ;;  %vm500_vm7 = vcmask 64512   ;;  %s2682_s7 = smov 96  }
  0x56   :  { %243 = vmatprep.subr.bf16.mxu0 %v2366_v9  ;;  %2215 = vmatprep.mubr.msk.bf16.mxu1 %vm2681_vm0, %v2680_v38  ;;  %v310_v45 = vadd.s32 128, %v291_v42  ;;  %v2046_v49 = vcombine.high %v345_v48, %v345_v48  ;;  %v2048_v51 = vcombine.high %v362_v47, %v362_v47  ;;  %v315_v53 = vand.u32 31, %v291_v42 }
  0x57   :  { %123 = vadd.xlane.f32.xlu0 %v120_v6  ;;  %vm2791_vm1 = vcmp.gt.s32.totalorder %v291_v42, %v393_v43  ;;  %vm292_vm2 = vcmp.lt.s32.totalorder %v291_v42, 112  ;;  %vm305_vm3 = vcmp.lt.s32.totalorder %v291_v42, 16  ;;  %v2047_v56 = vcombine.low %v362_v47, %v362_v47 }
  0x58   :  { %v322_v50 = vand.u32 31, %v310_v45  ;;  %v359_v54 = vunpack.c.l.bf16 %v2046_v49  ;;  %v375_v57 = vunpack.c.l.bf16 %v2048_v51  ;;  %v2045_v58 = vcombine.low %v345_v48, %v345_v48 }
  0x59   :  { %244 = vmatpush1.bf16.msra.mxu0 %v2368_v10  ;;  %vm2803_vm5 = vcmp.lt.s32.totalorder %v315_v53, 16  ;;  %v374_v6 = vunpack.c.l.bf16 %v2047_v56  ;;  %vm351_vm8 = vcmask 1043456  }
  0x5a   :  { %245 = vmatprep.subr.bf16.mxu0 %v2369_v11  ;;  %vm2798_vm4 = vcmp.lt.s32.totalorder %v322_v50, 16  ;;  %v358_v10 = vunpack.c.l.bf16 %v2045_v58 }
  0x5d   :  { %246 = vmatpush1.bf16.msra.mxu0 %v2371_v12 }
  0x5e   :  { %247 = vmatprep.subr.bf16.mxu0 %v2372_v13 }
  0x61   :  { %248 = vmatpush1.bf16.msra.mxu0 %v2374_v14 }
  0x62   :  { %249 = vmatprep.subr.bf16.mxu0 %v2375_v15 }
  0x65   :  { %250 = vmatpush1.bf16.msra.mxu0 %v2377_v16 }
  0x66   :  { %251 = vmatprep.subr.bf16.mxu0 %v2378_v18 }
  0x69   :  { %252 = vmatpush1.bf16.msra.mxu0 %v2380_v19 }
  0x6a   :  { %253 = vmatprep.subr.bf16.mxu0 %v2381_v20  ;;  %v361_v20 = vunpack.c.h.bf16 %v2046_v49 }
  0x6d   :  { %254 = vmatpush1.bf16.msra.mxu0 %v2383_v21  ;;  %v377_v21 = vunpack.c.h.bf16 %v2048_v51 }
  0x6e   :  { %2261 = vmatprep.subr.bf16.mxu0 %v2680_v38 }
  0xdc   :  { %v122_v22 = vpop.xlane.xlu0 %121 }
  0xdd   :  { %v126_v23 = vmul.f32 0.0078125, %v122_v22 }
  0xdf   :  { %v128_v24 = vadd.f32 1e-05, %v126_v23 }
  0xe0   :  { %v124_v25 = vpop.xlane.xlu0 %123 }
  0xe1   :  { %2460 = vrsqrt.f32 %v128_v24  ;;  %v127_v26 = vmul.f32 0.0078125, %v124_v25 }
  0xe3   :  { %v129_v27 = vadd.f32 1e-05, %v127_v26 }
  0xe5   :  { %2462 = vrsqrt.f32 %v129_v27 }
  0xee   :  { %v2461_v28 = vpop.eup %2460 }
  0xef   :  { %v132_v29 = vmul.f32 %v2461_v28, %v2763_v1 }
  0xf1   :  { %v140_v33 = vmul.f32 %v2028_v31, %v132_v29 }
  0xf2   :  { %v2463_v30 = vpop.eup %2462 }
  0xf3   :  { %v133_v32 = vmul.f32 %v2463_v30, %v2765_v2  ;;  %v376_v30 = vunpack.c.h.bf16 %v2047_v56 }
  0xf5   :  { %v141_v34 = vmul.f32 %v2028_v31, %v133_v32 }
  0xf7   :  { %v142_v35 = vpack.c.bf16 %v141_v34, %v140_v33  ;;  %v360_v33 = vunpack.c.h.bf16 %v2045_v58 }
  0xf9   :  { %272 = vmatmul.mubr.bf16.vlgmr.msra.gmra.mxu0 %v142_v35 }
  0xfa   :  { %2265 = vmatprep.mubr.msk.bf16.mxu0 %vm2681_vm0, %v2680_v38 }
 0x1b9   :  { %v273_v36 = vpop.f32.mrf.mxu0 }
 0x1ba   :  { %297 = vrot.lane.b32.xlu0 %v273_v36, %s2671_s20  ;;  %282 = vrot.lane.b32.xlu1 %v273_v36, %s2679_s21  ;;  %v378_v15 = vmul.f32 %v358_v10, %v273_v36 }
 0x1bb   :  { %v275_v37 = vpop.f32.mrf.mxu0 }
 0x1bc   :  { %v379_v4 = vmul.f32 %v359_v54, %v275_v37 }
 0x1bd   :  { %v2785_v39 = vpop.f32.mrf.mxu0 }
 0x1be   :  { %286 = vrot.lane.b32.xlu1 %v275_v37, %s2679_s21 }
 0x1bf   :  { %v279_v40 = vpop.f32.mrf.mxu0 }
 0x1c0   :  { %v381_v28 = vmul.f32 %v361_v20, %v279_v40 }
 0x1c2   :  { %301 = vrot.lane.b32.xlu1 %v275_v37, %s2671_s20  ;;  %v380_v37 = vmul.f32 %v360_v33, %v2785_v39 }
 0x1c6   :  { %284 = vrot.lane.b32.xlu1 %v2785_v39, %s2679_s21 }
 0x1ca   :  { %299 = vrot.lane.b32.xlu1 %v2785_v39, %s2671_s20 }
 0x1ce   :  { %288 = vrot.lane.b32.xlu1 %v279_v40, %s2679_s21 }
 0x1d2   :  { %303 = vrot.lane.b32.xlu1 %v279_v40, %s2671_s20  ;;  %s2683_s20 = smov 32  }
 0x22c   :  { %v283_v46 = vpop.permute.xlu1 %282  ;;  %v298_v59 = vpop.permute.xlu0 %297 }
 0x230   :  { %v287_v52 = vpop.permute.xlu1 %286 }
 0x231   :  { %v295_v61 = vsel %vm292_vm2, %v287_v52, %v283_v46  ;;  %v293_v5 = vsel %vm292_vm2, %v283_v46, %v287_v52 }
 0x234   :  { %v302_v60 = vpop.permute.xlu1 %301 }
 0x235   :  { %v306_v63 = vsel %vm305_vm3, %v298_v59, %v302_v60  ;;  %v308_v0 = vsel %vm305_vm3, %v302_v60, %v298_v59 }
 0x236   :  { %v342_v3 = vsel %vm2798_vm4, %v295_v61, %v306_v63  ;;  %v341_v8 = vsel %vm2803_vm5, %v293_v5, %v308_v0 }
 0x237   :  { %v383_v7 = vmul.f32 %v375_v57, %v342_v3  ;;  %v382_v12 = vmul.f32 %v374_v6, %v341_v8 }
 0x238   :  { %v285_v9 = vpop.permute.xlu1 %284 }
 0x239   :  { %v387_v11 = vadd.f32 %v383_v7, %v379_v4  ;;  %v386_v18 = vadd.f32 %v382_v12, %v378_v15 }
 0x23b   :  { %v2814_v13 = vpack.c.bf16 %v387_v11, %v387_v11  ;;  %v2822_v22 = vpack.c.bf16 %v386_v18, %v386_v18 }
 0x23c   :  { %v300_v14 = vpop.permute.xlu1 %299 }
 0x23d   :  { %v2818_v16 = vsel %vm405_vm6, %v2814_v13, 0 }
 0x23e   :  { %2214 = vmatpush3.bf16.xpose.msra.mxu1 %v2818_v16 }
 0x23f   :  { %2219 = vmatprep.subr.bf16.mxu1 %v2680_v38 }
 0x240   :  { %v289_v19 = vpop.permute.xlu1 %288 }
 0x241   :  { %v296_v24 = vsel %vm292_vm2, %v289_v19, %v285_v9  ;;  %v294_v29 = vsel %vm292_vm2, %v285_v9, %v289_v19 }
 0x244   :  { %v304_v23 = vpop.permute.xlu1 %303 }
 0x245   :  { %v307_v25 = vsel %vm305_vm3, %v300_v14, %v304_v23  ;;  %v309_v26 = vsel %vm305_vm3, %v304_v23, %v300_v14  ;;  %2216 = vmatmul.mubr.msk.bf16.vlgmr.msra.gmra.mxu1 %vm405_vm6, %v2822_v22 }
 0x246   :  { %v344_v27 = vsel %vm2798_vm4, %v296_v24, %v307_v25  ;;  %2221 = vmatprep.mubr.msk.bf16.mxu1 %vm2681_vm0, %v2680_v38  ;;  %v343_v32 = vsel %vm2803_vm5, %v294_v29, %v309_v26 }
 0x247   :  { %v385_v31 = vmul.f32 %v377_v21, %v344_v27  ;;  %v384_v35 = vmul.f32 %v376_v30, %v343_v32 }
 0x249   :  { %v389_v34 = vadd.f32 %v385_v31, %v381_v28  ;;  %v388_v40 = vadd.f32 %v384_v35, %v380_v37 }
 0x24b   :  { %v2836_v36 = vpack.c.bf16 %v389_v34, %v389_v34  ;;  %v2845_v42 = vpack.c.bf16 %v388_v40, %v388_v40 }
 0x24d   :  { %v2841_v41 = vsel %vm405_vm6, %v2836_v36, 0 }
 0x24e   :  { %2220 = vmatpush3.bf16.xpose.msra.mxu1 %v2841_v41 }
 0x24f   :  { %2225 = vmatprep.subr.bf16.mxu1 %v2680_v38 }
 0x255   :  { %2222 = vmatmul.mubr.msk.bf16.vlgmr.msra.gmra.mxu1 %vm405_vm6, %v2845_v42 }
 0x256   :  { %2227 = vmatprep.mubr.msk.bf16.mxu1 %vm2681_vm0, %v2680_v38 }
 0x305   :  { %v446_v43 = vpop.f32.mrf.mxu1 }
 0x306   :  { %v498_v39 = vsel %vm2791_vm1, -inf, %v446_v43 }
 0x307   :  { %v2217_v45 = vpop.f32.mrf.mxu1  ;;  %v501_v46 = vsel %vm500_vm7, %v498_v39, -inf }
 0x308   :  { %502 = vmax.xlane.f32.xlu1 %v501_v46 }
 0x309   :  { %v449_v47 = vpop.f32.mrf.mxu1 }
 0x30b   :  { %v2218_v48 = vpop.f32.mrf.mxu1 }
 0x315   :  { %v492_v49 = vpop.f32.mrf.mxu1 }
 0x316   :  { %v499_v50 = vsel %vm2791_vm1, -inf, %v492_v49 }
 0x317   :  { %v2223_v51 = vpop.f32.mrf.mxu1  ;;  %v504_v52 = vsel %vm500_vm7, %v499_v50, -inf }
 0x318   :  { %505 = vmax.xlane.f32.xlu0 %v504_v52 }
 0x319   :  { %v495_v53 = vpop.f32.mrf.mxu1 }
 0x31b   :  { %v2224_v54 = vpop.f32.mrf.mxu1 }
 0x391   :  { %v503_v55 = vpop.xlane.xlu1 %502 }
 0x392   :  { %v507_v56 = vsub.f32 %v498_v39, %v503_v55 }
 0x394   :  { %v509_v57 = vmul.f32 1.442695, %v507_v56 }
 0x396   :  { %2464 = vpow2.f32 %v509_v57 }
 0x3a1   :  { %v506_v58 = vpop.xlane.xlu0 %505 }
 0x3a2   :  { %v508_v59 = vsub.f32 %v499_v50, %v506_v58 }
 0x3a3   :  { %v2465_v60 = vpop.eup %2464 }
 0x3a4   :  { %v511_v61 = vmul.f32 1.442695, %v508_v59  ;;  %v513_v62 = vsel %vm500_vm7, %v2465_v60, 0.0 }
 0x3a5   :  { %514 = vadd.xlane.f32.xlu0 %v513_v62  ;;  %v2388_v62 = vld [vmem:[#allocation7 + $0x8] sm:$0xff]  }
 0x3a6   :  { %2466 = vpow2.f32 %v511_v61 }
 0x3b3   :  { %v2467_v63 = vpop.eup %2466 }
 0x3b4   :  { %v516_v0 = vsel %vm500_vm7, %v2467_v63, 0.0 }
 0x3b5   :  { %517 = vadd.xlane.f32.xlu1 %v516_v0  ;;  %v2389_v0 = vld [vmem:[#allocation7] sm:$0xff]  }
 0x3bb   :  { %525 = vrot.lane.b32.xlu0 %v2814_v13, %s2673_s25 }
 0x3bf   :  { %671 = vrot.lane.b32.xlu0 %v2845_v42, %s2682_s7 }
 0x3c6   :  { %573 = vrot.lane.b32.xlu1 %v2836_v36, %s2673_s25 }
 0x3ca   :  { %626 = vrot.lane.b32.xlu1 %v2822_v22, %s2682_s7 }
 0x42e   :  { %v515_v3 = vpop.xlane.xlu0 %514 }
 0x42f   :  { %2468 = vrcp.f32 %v515_v3 }
 0x432   :  { %v526_v4 = vpop.permute.xlu0 %525 }
 0x433   :  { %v531_v5 = vsel %vm351_vm8, %v526_v4, 0 }
 0x434   :  { %2226 = vmatpush3.bf16.msra.mxu1 %v531_v5 }
 0x435   :  { %2231 = vmatprep.subr.bf16.mxu1 %v2680_v38 }
 0x436   :  { %v672_v19 = vpop.permute.xlu0 %671 }
 0x43c   :  { %v2469_v6 = vpop.eup %2468 }
 0x43d   :  { %v521_v7 = vmul.f32 %v2469_v6, %v2465_v60 }
 0x43e   :  { %v518_v8 = vpop.xlane.xlu1 %517 }
 0x43f   :  { %2470 = vrcp.f32 %v518_v8  ;;  %v523_v9 = vpack.c.bf16 %v521_v7, %v521_v7  ;;  %v2390_v7 = vld [vmem:[#allocation7 + $0x18] sm:$0xff]   ;;  %v2391_v8 = vld [vmem:[#allocation7 + $0x10] sm:$0xff]  }
 0x440   :  { %2262 = vmatpush3.bf16.msra.mxu0 %v2390_v7 }
 0x441   :  { %2228 = vmatmul.mubr.msk.bf16.vlgmr.msra.gmra.mxu1 %vm500_vm7, %v523_v9  ;;  %2263 = vmatprep.subr.bf16.mxu0 %v2680_v38 }
 0x442   :  { %v574_v10 = vpop.permute.xlu1 %573  ;;  %2233 = vmatprep.mubr.msk.bf16.mxu1 %vm2681_vm0, %v2680_v38 }
 0x443   :  { %v2873_v11 = vsel %vm351_vm8, %v574_v10, 0 }
 0x444   :  { %2232 = vmatpush3.bf16.msra.mxu1 %v2873_v11  ;;  %2264 = vmatpush3.bf16.msra.mxu0 %v2391_v8 }
 0x445   :  { %2237 = vmatprep.subr.bf16.mxu1 %v2680_v38  ;;  %2277 = vmatprep.subr.bf16.mxu0 %v2680_v38 }
 0x446   :  { %v627_v18 = vpop.permute.xlu1 %626 }
 0x44c   :  { %v2471_v12 = vpop.eup %2470 }
 0x44d   :  { %v522_v14 = vmul.f32 %v2471_v12, %v2467_v63 }
 0x44f   :  { %v524_v15 = vpack.c.bf16 %v522_v14, %v522_v14 }
 0x451   :  { %2234 = vmatmul.mubr.msk.bf16.vlgmr.msra.gmra.mxu1 %vm500_vm7, %v524_v15 }
 0x452   :  { %2238 = vmatpush3.bf16.xpose.msra.mxu1 %v2818_v16  ;;  %2239 = vmatprep.mubr.msk.bf16.mxu1 %vm2681_vm0, %v2680_v38 }
 0x453   :  { %2243 = vmatprep.subr.bf16.mxu1 %v2680_v38 }
 0x459   :  { %2240 = vmatmul.mubr.msk.bf16.vlgmr.msra.gmra.mxu1 %vm405_vm6, %v627_v18 }
 0x45a   :  { %2244 = vmatpush3.bf16.xpose.msra.mxu1 %v2841_v41  ;;  %2245 = vmatprep.mubr.msk.bf16.mxu1 %vm2681_vm0, %v2680_v38 }
 0x45b   :  { %2249 = vmatprep.subr.bf16.mxu1 %v2680_v38 }
 0x461   :  { %2246 = vmatmul.mubr.msk.bf16.vlgmr.msra.gmra.mxu1 %vm405_vm6, %v672_v19 }
 0x462   :  { %2250 = vmatpush3.bf16.msra.mxu1 %v531_v5  ;;  %2251 = vmatprep.mubr.msk.bf16.mxu1 %vm2681_vm0, %v2680_v38 }
 0x463   :  { %2255 = vmatprep.subr.bf16.mxu1 %v2680_v38 }
 0x501   :  { %v2891_v16 = vpop.f32.mrf.mxu1 }
 0x503   :  { %v2229_v20 = vpop.f32.mrf.mxu1 }
 0x505   :  { %v570_v21 = vpop.f32.mrf.mxu1 }
 0x507   :  { %v2230_v23 = vpop.f32.mrf.mxu1 }
 0x511   :  { %v615_v24 = vpop.f32.mrf.mxu1 }
 0x512   :  { %v621_v25 = vpack.c.bf16 %v615_v24, %v2891_v16 }
 0x513   :  { %v2235_v26 = vpop.f32.mrf.mxu1 }
 0x515   :  { %v618_v27 = vpop.f32.mrf.mxu1 }
 0x517   :  { %v2236_v28 = vpop.f32.mrf.mxu1 }
 0x519   :  { %v665_v29 = vpop.f32.mrf.mxu1 }
 0x51a   :  { %v716_v30 = vsel %vm2791_vm1, -inf, %v665_v29 }
 0x51b   :  { %v2241_v31 = vpop.f32.mrf.mxu1  ;;  %v718_v32 = vsel %vm500_vm7, %v716_v30, -inf }
 0x51c   :  { %719 = vmax.xlane.f32.xlu1 %v718_v32 }
 0x51d   :  { %v668_v33 = vpop.f32.mrf.mxu1 }
 0x51f   :  { %v2242_v34 = vpop.f32.mrf.mxu1 }
 0x521   :  { %v710_v35 = vpop.f32.mrf.mxu1 }
 0x522   :  { %v717_v37 = vsel %vm2791_vm1, -inf, %v710_v35 }
 0x523   :  { %v2247_v41 = vpop.f32.mrf.mxu1  ;;  %v721_v40 = vsel %vm500_vm7, %v717_v37, -inf }
 0x524   :  { %722 = vmax.xlane.f32.xlu0 %v721_v40 }
 0x525   :  { %v713_v43 = vpop.f32.mrf.mxu1 }
 0x527   :  { %v2248_v39 = vpop.f32.mrf.mxu1 }
 0x5a5   :  { %v720_v45 = vpop.xlane.xlu1 %719 }
 0x5a6   :  { %v724_v46 = vsub.f32 %v716_v30, %v720_v45 }
 0x5a8   :  { %v726_v47 = vmul.f32 1.442695, %v724_v46 }
 0x5aa   :  { %2472 = vpow2.f32 %v726_v47 }
 0x5ad   :  { %v723_v48 = vpop.xlane.xlu0 %722 }
 0x5ae   :  { %v725_v49 = vsub.f32 %v717_v37, %v723_v48 }
 0x5b0   :  { %v728_v50 = vmul.f32 1.442695, %v725_v49 }
 0x5b2   :  { %2474 = vpow2.f32 %v728_v50 }
 0x5b7   :  { %v2473_v51 = vpop.eup %2472 }
 0x5b8   :  { %v730_v52 = vsel %vm500_vm7, %v2473_v51, 0.0 }
 0x5b9   :  { %731 = vadd.xlane.f32.xlu0 %v730_v52 }
 0x5bf   :  { %v2475_v53 = vpop.eup %2474 }
 0x5c0   :  { %v733_v54 = vsel %vm500_vm7, %v2475_v53, 0.0 }
 0x5c1   :  { %734 = vadd.xlane.f32.xlu1 %v733_v54 }
 0x5cf   :  { %947 = vrot.lane.b32.xlu0 %v2814_v13, %s2682_s7 }
 0x5d2   :  { %997 = vrot.lane.b32.xlu1 %v2836_v36, %s2682_s7 }
 0x5d3   :  { %995 = vrot.lane.b32.xlu0 %v2845_v42, %s2673_s25 }
 0x5d6   :  { %945 = vrot.lane.b32.xlu1 %v2822_v22, %s2673_s25 }
 0x642   :  { %v732_v55 = vpop.xlane.xlu0 %731 }
 0x643   :  { %2476 = vrcp.f32 %v732_v55 }
 0x646   :  { %v948_v5 = vpop.permute.xlu0 %947 }
 0x647   :  { %v953_v19 = vsel %vm405_vm6, %v948_v5, 0 }
 0x64a   :  { %v735_v56 = vpop.xlane.xlu1 %734  ;;  %v996_v6 = vpop.permute.xlu0 %995 }
 0x64b   :  { %2478 = vrcp.f32 %v735_v56 }
 0x64e   :  { %v998_v3 = vpop.permute.xlu1 %997 }
 0x64f   :  { %v2921_v4 = vsel %vm405_vm6, %v998_v3, 0 }
 0x650   :  { %v2477_v57 = vpop.eup %2476 }
 0x651   :  { %v738_v58 = vmul.f32 %v2477_v57, %v2473_v51 }
 0x652   :  { %v946_v23 = vpop.permute.xlu1 %945 }
 0x653   :  { %v740_v59 = vpack.c.bf16 %v738_v58, %v738_v58 }
 0x655   :  { %2252 = vmatmul.mubr.msk.bf16.vlgmr.msra.gmra.mxu1 %vm500_vm7, %v740_v59 }
 0x656   :  { %2256 = vmatpush3.bf16.msra.mxu1 %v2873_v11  ;;  %2257 = vmatprep.mubr.msk.bf16.mxu1 %vm2681_vm0, %v2680_v38 }
 0x657   :  { %2269 = vmatprep.subr.bf16.mxu1 %v2680_v38 }
 0x658   :  { %v2479_v60 = vpop.eup %2478 }
 0x659   :  { %v739_v61 = vmul.f32 %v2479_v60, %v2475_v53 }
 0x65b   :  { %v741_v63 = vpack.c.bf16 %v739_v61, %v739_v61 }
 0x65d   :  { %2258 = vmatmul.mubr.msk.bf16.vlgmr.msra.gmra.mxu1 %vm500_vm7, %v741_v63 }
 0x65e   :  { %2270 = vmatpush3.bf16.msra.mxu1 %v2388_v62  ;;  %2273 = vmatprep.mubr.msk.bf16.mxu1 %vm2681_vm0, %v2680_v38 }
 0x65f   :  { %2271 = vmatprep.subr.bf16.mxu1 %v2680_v38 }
 0x662   :  { %2272 = vmatpush3.bf16.msra.mxu1 %v2389_v0 }
 0x663   :  { %2283 = vmatprep.subr.bf16.mxu1 %v2680_v38 }
 0x665   :  { %2274 = vmatmul.mubr.msk.bf16.vlgmr.msra.gmra.mxu1 %vm405_vm6, %v621_v25 }
 0x666   :  { %2284 = vmatpush3.bf16.xpose.msra.mxu1 %v2921_v4  ;;  %2285 = vmatprep.mubr.msk.bf16.mxu1 %vm2681_vm0, %v2680_v38 }
 0x667   :  { %2295 = vmatprep.subr.bf16.mxu1 %v2680_v38 }
 0x66d   :  { %2286 = vmatmul.mubr.msk.bf16.vlgmr.msra.gmra.mxu1 %vm405_vm6, %v996_v6  ;;  %v2392_v6 = vld [vmem:[#allocation7 + $0x28] sm:$0xff]  }
 0x66e   :  { %2297 = vmatprep.mubr.msk.bf16.mxu1 %vm2681_vm0, %v2680_v38 }
 0x715   :  { %v779_v9 = vpop.f32.mrf.mxu1 }
 0x717   :  { %v2253_v10 = vpop.f32.mrf.mxu1 }
 0x719   :  { %v782_v11 = vpop.f32.mrf.mxu1 }
 0x71b   :  { %v2254_v12 = vpop.f32.mrf.mxu1 }
 0x71d   :  { %v822_v14 = vpop.f32.mrf.mxu1 }
 0x71e   :  { %v828_v15 = vpack.c.bf16 %v822_v14, %v779_v9 }
 0x71f   :  { %v2259_v18 = vpop.f32.mrf.mxu1 }
 0x720   :  { %2266 = vmatmul.mubr.msk.bf16.vlgmr.msra.gmra.mxu0 %vm405_vm6, %v828_v15 }
 0x721   :  { %2278 = vmatpush3.bf16.xpose.msra.mxu0 %v953_v19  ;;  %v825_v16 = vpop.f32.mrf.mxu1  ;;  %2279 = vmatprep.mubr.msk.bf16.mxu0 %vm2681_vm0, %v2680_v38 }
 0x722   :  { %2289 = vmatprep.subr.bf16.mxu0 %v2680_v38 }
 0x723   :  { %v2260_v20 = vpop.f32.mrf.mxu1 }
 0x725   :  { %v2938_v21 = vpop.f32.mrf.mxu1 }
 0x727   :  { %v2275_v24 = vpop.f32.mrf.mxu1 }
 0x728   :  { %2280 = vmatmul.mubr.msk.bf16.vlgmr.msra.gmra.mxu0 %vm405_vm6, %v946_v23 }
 0x729   :  { %v2941_v25 = vpop.f32.mrf.mxu1  ;;  %2291 = vmatprep.mubr.msk.bf16.mxu0 %vm2681_vm0, %v2680_v38 }
 0x72b   :  { %v2276_v26 = vpop.f32.mrf.mxu1 }
 0x72d   :  { %v1039_v27 = vpop.f32.mrf.mxu1 }
 0x72e   :  { %v1046_v28 = vsel %vm2791_vm1, -inf, %v1039_v27 }
 0x72f   :  { %v2287_v29 = vpop.f32.mrf.mxu1  ;;  %v1050_v30 = vsel %vm500_vm7, %v1046_v28, -inf }
 0x730   :  { %1051 = vmax.xlane.f32.xlu0 %v1050_v30 }
 0x731   :  { %v1042_v31 = vpop.f32.mrf.mxu1 }
 0x733   :  { %v2288_v32 = vpop.f32.mrf.mxu1 }
 0x7b9   :  { %v1052_v33 = vpop.xlane.xlu0 %1051 }
 0x7ba   :  { %v1054_v34 = vsub.f32 %v1046_v28, %v1052_v33 }
 0x7bc   :  { %v1057_v35 = vmul.f32 1.442695, %v1054_v34 }
 0x7be   :  { %2480 = vpow2.f32 %v1057_v35 }
 0x7cb   :  { %v2481_v48 = vpop.eup %2480 }
 0x7cc   :  { %v1062_v51 = vsel %vm500_vm7, %v2481_v48, 0.0 }
 0x7e0   :  { %v2948_v37 = vpop.f32.mrf.mxu0 }
 0x7e2   :  { %v2267_v41 = vpop.f32.mrf.mxu0 }
 0x7e4   :  { %v2950_v40 = vpop.f32.mrf.mxu0 }
 0x7e5   :  { %v942_v34 = vadd.f32 %v2941_v25, %v2950_v40 }
 0x7e6   :  { %v2268_v43 = vpop.f32.mrf.mxu0 }
 0x7e8   :  { %v989_v39 = vpop.f32.mrf.mxu0 }
 0x7e9   :  { %v1045_v45 = vsel %vm2791_vm1, -inf, %v989_v39 }
 0x7ea   :  { %v2281_v46 = vpop.f32.mrf.mxu0  ;;  %v1047_v47 = vsel %vm500_vm7, %v1045_v45, -inf }
 0x7eb   :  { %1048 = vmax.xlane.f32.xlu1 %v1047_v47 }
 0x7ec   :  { %v992_v49 = vpop.f32.mrf.mxu0 }
 0x7ee   :  { %v2282_v50 = vpop.f32.mrf.mxu0 }
 0x7ef   :  { %1063 = vadd.xlane.f32.xlu1 %v1062_v51 }
 0x800   :  { %1119 = vrot.lane.b32.xlu1 %v2836_v36, %s2683_s20 }
 0x804   :  { %1230 = vrot.lane.b32.xlu1 %v2822_v22, %s2683_s20 }
 0x874   :  { %v1049_v52 = vpop.xlane.xlu1 %1048 }
 0x875   :  { %v1053_v53 = vsub.f32 %v1045_v45, %v1049_v52 }
 0x877   :  { %v1055_v54 = vmul.f32 1.442695, %v1053_v53 }
 0x878   :  { %v1064_v55 = vpop.xlane.xlu1 %1063 }
 0x879   :  { %2482 = vpow2.f32 %v1055_v54 }
 0x87a   :  { %2484 = vrcp.f32 %v1064_v55 }
 0x87c   :  { %v1120_v56 = vpop.permute.xlu1 %1119 }
 0x87d   :  { %v1125_v57 = vsel %vm351_vm8, %v1120_v56, 0  ;;  %v2394_v56 = vld [vmem:[#allocation7 + $0x38] sm:$0xff]  }
 0x87e   :  { %2296 = vmatpush3.bf16.msra.mxu1 %v1125_v57 }
 0x87f   :  { %2309 = vmatprep.subr.bf16.mxu1 %v2680_v38 }
 0x880   :  { %v1231_v22 = vpop.permute.xlu1 %1230 }
 0x886   :  { %v2483_v58 = vpop.eup %2482 }
 0x887   :  { %v2485_v59 = vpop.eup %2484  ;;  %v1059_v60 = vsel %vm500_vm7, %v2483_v58, 0.0 }
 0x888   :  { %1060 = vadd.xlane.f32.xlu0 %v1059_v60  ;;  %v1068_v36 = vmul.f32 %v2485_v59, %v2481_v48 }
 0x88a   :  { %v1070_v61 = vpack.c.bf16 %v1068_v36, %v1068_v36 }
 0x88c   :  { %2298 = vmatmul.mubr.msk.bf16.vlgmr.msra.gmra.mxu1 %vm500_vm7, %v1070_v61 }
 0x88d   :  { %2310 = vmatpush3.bf16.xpose.msra.mxu1 %v953_v19  ;;  %2311 = vmatprep.mubr.msk.bf16.mxu1 %vm2681_vm0, %v2680_v38  ;;  %v2393_v19 = vld [vmem:[#allocation7 + $0x20] sm:$0xff]  }
 0x88e   :  { %2321 = vmatprep.subr.bf16.mxu1 %v2680_v38 }
 0x894   :  { %2312 = vmatmul.mubr.msk.bf16.vlgmr.msra.gmra.mxu1 %vm405_vm6, %v1231_v22 }
 0x895   :  { %2323 = vmatprep.mubr.msk.bf16.mxu1 %vm2681_vm0, %v2680_v38 }
 0x89e   :  { %1071 = vrot.lane.b32.xlu0 %v2814_v13, %s2683_s20 }
 0x8a2   :  { %1275 = vrot.lane.b32.xlu0 %v2845_v42, %s2683_s20 }
 0x911   :  { %v1061_v62 = vpop.xlane.xlu0 %1060 }
 0x912   :  { %2486 = vrcp.f32 %v1061_v62 }
 0x915   :  { %v1072_v63 = vpop.permute.xlu0 %1071 }
 0x916   :  { %v1077_v0 = vsel %vm351_vm8, %v1072_v63, 0  ;;  %v2395_v63 = vld [vmem:[#allocation7 + $0x30] sm:$0xff]  }
 0x917   :  { %2290 = vmatpush3.bf16.msra.mxu0 %v1077_v0  ;;  %2322 = vmatpush3.bf16.msra.mxu1 %v1077_v0 }
 0x918   :  { %2301 = vmatprep.subr.bf16.mxu0 %v2680_v38  ;;  %2333 = vmatprep.subr.bf16.mxu1 %v2680_v38 }
 0x919   :  { %v1276_v27 = vpop.permute.xlu0 %1275 }
 0x91f   :  { %v2487_v3 = vpop.eup %2486 }
 0x920   :  { %v1067_v5 = vmul.f32 %v2487_v3, %v2483_v58 }
 0x922   :  { %v1069_v7 = vpack.c.bf16 %v1067_v5, %v1067_v5 }
 0x924   :  { %2292 = vmatmul.mubr.msk.bf16.vlgmr.msra.gmra.mxu0 %vm500_vm7, %v1069_v7  ;;  %v2396_v7 = vld [vmem:[#allocation8 + $0xe0] ss:$16 sps:$4 sm:$0xff]  }
 0x925   :  { %2302 = vmatpush3.bf16.msra.mxu0 %v2392_v6  ;;  %2305 = vmatprep.mubr.msk.bf16.mxu0 %vm2681_vm0, %v2680_v38 }
 0x926   :  { %2303 = vmatprep.subr.bf16.mxu0 %v2680_v38 }
 0x929   :  { %2304 = vmatpush3.bf16.msra.mxu0 %v2393_v19 }
 0x92a   :  { %2315 = vmatprep.subr.bf16.mxu0 %v2680_v38 }
 0x94c   :  { %v1161_v13 = vpop.f32.mrf.mxu1 }
 0x94e   :  { %v2299_v42 = vpop.f32.mrf.mxu1 }
 0x94f   :  { %v2399_v42 = vld [vmem:[#allocation8 + $0xe8] ss:$16 sps:$4 sm:$0xff]  }
 0x950   :  { %v1164_v8 = vpop.f32.mrf.mxu1 }
 0x951   :  { %v2401_v8 = vld [vmem:[#allocation8 + $0xec] ss:$16 sps:$4 sm:$0xff]  }
 0x952   :  { %v2300_v9 = vpop.f32.mrf.mxu1 }
 0x954   :  { %v1269_v10 = vpop.f32.mrf.mxu1 }
 0x955   :  { %v1320_v11 = vsel %vm2791_vm1, -inf, %v1269_v10 }
 0x956   :  { %v2313_v12 = vpop.f32.mrf.mxu1  ;;  %v1322_v14 = vsel %vm500_vm7, %v1320_v11, -inf }
 0x957   :  { %1323 = vmax.xlane.f32.xlu1 %v1322_v14 }
 0x958   :  { %v1272_v15 = vpop.f32.mrf.mxu1 }
 0x95a   :  { %v2314_v18 = vpop.f32.mrf.mxu1 }
 0x9e0   :  { %v1324_v28 = vpop.xlane.xlu1 %1323 }
 0x9e1   :  { %v1328_v29 = vsub.f32 %v1320_v11, %v1324_v28  ;;  %v2408_v28 = vld [vmem:[#allocation8 + $0xa0] ss:$16 sps:$4 sm:$0xff]  }
 0x9e3   :  { %v1330_v30 = vmul.f32 1.442695, %v1328_v29  ;;  %v2411_v29 = vld [vmem:[#allocation8 + $0xa8] ss:$16 sps:$4 sm:$0xff]  }
 0x9e4   :  { %v1113_v16 = vpop.f32.mrf.mxu0 }
 0x9e5   :  { %v1167_v20 = vpack.c.bf16 %v1161_v13, %v1113_v16  ;;  %2488 = vpow2.f32 %v1330_v30  ;;  %v2398_v13 = vld [vmem:[#allocation8 + $0xe4] ss:$16 sps:$4 sm:$0xff]  }
 0x9e6   :  { %v2293_v23 = vpop.f32.mrf.mxu0  ;;  %v2416_v30 = vld [vmem:[#allocation8 + $0x84] ss:$16 sps:$4 sm:$0xff]  }
 0x9e7   :  { %2306 = vmatmul.mubr.msk.bf16.vlgmr.msra.gmra.mxu0 %vm405_vm6, %v1167_v20  ;;  %v2404_v20 = vld [vmem:[#allocation8 + $0xc4] ss:$16 sps:$4 sm:$0xff]   ;;  %v2407_v23 = vld [vmem:[#allocation8 + $0xcc] ss:$16 sps:$4 sm:$0xff]  }
 0x9e8   :  { %2316 = vmatpush3.bf16.xpose.msra.mxu0 %v2921_v4  ;;  %v1116_v24 = vpop.f32.mrf.mxu0  ;;  %2317 = vmatprep.mubr.msk.bf16.mxu0 %vm2681_vm0, %v2680_v38  ;;  %v939_v4 = vadd.f32 %v2938_v21, %v2948_v37 }
 0x9e9   :  { %2327 = vmatprep.subr.bf16.mxu0 %v2680_v38  ;;  %v2402_v24 = vld [vmem:[#allocation8 + $0xc0] ss:$16 sps:$4 sm:$0xff]  }
 0x9ea   :  { %v2294_v26 = vpop.f32.mrf.mxu0 }
 0x9eb   :  { %v2405_v26 = vld [vmem:[#allocation8 + $0xc8] ss:$16 sps:$4 sm:$0xff]  }
 0x9ef   :  { %2318 = vmatmul.mubr.msk.bf16.vlgmr.msra.gmra.mxu0 %vm405_vm6, %v1276_v27  ;;  %v2413_v27 = vld [vmem:[#allocation8 + $0xac] ss:$16 sps:$4 sm:$0xff]  }
 0x9f0   :  { %2328 = vmatpush3.bf16.msra.mxu0 %v1125_v57  ;;  %2329 = vmatprep.mubr.msk.bf16.mxu0 %vm2681_vm0, %v2680_v38 }
 0x9f1   :  { %1713 = vmatprep.subr.bf16.mxu0 %v2398_v13  ;;  %v2453_v13 = vld [vmem:[#allocation10 + $0x18] sm:$0xff]  }
 0x9f2   :  { %v2489_v48 = vpop.eup %2488 }
 0x9f3   :  { %v1334_v37 = vsel %vm500_vm7, %v2489_v48, 0.0 }
 0xaa7   :  { %v1221_v31 = vpop.f32.mrf.mxu0 }
 0xaa8   :  { %v1228_v32 = vadd.f32 %v1221_v31, %v939_v4  ;;  %v2417_v4 = vld [vmem:[#allocation8 + $0x88] ss:$16 sps:$4 sm:$0xff]   ;;  %v2419_v31 = vld [vmem:[#allocation8 + $0x8c] ss:$16 sps:$4 sm:$0xff]  }
 0xaa9   :  { %v2307_v33 = vpop.f32.mrf.mxu0 }
 0xaaa   :  { %v2425_v33 = vld [vmem:[#allocation8 + $0x6c] ss:$16 sps:$4 sm:$0xff]  }
 0xaab   :  { %v1224_v35 = vpop.f32.mrf.mxu0 }
 0xaac   :  { %v1229_v41 = vadd.f32 %v1224_v35, %v942_v34  ;;  %v2420_v34 = vld [vmem:[#allocation8 + $0x60] ss:$16 sps:$4 sm:$0xff]   ;;  %v2423_v35 = vld [vmem:[#allocation8 + $0x68] ss:$16 sps:$4 sm:$0xff]  }
 0xaad   :  { %v2308_v43 = vpop.f32.mrf.mxu0 }
 0xaae   :  { %v2431_v43 = vld [vmem:[#allocation8 + $0x4c] ss:$16 sps:$4 sm:$0xff]  }
 0xaaf   :  { %v1314_v39 = vpop.f32.mrf.mxu0 }
 0xab0   :  { %v1321_v45 = vsel %vm2791_vm1, -inf, %v1314_v39  ;;  %v2426_v39 = vld [vmem:[#allocation8 + $0x40] ss:$16 sps:$4 sm:$0xff]  }
 0xab1   :  { %v2319_v46 = vpop.f32.mrf.mxu0  ;;  %v1325_v47 = vsel %vm500_vm7, %v1321_v45, -inf }
 0xab2   :  { %1326 = vmax.xlane.f32.xlu0 %v1325_v47  ;;  %v2434_v46 = vld [vmem:[#allocation8 + $0x24] ss:$16 sps:$4 sm:$0xff]   ;;  %v2437_v47 = vld [vmem:[#allocation8 + $0x2c] ss:$16 sps:$4 sm:$0xff]  }
 0xab3   :  { %v1317_v49 = vpop.f32.mrf.mxu0 }
 0xab4   :  { %v2435_v49 = vld [vmem:[#allocation8 + $0x28] ss:$16 sps:$4 sm:$0xff]  }
 0xab5   :  { %v2320_v21 = vpop.f32.mrf.mxu0 }
 0xab6   :  { %1335 = vadd.xlane.f32.xlu0 %v1334_v37  ;;  %v2440_v21 = vld [vmem:[#allocation8 + $0x4] ss:$16 sps:$4 sm:$0xff]   ;;  %v2443_v37 = vld [vmem:[#allocation8 + $0xc] ss:$16 sps:$4 sm:$0xff]  }
 0xb3b   :  { %v1327_v50 = vpop.xlane.xlu0 %1326 }
 0xb3c   :  { %v1329_v51 = vsub.f32 %v1321_v45, %v1327_v50  ;;  %v2429_v45 = vld [vmem:[#allocation8 + $0x48] ss:$16 sps:$4 sm:$0xff]   ;;  %v2438_v50 = vld [vmem:[#allocation8] ss:$16 sps:$4 sm:$0xff]  }
 0xb3e   :  { %v1332_v25 = vmul.f32 1.442695, %v1329_v51  ;;  %v2441_v51 = vld [vmem:[#allocation8 + $0x8] ss:$16 sps:$4 sm:$0xff]  }
 0xb3f   :  { %v1336_v40 = vpop.xlane.xlu0 %1335 }
 0xb40   :  { %2490 = vpow2.f32 %v1332_v25 }
 0xb41   :  { %2492 = vrcp.f32 %v1336_v40 }
 0xb4d   :  { %v2491_v52 = vpop.eup %2490 }
 0xb4e   :  { %v2493_v53 = vpop.eup %2492  ;;  %v1337_v44 = vsel %vm500_vm7, %v2491_v52, 0.0 }
 0xb4f   :  { %1338 = vadd.xlane.f32.xlu1 %v1337_v44  ;;  %v1342_v54 = vmul.f32 %v2493_v53, %v2489_v48  ;;  %v2432_v48 = vld [vmem:[#allocation8 + $0x20] ss:$16 sps:$4 sm:$0xff]  }
 0xb51   :  { %v1344_v55 = vpack.c.bf16 %v1342_v54, %v1342_v54 }
 0xb53   :  { %2324 = vmatmul.mubr.msk.bf16.vlgmr.msra.gmra.mxu1 %vm500_vm7, %v1344_v55 }
 0xb54   :  { %2337 = vmatprep.mubr.msk.bf16.mxu1 %vm2681_vm0, %v2680_v38  ;;  %2334 = vmatpush3.bf16.msra.mxu1 %v2394_v56 }
 0xb55   :  { %2335 = vmatprep.subr.bf16.mxu1 %v2680_v38 }
 0xb58   :  { %2336 = vmatpush3.bf16.msra.mxu1 %v2395_v63  ;;  %v2446_v63 = vld [vmem:[#allocation10 + $0x70] sm:$0xff]  }
 0xb59   :  { %1756 = vmatprep.subr.bf16.mxu1 %v2401_v8  ;;  %v2455_v8 = vld [vmem:[#allocation10 + $0x10] sm:$0xff]  }
 0xbd8   :  { %v1339_v57 = vpop.xlane.xlu1 %1338 }
 0xbd9   :  { %2494 = vrcp.f32 %v1339_v57 }
 0xbe6   :  { %v2495_v58 = vpop.eup %2494 }
 0xbe7   :  { %v1343_v59 = vmul.f32 %v2495_v58, %v2491_v52  ;;  %v2081_v58 = vld [vmem:[%s3031_s2] ss:$0 sm:$0xff]  ;;  %s2684_s2 = smov [#allocation13]  }
 0xbe8   :  { %s2013_s3 = sshll.u32 %s2684_s2, 4  ;;  %s2014_s3 = int_to_ptr.vmem [resolvable:$true] %s2013_s3 }
 0xbe9   :  { %v1345_v60 = vpack.c.bf16 %v1343_v59, %v1343_v59  ;;  %s2636_s27 = scalar_lea.vmem %s2014_s3, 128  ;;  %p2641_p3 = scmp.lt.s32.totalorder %s2014_s3, %s2014_s3 }
 0xbea   :  { %p2637_p2 = scmp.ne.s32.totalorder %s2014_s3, %s2636_s27  ;;  %p2642_p4 = scmp.lt.s32.totalorder %s2636_s27, %s2636_s27 }
 0xbeb   :  { %2330 = vmatmul.mubr.msk.bf16.vlgmr.msra.gmra.mxu0 %vm500_vm7, %v1345_v60 }
 0xbec   :  { %1745 = vmatprep.mubr.bf16.mxu0 %v2678_v17  ;;  %1714 = vmatpush1.bf16.msra.mxu0 %v2396_v7  ;;  %v2452_v7 = vld [vmem:[#allocation10 + $0x58] sm:$0xff]   ;;  %p2643_p5 = por %p2642_p4, %p2641_p3 }
 0xbed   :  { %1715 = vmatprep.subr.bf16.mxu0 %v2404_v20 }
 0xbee   :  { %p2644_p6 = pnand %p2643_p5, %p2637_p2 }
 0xbf0   :  { %1716 = vmatpush1.bf16.msra.mxu0 %v2402_v24 }
 0xc13   :  { %v1383_v36 = vpop.f32.mrf.mxu1 }
 0xc15   :  { %v2325_v61 = vpop.f32.mrf.mxu1 }
 0xc17   :  { %v1386_v22 = vpop.f32.mrf.mxu1 }
 0xc18   :  { %v2444_v22 = vld [vmem:[#allocation10 + $0x78] sm:$0xff]  }
 0xc19   :  { %v2326_v62 = vpop.f32.mrf.mxu1 }
 0xc1a   :  { %v2445_v62 = vld [vmem:[#allocation10 + $0x38] sm:$0xff]  }
 0xcab   :  { %v1426_v0 = vpop.f32.mrf.mxu0 }
 0xcac   :  { %v1432_v3 = vpack.c.bf16 %v1426_v0, %v1383_v36  ;;  %v2447_v0 = vld [vmem:[#allocation10 + $0x30] sm:$0xff]  }
 0xcad   :  { %v2331_v5 = vpop.f32.mrf.mxu0 }
 0xcae   :  { %2338 = vmatmul.mubr.msk.bf16.vlgmr.msra.gmra.mxu1 %vm405_vm6, %v1432_v3  ;;  %v2448_v3 = vld [vmem:[#allocation10 + $0x68] sm:$0xff]  }
 0xcaf   :  { %v1429_v38 = vpop.f32.mrf.mxu0  ;;  %1788 = vmatprep.mubr.bf16.mxu1 %v2678_v17  ;;  %1757 = vmatpush1.bf16.msra.mxu1 %v2399_v42  ;;  %v2449_v5 = vld [vmem:[#allocation10 + $0x28] sm:$0xff]   ;;  %v2454_v42 = vld [vmem:[#allocation10 + $0x50] sm:$0xff]  }
 0xcb0   :  { %1758 = vmatprep.subr.bf16.mxu1 %v2407_v23  ;;  %v2450_v38 = vld [vmem:[#allocation10 + $0x60] sm:$0xff]  }
 0xcb1   :  { %v2332_v6 = vpop.f32.mrf.mxu0 }
 0xcb2   :  { %v2451_v6 = vld [vmem:[#allocation10 + $0x20] sm:$0xff]  }
 0xcb3   :  { %1759 = vmatpush1.bf16.msra.mxu1 %v2405_v26 }
 0xcb4   :  { %1760 = vmatprep.subr.bf16.mxu1 %v2413_v27 }
 0xcb7   :  { %1761 = vmatpush1.bf16.msra.mxu1 %v2411_v29 }
 0xcb8   :  { %1762 = vmatprep.subr.bf16.mxu1 %v2419_v31 }
 0xcbb   :  { %1763 = vmatpush1.bf16.msra.mxu1 %v2417_v4 }
 0xcbc   :  { %1764 = vmatprep.subr.bf16.mxu1 %v2425_v33 }
 0xcbf   :  { %1765 = vmatpush1.bf16.msra.mxu1 %v2423_v35 }
 0xcc0   :  { %1766 = vmatprep.subr.bf16.mxu1 %v2431_v43 }
 0xcc3   :  { %1767 = vmatpush1.bf16.msra.mxu1 %v2429_v45 }
 0xcc4   :  { %1768 = vmatprep.subr.bf16.mxu1 %v2437_v47 }
 0xcc7   :  { %1769 = vmatpush1.bf16.msra.mxu1 %v2435_v49 }
 0xcc8   :  { %1770 = vmatprep.subr.bf16.mxu1 %v2443_v37 }
 0xccb   :  { %1771 = vmatpush1.bf16.msra.mxu1 %v2441_v51 }
 0xd6e   :  { %v1486_v9 = vpop.f32.mrf.mxu1 }
 0xd6f   :  { %v1493_v10 = vadd.f32 %v1486_v9, %v1228_v32  ;;  %v2422_v32 = vld [vmem:[#allocation8 + $0x64] ss:$16 sps:$4 sm:$0xff]   ;;  %v2456_v9 = vld [vmem:[#allocation10 + $0x48] sm:$0xff]  }
 0xd70   :  { %v2339_v11 = vpop.f32.mrf.mxu1 }
 0xd71   :  { %v3007_v12 = vadd.f32 %v2763_v1, %v1493_v10  ;;  %v2410_v1 = vld [vmem:[#allocation8 + $0xa4] ss:$16 sps:$4 sm:$0xff]   ;;  %v2457_v10 = vld [vmem:[#allocation10 + $0x8] sm:$0xff]  }
 0xd72   :  { %v1489_v14 = vpop.f32.mrf.mxu1  ;;  %1717 = vmatprep.subr.bf16.mxu0 %v2410_v1  ;;  %v2458_v11 = vld [vmem:[#allocation10 + $0x40] sm:$0xff]  }
 0xd73   :  { %v1494_v15 = vadd.f32 %v1489_v14, %v1229_v41  ;;  %v1498_v17 = vmul.f32 %v3007_v12, %v3007_v12  ;;  %1718 = vmatpush1.bf16.msra.mxu0 %v2408_v28  ;;  %v2428_v41 = vld [vmem:[#allocation8 + $0x44] ss:$16 sps:$4 sm:$0xff]  }
 0xd74   :  { %v2340_v18 = vpop.f32.mrf.mxu1  ;;  %1719 = vmatprep.subr.bf16.mxu0 %v2416_v30  ;;  %v2459_v14 = vld [vmem:[#allocation10] sm:$0xff]  }
 0xd75   :  { %v3012_v19 = vadd.f32 %v2765_v2, %v1494_v15  ;;  %1500 = vadd.xlane.f32.xlu0 %v1498_v17  ;;  %v2414_v2 = vld [vmem:[#allocation8 + $0x80] ss:$16 sps:$4 sm:$0xff]  }
 0xd77   :  { %v1499_v16 = vmul.f32 %v3012_v19, %v3012_v19  ;;  %1720 = vmatpush1.bf16.msra.mxu0 %v2414_v2 }
 0xd78   :  { %1721 = vmatprep.subr.bf16.mxu0 %v2422_v32 }
 0xd79   :  { %1502 = vadd.xlane.f32.xlu1 %v1499_v16 }
 0xd7b   :  { %1722 = vmatpush1.bf16.msra.mxu0 %v2420_v34 }
 0xd7c   :  { %1723 = vmatprep.subr.bf16.mxu0 %v2428_v41 }
 0xd7f   :  { %1724 = vmatpush1.bf16.msra.mxu0 %v2426_v39 }
 0xd80   :  { %1725 = vmatprep.subr.bf16.mxu0 %v2434_v46 }
 0xd83   :  { %1726 = vmatpush1.bf16.msra.mxu0 %v2432_v48 }
 0xd84   :  { %1727 = vmatprep.subr.bf16.mxu0 %v2440_v21 }
 0xd87   :  { %1728 = vmatpush1.bf16.msra.mxu0 %v2438_v50 }
 0xd88   :  { %2191 = vmatprep.subr.bf16.mxu0 %v2444_v22 }
 0xdfe   :  { %v1501_v25 = vpop.xlane.xlu0 %1500 }
 0xdff   :  { %v1504_v40 = vmul.f32 0.0078125, %v1501_v25 }
 0xe01   :  { %v1506_v52 = vadd.f32 1e-05, %v1504_v40 }
 0xe02   :  { %v1503_v53 = vpop.xlane.xlu1 %1502 }
 0xe03   :  { %2496 = vrsqrt.f32 %v1506_v52  ;;  %v1505_v44 = vmul.f32 0.0078125, %v1503_v53 }
 0xe05   :  { %v1507_v54 = vadd.f32 1e-05, %v1505_v44 }
 0xe07   :  { %2498 = vrsqrt.f32 %v1507_v54 }
 0xe10   :  { %v2497_v55 = vpop.eup %2496 }
 0xe11   :  { %v1510_v56 = vmul.f32 %v2497_v55, %v3007_v12 }
 0xe13   :  { %v1518_v60 = vmul.f32 %v2081_v58, %v1510_v56 }
 0xe14   :  { %v2499_v57 = vpop.eup %2498 }
 0xe15   :  { %v1511_v59 = vmul.f32 %v2499_v57, %v3012_v19 }
 0xe17   :  { %v1519_v36 = vmul.f32 %v2081_v58, %v1511_v59 }
 0xe19   :  { %v1520_v61 = vpack.c.bf16 %v1519_v36, %v1518_v60 }
 0xe1b   :  { %1746 = vmatmul.mubr.bf16.vlgmr.msra.gmra.mxu0 %v1520_v61  ;;  %1789 = vmatmul.mubr.bf16.vlgmr.msra.gmra.mxu1 %v1520_v61 }
 0xe1c   :  { %2192 = vmatpush3.bf16.msra.mxu0 %v2445_v62 }
 0xe1d   :  { %2193 = vmatprep.subr.bf16.mxu0 %v2446_v63 }
 0xe20   :  { %2194 = vmatpush3.bf16.msra.mxu0 %v2447_v0 }
 0xe21   :  { %2195 = vmatprep.subr.bf16.mxu0 %v2448_v3 }
 0xe24   :  { %2196 = vmatpush3.bf16.msra.mxu0 %v2449_v5 }
 0xe25   :  { %2197 = vmatprep.subr.bf16.mxu0 %v2450_v38 }
 0xe28   :  { %2198 = vmatpush3.bf16.msra.mxu0 %v2451_v6 }
 0xe29   :  { %2199 = vmatprep.subr.bf16.mxu0 %v2452_v7 }
 0xe2c   :  { %2200 = vmatpush3.bf16.msra.mxu0 %v2453_v13 }
 0xe2d   :  { %2201 = vmatprep.subr.bf16.mxu0 %v2454_v42 }
 0xe30   :  { %2202 = vmatpush3.bf16.msra.mxu0 %v2455_v8 }
 0xe31   :  { %2203 = vmatprep.subr.bf16.mxu0 %v2456_v9 }
 0xe34   :  { %2204 = vmatpush3.bf16.msra.mxu0 %v2457_v10 }
 0xe35   :  { %2205 = vmatprep.subr.bf16.mxu0 %v2458_v11 }
 0xe38   :  { %2206 = vmatpush3.bf16.msra.mxu0 %v2459_v14 }
 0xedb   :  { %v1747_v15 = vpop.f32.mrf.mxu0  ;;  %v1790_v32 = vpop.f32.mrf.mxu1 }
 0xedc   :  { %v2114_v17 = vmul.f32 -1.442695, %v1747_v15 }
 0xedd   :  { %v1749_v18 = vpop.f32.mrf.mxu0  ;;  %v1792_v33 = vpop.f32.mrf.mxu1 }
 0xede   :  { %2500 = vpow2.f32 %v2114_v17  ;;  %v2115_v16 = vmul.f32 -1.442695, %v1749_v18 }
 0xedf   :  { %v1751_v20 = vpop.f32.mrf.mxu0  ;;  %v1794_v43 = vpop.f32.mrf.mxu1 }
 0xee0   :  { %2502 = vpow2.f32 %v2115_v16  ;;  %v2116_v23 = vmul.f32 -1.442695, %v1751_v20 }
 0xee1   :  { %v1753_v24 = vpop.f32.mrf.mxu0  ;;  %v1796_v21 = vpop.f32.mrf.mxu1 }
 0xee2   :  { %2504 = vpow2.f32 %v2116_v23  ;;  %v2117_v26 = vmul.f32 -1.442695, %v1753_v24 }
 0xee4   :  { %2506 = vpow2.f32 %v2117_v26 }
 0xeeb   :  { %v2501_v1 = vpop.eup %2500 }
 0xeec   :  { %v1811_v28 = vadd.f32 1.0, %v2501_v1 }
 0xeed   :  { %v2503_v27 = vpop.eup %2502 }
 0xeee   :  { %v1812_v29 = vadd.f32 1.0, %v2503_v27 }
 0xeef   :  { %v2505_v2 = vpop.eup %2504 }
 0xef0   :  { %2508 = vrcp.f32 %v1812_v29  ;;  %v1813_v30 = vadd.f32 1.0, %v2505_v2 }
 0xef1   :  { %v2507_v4 = vpop.eup %2506  ;;  %2510 = vrcp.f32 %v1811_v28 }
 0xef2   :  { %2512 = vrcp.f32 %v1813_v30  ;;  %v1814_v31 = vadd.f32 1.0, %v2507_v4 }
 0xef4   :  { %2514 = vrcp.f32 %v1814_v31 }
 0xefd   :  { %v2509_v34 = vpop.eup %2508 }
 0xefe   :  { %v2511_v35 = vpop.eup %2510  ;;  %v1824_v39 = vmul.f32 %v2509_v34, %v1749_v18 }
 0xeff   :  { %v2513_v41 = vpop.eup %2512  ;;  %v1823_v47 = vmul.f32 %v2511_v35, %v1747_v15 }
 0xf00   :  { %v1825_v45 = vmul.f32 %v2513_v41, %v1751_v20  ;;  %v1828_v37 = vmul.f32 %v1824_v39, %v1792_v33 }
 0xf01   :  { %v2515_v46 = vpop.eup %2514  ;;  %v1827_v51 = vmul.f32 %v1823_v47, %v1790_v32 }
 0xf02   :  { %v1826_v48 = vmul.f32 %v2515_v46, %v1753_v24  ;;  %v1829_v49 = vmul.f32 %v1825_v45, %v1794_v43 }
 0xf04   :  { %v1830_v50 = vmul.f32 %v1826_v48, %v1796_v21  ;;  %v1831_v40 = vpack.c.bf16 %v1829_v49, %v1827_v51 }
 0xf06   :  { %v1832_v25 = vpack.c.bf16 %v1830_v50, %v1828_v37 }
 0xf08   :  { %1993 = vmatprep.mubr.bf16.mxu0 %v1832_v25 }
 0xf09   :  { %1994 = vmatmul.mubr.bf16.vlgmr.msra.gmra.mxu0 %v1831_v40 }
 0xfc9   :  { %v2207_v52 = vpop.f32.mrf.mxu0 }
 0xfcb   :  { %v2208_v53 = vpop.f32.mrf.mxu0 }
 0xfcc   :  { %v2209_v54 = vadd.f32 %v2208_v53, %v2207_v52 }
 0xfcd   :  { %v2210_v44 = vpop.f32.mrf.mxu0 }
 0xfce   :  { %v2002_v57 = vadd.f32 %v2209_v54, %v3007_v12 }
 0xfcf   :  { %v2211_v55 = vpop.f32.mrf.mxu0 }
 0xfd0   :  { %v2212_v56 = vadd.f32 %v2211_v55, %v2210_v44 }
 0xfd2   :  { %v2003_v58 = vadd.f32 %v2212_v56, %v3012_v19 }
 0xfd4   :  { %v2145_v59 = vpack.c.bf16 %v2003_v58, %v2002_v57 }
 0xfd6   :  { %2146 = vst [vmem:[#allocation13] sm:$0xff] %v2145_v59  }
 0xfd7   :  { %2647 = shalt.err (!%p2644_p6)
}
 0xfd8   :  { %2019 = dma.vmem_to_hbm [thread:$0]  %s2014_s3, 128, %s3038_s9, [#allocation4], %s2673_s25, %s2673_s25, %s2674_s26  }
 0xfd9   :  { %2664 = dma.done.wait [#allocation4], 128  }
 0xfda   :  { %2665 = vsyncadd [#allocation4], 4294967168 }
 0xfdb   :  { %2023 = vsyncpa [#allocation3], 1 }
 0xfdc   :  { %2024 = vsyncpa [#allocation6], 1 }
 0xfdd   :  { %2025 = vsyncpa [#allocation9], 1 }
 0xfde   :  { %2026 = vsyncpa [#allocation12], 1 }
 0xfdf   :  { %2027 = vsyncpa [#allocation4], 1 }

// kernel: tpu_custom_call.1
= control target key start
LH: loop header
LB: loop body
LE: loop exit
PB: predicated region body
PF: predicated region fallthrough
CT: control target
= control target key end

     0   :  { %14 = vsyncpa [#allocation3], 0  ;;  %s3029_s0 = inlined_call_operand.hbm [shape: bf16[2,8,128], index: 0, kind: input, shape index: {}]   ;;  %s3030_s1 = inlined_call_operand.vmem [shape: f32[1,128], index: 1, kind: input, shape index: {}]   ;;  %s3031_s2 = inlined_call_operand.vmem [shape: f32[1,128], index: 2, kind: input, shape index: {}]   ;;  %s3032_s3 = inlined_call_operand.hbm [shape: bf16[128,256], index: 3, kind: input, shape index: {}]   ;;  %s3033_s4 = inlined_call_operand.hbm [shape: bf16[128,128], index: 4, kind: input, shape index: {}]   ;;  %s3034_s5 = inlined_call_operand.hbm [shape: bf16[128,512], index: 5, kind: input, shape index: {}]   ;;  %s3035_s6 = inlined_call_operand.hbm [shape: bf16[256,128], index: 6, kind: input, shape index: {}]   ;;  %s3036_s7 = inlined_call_operand.vmem [shape: bf16[8,256], index: 7, kind: input, shape index: {}]   ;;  %s3037_s8 = inlined_call_operand.hbm [shape: bf16[8,256], index: 8, kind: input, shape index: {}]   ;;  %s3038_s9 = inlined_call_operand.hbm [shape: bf16[2,8,128], index: 9, kind: output, shape index: {}]  }
   0x1   :  { %15 = vsyncpa [#allocation6], 0 }
   0x2   :  { %16 = vsyncpa [#allocation9], 0 }
   0x3   :  { %17 = vsyncpa [#allocation12], 0 }
   0x4   :  { %18 = vsyncpa [#allocation4], 0  ;;  %s2666_s30 = smov [#allocation5]  }
   0x5   :  { %s40_s10 = sshll.u32 %s2666_s30, 4  ;;  %s41_s10 = int_to_ptr.vmem [resolvable:$true] %s40_s10 }
   0x6   :  { %s2524_s11 = scalar_lea.vmem %s41_s10, 2048  ;;  %p2529_p1 = scmp.lt.s32.totalorder %s41_s10, %s41_s10 }
   0x7   :  { %p2525_p0 = scmp.ne.s32.totalorder %s41_s10, %s2524_s11  ;;  %p2530_p2 = scmp.lt.s32.totalorder %s2524_s11, %s2524_s11 }
   0x9   :  { %p2531_p3 = por %p2530_p2, %p2529_p1 }
   0xb   :  { %p2532_p4 = pnand %p2531_p3, %p2525_p0 }
   0xd   :  { %2535 = shalt.err (!%p2532_p4)
}
   0xe   :  { %s2667_s12 = smov 128   ;;  %s2668_s13 = smov 8  }
   0xf   :  { %46 = dma.hbm_to_vmem [thread:$0]  %s3032_s3, 2048, %s41_s10, [#allocation6], %s2667_s12, %s2667_s12, %s2668_s13  }
  0x10   :  { %s2669_s16 = smov [#allocation8]  }
  0x11   :  { %s64_s17 = sshll.u32 %s2669_s16, 4  ;;  %s65_s17 = int_to_ptr.vmem [resolvable:$true] %s64_s17 }
  0x12   :  { %s2544_s18 = scalar_lea.vmem %s65_s17, 4096  ;;  %p2549_p6 = scmp.lt.s32.totalorder %s65_s17, %s65_s17 }
  0x13   :  { %p2545_p5 = scmp.ne.s32.totalorder %s65_s17, %s2544_s18  ;;  %p2550_p7 = scmp.lt.s32.totalorder %s2544_s18, %s2544_s18 }
  0x15   :  { %p2551_p8 = por %p2550_p7, %p2549_p6 }
  0x17   :  { %p2552_p9 = pnand %p2551_p8, %p2545_p5 }
  0x19   :  { %2555 = shalt.err (!%p2552_p9)
}
  0x1a   :  { %s2670_s19 = smov 256   ;;  %s2671_s20 = smov 16  }
  0x1b   :  { %70 = dma.hbm_to_vmem [thread:$0]  %s3034_s5, 4096, %s65_s17, [#allocation9], %s2670_s19, %s2670_s19, %s2671_s20  }
  0x1c   :  { %s2672_s23 = smov [#allocation2]  }
  0x1d   :  { %s24_s24 = sshll.u32 %s2672_s23, 4  ;;  %s25_s24 = int_to_ptr.vmem [resolvable:$true] %s24_s24 }
  0x1e   :  { %s2564_s3 = scalar_lea.vmem %s25_s24, 128  ;;  %p2569_p11 = scmp.lt.s32.totalorder %s25_s24, %s25_s24 }
  0x1f   :  { %p2565_p10 = scmp.ne.s32.totalorder %s25_s24, %s2564_s3  ;;  %p2570_p12 = scmp.lt.s32.totalorder %s2564_s3, %s2564_s3 }
  0x21   :  { %p2571_p13 = por %p2570_p12, %p2569_p11 }
  0x23   :  { %p2572_p0 = pnand %p2571_p13, %p2565_p10 }
  0x25   :  { %2575 = shalt.err (!%p2572_p0)
}
  0x26   :  { %s2673_s25 = smov 64   ;;  %s2674_s26 = smov 4  }
  0x27   :  { %30 = dma.hbm_to_vmem [thread:$0]  %s3029_s0, 128, %s25_s24, [#allocation3], %s2673_s25, %s2673_s25, %s2674_s26  }
  0x28   :  { %s2675_s5 = smov [#allocation7]   ;;  %s2676_s30 = smov [#allocation10]  }
  0x29   :  { %s52_s29 = sshll.u32 %s2675_s5, 4  ;;  %s76_s10 = sshll.u32 %s2676_s30, 4  ;;  %s53_s29 = int_to_ptr.vmem [resolvable:$true] %s52_s29  ;;  %s77_s10 = int_to_ptr.vmem [resolvable:$true] %s76_s10 }
  0x2a   :  { %s2584_s11 = scalar_lea.vmem %s53_s29, 1024  ;;  %p2589_p2 = scmp.lt.s32.totalorder %s53_s29, %s53_s29 }
  0x2b   :  { %p2585_p1 = scmp.ne.s32.totalorder %s53_s29, %s2584_s11  ;;  %p2590_p3 = scmp.lt.s32.totalorder %s2584_s11, %s2584_s11 }
  0x2d   :  { %p2591_p4 = por %p2590_p3, %p2589_p2 }
  0x2f   :  { %p2592_p5 = pnand %p2591_p4, %p2585_p1 }
  0x31   :  { %2595 = shalt.err (!%p2592_p5)
}
  0x32   :  { %58 = dma.hbm_to_vmem [thread:$0]  %s3033_s4, 1024, %s53_s29, [#allocation6], %s2673_s25, %s2673_s25, %s2674_s26  }
  0x33   :  { %s2604_s0 = scalar_lea.vmem %s77_s10, 2048  ;;  %p2609_p7 = scmp.lt.s32.totalorder %s77_s10, %s77_s10 }
  0x34   :  { %p2605_p6 = scmp.ne.s32.totalorder %s77_s10, %s2604_s0  ;;  %p2610_p8 = scmp.lt.s32.totalorder %s2604_s0, %s2604_s0 }
  0x36   :  { %p2611_p9 = por %p2610_p8, %p2609_p7 }
  0x38   :  { %p2612_p10 = pnand %p2611_p9, %p2605_p6 }
  0x3a   :  { %2615 = shalt.err (!%p2612_p10)
}
  0x3b   :  { %82 = dma.hbm_to_vmem [thread:$0]  %s3035_s6, 2048, %s77_s10, [#allocation9], %s2673_s25, %s2673_s25, %s2674_s26  }
  0x3c   :  { %s2677_s16 = smov [#allocation11]  }
  0x3d   :  { %s91_s17 = sshll.u32 %s2677_s16, 4  ;;  %s92_s17 = int_to_ptr.vmem [resolvable:$true] %s91_s17 }
  0x3e   :  { %s2624_s18 = scalar_lea.vmem %s92_s17, 128  ;;  %p2629_p12 = scmp.lt.s32.totalorder %s92_s17, %s92_s17 }
  0x3f   :  { %p2625_p11 = scmp.ne.s32.totalorder %s92_s17, %s2624_s18  ;;  %p2630_p13 = scmp.lt.s32.totalorder %s2624_s18, %s2624_s18 }
  0x41   :  { %p2631_p0 = por %p2630_p13, %p2629_p12 }
  0x43   :  { %p2632_p1 = pnand %p2631_p0, %p2625_p11 }
  0x45   :  { %2635 = shalt.err (!%p2632_p1)
}
  0x46   :  { %94 = dma.hbm_to_vmem [thread:$0]  %s3037_s8, 128, %s92_s17, [#allocation12]  }
  0x47   :  { %2656 = dma.done.wait [#allocation3], 128  }
  0x48   :  { %2657 = vsyncadd [#allocation3], 4294967168 }
  0x49   :  { %2658 = dma.done.wait [#allocation6], 3072  }
  0x4a   :  { %2659 = vsyncadd [#allocation6], 4294964224 }
  0x4b   :  { %2660 = dma.done.wait [#allocation9], 6144  }
  0x4c   :  { %2661 = vsyncadd [#allocation9], 4294961152 }
  0x4d   :  { %2662 = dma.done.wait [#allocation12], 128  }
  0x4e   :  { %2663 = vsyncadd [#allocation12], 4294967168  ;;  %v2139_v0 = vld [vmem:[#allocation2] sm:$0xff]   ;;  %v2363_v7 = vld [vmem:[#allocation5 + $0x64] ss:$8 sps:$4 sm:$0xff]   ;;  %v2678_v17 = vmov 0   ;;  %v290_v41 = vlaneseq }
  0x4f   :  { %v2763_v1 = vunpack.c.l.bf16 %v2139_v0  ;;  %v2765_v2 = vunpack.c.h.bf16 %v2139_v0  ;;  %v2360_v3 = vld [vmem:[#allocation5 + $0x74] ss:$8 sps:$4 sm:$0xff]   ;;  %v2362_v4 = vld [vmem:[#allocation5 + $0x70] ss:$8 sps:$4 sm:$0xff]   ;;  %v2365_v8 = vld [vmem:[#allocation5 + $0x60] ss:$8 sps:$4 sm:$0xff]   ;;  %271 = vmatprep.mubr.bf16.mxu0 %v2678_v17 }
  0x50   :  { %239 = vmatprep.subr.bf16.mxu0 %v2360_v3  ;;  %v2366_v9 = vld [vmem:[#allocation5 + $0x54] ss:$8 sps:$4 sm:$0xff]   ;;  %v2368_v10 = vld [vmem:[#allocation5 + $0x50] ss:$8 sps:$4 sm:$0xff]   ;;  %v2369_v11 = vld [vmem:[#allocation5 + $0x44] ss:$8 sps:$4 sm:$0xff]  }
  0x51   :  { %v119_v5 = vmul.f32 %v2763_v1, %v2763_v1  ;;  %240 = vmatpush1.bf16.msra.mxu0 %v2362_v4  ;;  %v120_v6 = vmul.f32 %v2765_v2, %v2765_v2  ;;  %v2371_v12 = vld [vmem:[#allocation5 + $0x40] ss:$8 sps:$4 sm:$0xff]   ;;  %v2372_v13 = vld [vmem:[#allocation5 + $0x34] ss:$8 sps:$4 sm:$0xff]   ;;  %v2374_v14 = vld [vmem:[#allocation5 + $0x30] ss:$8 sps:$4 sm:$0xff]  }
  0x52   :  { %241 = vmatprep.subr.bf16.mxu0 %v2363_v7  ;;  %v2375_v15 = vld [vmem:[#allocation5 + $0x24] ss:$8 sps:$4 sm:$0xff]   ;;  %v2377_v16 = vld [vmem:[#allocation5 + $0x20] ss:$8 sps:$4 sm:$0xff]   ;;  %v2378_v18 = vld [vmem:[#allocation5 + $0x14] ss:$8 sps:$4 sm:$0xff]  }
  0x53   :  { %121 = vadd.xlane.f32.xlu0 %v119_v5  ;;  %v2380_v19 = vld [vmem:[#allocation5 + $0x10] ss:$8 sps:$4 sm:$0xff]   ;;  %v2381_v20 = vld [vmem:[#allocation5 + $0x4] ss:$8 sps:$4 sm:$0xff]   ;;  %v2383_v21 = vld [vmem:[#allocation5] ss:$8 sps:$4 sm:$0xff]  }
  0x54   :  { %v2028_v31 = vld [vmem:[%s3030_s1] ss:$0 sm:$0xff]  ;;  %s2679_s21 = smov 112   ;;  %v2680_v38 = vmov 0.0   ;;  %vm2681_vm0 = vmmov 0   ;;  %v291_v42 = vand.u32 127, %v290_v41 }
  0x55   :  { %242 = vmatpush1.bf16.msra.mxu0 %v2365_v8  ;;  %2213 = vmatprep.subr.bf16.mxu1 %v2680_v38  ;;  %v393_v43 = vshrl.u32 %v290_v41, 7  ;;  %v362_v47 = vld [vmem:[#allocation11] sm:$0xff]  ;;  %v345_v48 = vld [vmem:[%s3036_s7] sm:$0xff]  ;;  %vm405_vm6 = vcmask 261120   ;;  %vm500_vm7 = vcmask 64512   ;;  %s2682_s7 = smov 96  }
  0x56   :  { %243 = vmatprep.subr.bf16.mxu0 %v2366_v9  ;;  %2215 = vmatprep.mubr.msk.bf16.mxu1 %vm2681_vm0, %v2680_v38  ;;  %v310_v45 = vadd.s32 128, %v291_v42  ;;  %v2046_v49 = vcombine.high %v345_v48, %v345_v48  ;;  %v2048_v51 = vcombine.high %v362_v47, %v362_v47  ;;  %v315_v53 = vand.u32 31, %v291_v42 }
  0x57   :  { %123 = vadd.xlane.f32.xlu0 %v120_v6  ;;  %vm2791_vm1 = vcmp.gt.s32.totalorder %v291_v42, %v393_v43  ;;  %vm292_vm2 = vcmp.lt.s32.totalorder %v291_v42, 112  ;;  %vm305_vm3 = vcmp.lt.s32.totalorder %v291_v42, 16  ;;  %v2047_v56 = vcombine.low %v362_v47, %v362_v47 }
  0x58   :  { %v322_v50 = vand.u32 31, %v310_v45  ;;  %v359_v54 = vunpack.c.l.bf16 %v2046_v49  ;;  %v375_v57 = vunpack.c.l.bf16 %v2048_v51  ;;  %v2045_v58 = vcombine.low %v345_v48, %v345_v48 }
  0x59   :  { %244 = vmatpush1.bf16.msra.mxu0 %v2368_v10  ;;  %vm2803_vm5 = vcmp.lt.s32.totalorder %v315_v53, 16  ;;  %v374_v6 = vunpack.c.l.bf16 %v2047_v56  ;;  %vm351_vm8 = vcmask 1043456  }
  0x5a   :  { %245 = vmatprep.subr.bf16.mxu0 %v2369_v11  ;;  %vm2798_vm4 = vcmp.lt.s32.totalorder %v322_v50, 16  ;;  %v358_v10 = vunpack.c.l.bf16 %v2045_v58 }
  0x5d   :  { %246 = vmatpush1.bf16.msra.mxu0 %v2371_v12 }
  0x5e   :  { %247 = vmatprep.subr.bf16.mxu0 %v2372_v13 }
  0x61   :  { %248 = vmatpush1.bf16.msra.mxu0 %v2374_v14 }
  0x62   :  { %249 = vmatprep.subr.bf16.mxu0 %v2375_v15 }
  0x65   :  { %250 = vmatpush1.bf16.msra.mxu0 %v2377_v16 }
  0x66   :  { %251 = vmatprep.subr.bf16.mxu0 %v2378_v18 }
  0x69   :  { %252 = vmatpush1.bf16.msra.mxu0 %v2380_v19 }
  0x6a   :  { %253 = vmatprep.subr.bf16.mxu0 %v2381_v20  ;;  %v361_v20 = vunpack.c.h.bf16 %v2046_v49 }
  0x6d   :  { %254 = vmatpush1.bf16.msra.mxu0 %v2383_v21  ;;  %v377_v21 = vunpack.c.h.bf16 %v2048_v51 }
  0x6e   :  { %2261 = vmatprep.subr.bf16.mxu0 %v2680_v38 }
  0xdc   :  { %v122_v22 = vpop.xlane.xlu0 %121 }
  0xdd   :  { %v126_v23 = vmul.f32 0.0078125, %v122_v22 }
  0xdf   :  { %v128_v24 = vadd.f32 1e-05, %v126_v23 }
  0xe0   :  { %v124_v25 = vpop.xlane.xlu0 %123 }
  0xe1   :  { %2460 = vrsqrt.f32 %v128_v24  ;;  %v127_v26 = vmul.f32 0.0078125, %v124_v25 }
  0xe3   :  { %v129_v27 = vadd.f32 1e-05, %v127_v26 }
  0xe5   :  { %2462 = vrsqrt.f32 %v129_v27 }
  0xee   :  { %v2461_v28 = vpop.eup %2460 }
  0xef   :  { %v132_v29 = vmul.f32 %v2461_v28, %v2763_v1 }
  0xf1   :  { %v140_v33 = vmul.f32 %v2028_v31, %v132_v29 }
  0xf2   :  { %v2463_v30 = vpop.eup %2462 }
  0xf3   :  { %v133_v32 = vmul.f32 %v2463_v30, %v2765_v2  ;;  %v376_v30 = vunpack.c.h.bf16 %v2047_v56 }
  0xf5   :  { %v141_v34 = vmul.f32 %v2028_v31, %v133_v32 }
  0xf7   :  { %v142_v35 = vpack.c.bf16 %v141_v34, %v140_v33  ;;  %v360_v33 = vunpack.c.h.bf16 %v2045_v58 }
  0xf9   :  { %272 = vmatmul.mubr.bf16.vlgmr.msra.gmra.mxu0 %v142_v35 }
  0xfa   :  { %2265 = vmatprep.mubr.msk.bf16.mxu0 %vm2681_vm0, %v2680_v38 }
 0x1b9   :  { %v273_v36 = vpop.f32.mrf.mxu0 }
 0x1ba   :  { %297 = vrot.lane.b32.xlu0 %v273_v36, %s2671_s20  ;;  %282 = vrot.lane.b32.xlu1 %v273_v36, %s2679_s21  ;;  %v378_v15 = vmul.f32 %v358_v10, %v273_v36 }
 0x1bb   :  { %v275_v37 = vpop.f32.mrf.mxu0 }
 0x1bc   :  { %v379_v4 = vmul.f32 %v359_v54, %v275_v37 }
 0x1bd   :  { %v2785_v39 = vpop.f32.mrf.mxu0 }
 0x1be   :  { %286 = vrot.lane.b32.xlu1 %v275_v37, %s2679_s21 }
 0x1bf   :  { %v279_v40 = vpop.f32.mrf.mxu0 }
 0x1c0   :  { %v381_v28 = vmul.f32 %v361_v20, %v279_v40 }
 0x1c2   :  { %301 = vrot.lane.b32.xlu1 %v275_v37, %s2671_s20  ;;  %v380_v37 = vmul.f32 %v360_v33, %v2785_v39 }
 0x1c6   :  { %284 = vrot.lane.b32.xlu1 %v2785_v39, %s2679_s21 }
 0x1ca   :  { %299 = vrot.lane.b32.xlu1 %v2785_v39, %s2671_s20 }
 0x1ce   :  { %288 = vrot.lane.b32.xlu1 %v279_v40, %s2679_s21 }
 0x1d2   :  { %303 = vrot.lane.b32.xlu1 %v279_v40, %s2671_s20  ;;  %s2683_s20 = smov 32  }
 0x22c   :  { %v283_v46 = vpop.permute.xlu1 %282  ;;  %v298_v59 = vpop.permute.xlu0 %297 }
 0x230   :  { %v287_v52 = vpop.permute.xlu1 %286 }
 0x231   :  { %v295_v61 = vsel %vm292_vm2, %v287_v52, %v283_v46  ;;  %v293_v5 = vsel %vm292_vm2, %v283_v46, %v287_v52 }
 0x234   :  { %v302_v60 = vpop.permute.xlu1 %301 }
 0x235   :  { %v306_v63 = vsel %vm305_vm3, %v298_v59, %v302_v60  ;;  %v308_v0 = vsel %vm305_vm3, %v302_v60, %v298_v59 }
 0x236   :  { %v342_v3 = vsel %vm2798_vm4, %v295_v61, %v306_v63  ;;  %v341_v8 = vsel %vm2803_vm5, %v293_v5, %v308_v0 }
 0x237   :  { %v383_v7 = vmul.f32 %v375_v57, %v342_v3  ;;  %v382_v12 = vmul.f32 %v374_v6, %v341_v8 }
 0x238   :  { %v285_v9 = vpop.permute.xlu1 %284 }
 0x239   :  { %v387_v11 = vadd.f32 %v383_v7, %v379_v4  ;;  %v386_v18 = vadd.f32 %v382_v12, %v378_v15 }
 0x23b   :  { %v2814_v13 = vpack.c.bf16 %v387_v11, %v387_v11  ;;  %v2822_v22 = vpack.c.bf16 %v386_v18, %v386_v18 }
 0x23c   :  { %v300_v14 = vpop.permute.xlu1 %299 }
 0x23d   :  { %v2818_v16 = vsel %vm405_vm6, %v2814_v13, 0 }
 0x23e   :  { %2214 = vmatpush3.bf16.xpose.msra.mxu1 %v2818_v16 }
 0x23f   :  { %2219 = vmatprep.subr.bf16.mxu1 %v2680_v38 }
 0x240   :  { %v289_v19 = vpop.permute.xlu1 %288 }
 0x241   :  { %v296_v24 = vsel %vm292_vm2, %v289_v19, %v285_v9  ;;  %v294_v29 = vsel %vm292_vm2, %v285_v9, %v289_v19 }
 0x244   :  { %v304_v23 = vpop.permute.xlu1 %303 }
 0x245   :  { %v307_v25 = vsel %vm305_vm3, %v300_v14, %v304_v23  ;;  %v309_v26 = vsel %vm305_vm3, %v304_v23, %v300_v14  ;;  %2216 = vmatmul.mubr.msk.bf16.vlgmr.msra.gmra.mxu1 %vm405_vm6, %v2822_v22 }
 0x246   :  { %v344_v27 = vsel %vm2798_vm4, %v296_v24, %v307_v25  ;;  %2221 = vmatprep.mubr.msk.bf16.mxu1 %vm2681_vm0, %v2680_v38  ;;  %v343_v32 = vsel %vm2803_vm5, %v294_v29, %v309_v26 }
 0x247   :  { %v385_v31 = vmul.f32 %v377_v21, %v344_v27  ;;  %v384_v35 = vmul.f32 %v376_v30, %v343_v32 }
 0x249   :  { %v389_v34 = vadd.f32 %v385_v31, %v381_v28  ;;  %v388_v40 = vadd.f32 %v384_v35, %v380_v37 }
 0x24b   :  { %v2836_v36 = vpack.c.bf16 %v389_v34, %v389_v34  ;;  %v2845_v42 = vpack.c.bf16 %v388_v40, %v388_v40 }
 0x24d   :  { %v2841_v41 = vsel %vm405_vm6, %v2836_v36, 0 }
 0x24e   :  { %2220 = vmatpush3.bf16.xpose.msra.mxu1 %v2841_v41 }
 0x24f   :  { %2225 = vmatprep.subr.bf16.mxu1 %v2680_v38 }
 0x255   :  { %2222 = vmatmul.mubr.msk.bf16.vlgmr.msra.gmra.mxu1 %vm405_vm6, %v2845_v42 }
 0x256   :  { %2227 = vmatprep.mubr.msk.bf16.mxu1 %vm2681_vm0, %v2680_v38 }
 0x305   :  { %v446_v43 = vpop.f32.mrf.mxu1 }
 0x306   :  { %v498_v39 = vsel %vm2791_vm1, -inf, %v446_v43 }
 0x307   :  { %v2217_v45 = vpop.f32.mrf.mxu1  ;;  %v501_v46 = vsel %vm500_vm7, %v498_v39, -inf }
 0x308   :  { %502 = vmax.xlane.f32.xlu1 %v501_v46 }
 0x309   :  { %v449_v47 = vpop.f32.mrf.mxu1 }
 0x30b   :  { %v2218_v48 = vpop.f32.mrf.mxu1 }
 0x315   :  { %v492_v49 = vpop.f32.mrf.mxu1 }
 0x316   :  { %v499_v50 = vsel %vm2791_vm1, -inf, %v492_v49 }
 0x317   :  { %v2223_v51 = vpop.f32.mrf.mxu1  ;;  %v504_v52 = vsel %vm500_vm7, %v499_v50, -inf }
 0x318   :  { %505 = vmax.xlane.f32.xlu0 %v504_v52 }
 0x319   :  { %v495_v53 = vpop.f32.mrf.mxu1 }
 0x31b   :  { %v2224_v54 = vpop.f32.mrf.mxu1 }
 0x391   :  { %v503_v55 = vpop.xlane.xlu1 %502 }
 0x392   :  { %v507_v56 = vsub.f32 %v498_v39, %v503_v55 }
 0x394   :  { %v509_v57 = vmul.f32 1.442695, %v507_v56 }
 0x396   :  { %2464 = vpow2.f32 %v509_v57 }
 0x3a1   :  { %v506_v58 = vpop.xlane.xlu0 %505 }
 0x3a2   :  { %v508_v59 = vsub.f32 %v499_v50, %v506_v58 }
 0x3a3   :  { %v2465_v60 = vpop.eup %2464 }
 0x3a4   :  { %v511_v61 = vmul.f32 1.442695, %v508_v59  ;;  %v513_v62 = vsel %vm500_vm7, %v2465_v60, 0.0 }
 0x3a5   :  { %514 = vadd.xlane.f32.xlu0 %v513_v62  ;;  %v2388_v62 = vld [vmem:[#allocation7 + $0x8] sm:$0xff]  }
 0x3a6   :  { %2466 = vpow2.f32 %v511_v61 }
 0x3b3   :  { %v2467_v63 = vpop.eup %2466 }
 0x3b4   :  { %v516_v0 = vsel %vm500_vm7, %v2467_v63, 0.0 }
 0x3b5   :  { %517 = vadd.xlane.f32.xlu1 %v516_v0  ;;  %v2389_v0 = vld [vmem:[#allocation7] sm:$0xff]  }
 0x3bb   :  { %525 = vrot.lane.b32.xlu0 %v2814_v13, %s2673_s25 }
 0x3bf   :  { %671 = vrot.lane.b32.xlu0 %v2845_v42, %s2682_s7 }
 0x3c6   :  { %573 = vrot.lane.b32.xlu1 %v2836_v36, %s2673_s25 }
 0x3ca   :  { %626 = vrot.lane.b32.xlu1 %v2822_v22, %s2682_s7 }
 0x42e   :  { %v515_v3 = vpop.xlane.xlu0 %514 }
 0x42f   :  { %2468 = vrcp.f32 %v515_v3 }
 0x432   :  { %v526_v4 = vpop.permute.xlu0 %525 }
 0x433   :  { %v531_v5 = vsel %vm351_vm8, %v526_v4, 0 }
 0x434   :  { %2226 = vmatpush3.bf16.msra.mxu1 %v531_v5 }
 0x435   :  { %2231 = vmatprep.subr.bf16.mxu1 %v2680_v38 }
 0x436   :  { %v672_v19 = vpop.permute.xlu0 %671 }
 0x43c   :  { %v2469_v6 = vpop.eup %2468 }
 0x43d   :  { %v521_v7 = vmul.f32 %v2469_v6, %v2465_v60 }
 0x43e   :  { %v518_v8 = vpop.xlane.xlu1 %517 }
 0x43f   :  { %2470 = vrcp.f32 %v518_v8  ;;  %v523_v9 = vpack.c.bf16 %v521_v7, %v521_v7  ;;  %v2390_v7 = vld [vmem:[#allocation7 + $0x18] sm:$0xff]   ;;  %v2391_v8 = vld [vmem:[#allocation7 + $0x10] sm:$0xff]  }
 0x440   :  { %2262 = vmatpush3.bf16.msra.mxu0 %v2390_v7 }
 0x441   :  { %2228 = vmatmul.mubr.msk.bf16.vlgmr.msra.gmra.mxu1 %vm500_vm7, %v523_v9  ;;  %2263 = vmatprep.subr.bf16.mxu0 %v2680_v38 }
 0x442   :  { %v574_v10 = vpop.permute.xlu1 %573  ;;  %2233 = vmatprep.mubr.msk.bf16.mxu1 %vm2681_vm0, %v2680_v38 }
 0x443   :  { %v2873_v11 = vsel %vm351_vm8, %v574_v10, 0 }
 0x444   :  { %2232 = vmatpush3.bf16.msra.mxu1 %v2873_v11  ;;  %2264 = vmatpush3.bf16.msra.mxu0 %v2391_v8 }
 0x445   :  { %2237 = vmatprep.subr.bf16.mxu1 %v2680_v38  ;;  %2277 = vmatprep.subr.bf16.mxu0 %v2680_v38 }
 0x446   :  { %v627_v18 = vpop.permute.xlu1 %626 }
 0x44c   :  { %v2471_v12 = vpop.eup %2470 }
 0x44d   :  { %v522_v14 = vmul.f32 %v2471_v12, %v2467_v63 }
 0x44f   :  { %v524_v15 = vpack.c.bf16 %v522_v14, %v522_v14 }
 0x451   :  { %2234 = vmatmul.mubr.msk.bf16.vlgmr.msra.gmra.mxu1 %vm500_vm7, %v524_v15 }
 0x452   :  { %2238 = vmatpush3.bf16.xpose.msra.mxu1 %v2818_v16  ;;  %2239 = vmatprep.mubr.msk.bf16.mxu1 %vm2681_vm0, %v2680_v38 }
 0x453   :  { %2243 = vmatprep.subr.bf16.mxu1 %v2680_v38 }
 0x459   :  { %2240 = vmatmul.mubr.msk.bf16.vlgmr.msra.gmra.mxu1 %vm405_vm6, %v627_v18 }
 0x45a   :  { %2244 = vmatpush3.bf16.xpose.msra.mxu1 %v2841_v41  ;;  %2245 = vmatprep.mubr.msk.bf16.mxu1 %vm2681_vm0, %v2680_v38 }
 0x45b   :  { %2249 = vmatprep.subr.bf16.mxu1 %v2680_v38 }
 0x461   :  { %2246 = vmatmul.mubr.msk.bf16.vlgmr.msra.gmra.mxu1 %vm405_vm6, %v672_v19 }
 0x462   :  { %2250 = vmatpush3.bf16.msra.mxu1 %v531_v5  ;;  %2251 = vmatprep.mubr.msk.bf16.mxu1 %vm2681_vm0, %v2680_v38 }
 0x463   :  { %2255 = vmatprep.subr.bf16.mxu1 %v2680_v38 }
 0x501   :  { %v2891_v16 = vpop.f32.mrf.mxu1 }
 0x503   :  { %v2229_v20 = vpop.f32.mrf.mxu1 }
 0x505   :  { %v570_v21 = vpop.f32.mrf.mxu1 }
 0x507   :  { %v2230_v23 = vpop.f32.mrf.mxu1 }
 0x511   :  { %v615_v24 = vpop.f32.mrf.mxu1 }
 0x512   :  { %v621_v25 = vpack.c.bf16 %v615_v24, %v2891_v16 }
 0x513   :  { %v2235_v26 = vpop.f32.mrf.mxu1 }
 0x515   :  { %v618_v27 = vpop.f32.mrf.mxu1 }
 0x517   :  { %v2236_v28 = vpop.f32.mrf.mxu1 }
 0x519   :  { %v665_v29 = vpop.f32.mrf.mxu1 }
 0x51a   :  { %v716_v30 = vsel %vm2791_vm1, -inf, %v665_v29 }
 0x51b   :  { %v2241_v31 = vpop.f32.mrf.mxu1  ;;  %v718_v32 = vsel %vm500_vm7, %v716_v30, -inf }
 0x51c   :  { %719 = vmax.xlane.f32.xlu1 %v718_v32 }
 0x51d   :  { %v668_v33 = vpop.f32.mrf.mxu1 }
 0x51f   :  { %v2242_v34 = vpop.f32.mrf.mxu1 }
 0x521   :  { %v710_v35 = vpop.f32.mrf.mxu1 }
 0x522   :  { %v717_v37 = vsel %vm2791_vm1, -inf, %v710_v35 }
 0x523   :  { %v2247_v41 = vpop.f32.mrf.mxu1  ;;  %v721_v40 = vsel %vm500_vm7, %v717_v37, -inf }
 0x524   :  { %722 = vmax.xlane.f32.xlu0 %v721_v40 }
 0x525   :  { %v713_v43 = vpop.f32.mrf.mxu1 }
 0x527   :  { %v2248_v39 = vpop.f32.mrf.mxu1 }
 0x5a5   :  { %v720_v45 = vpop.xlane.xlu1 %719 }
 0x5a6   :  { %v724_v46 = vsub.f32 %v716_v30, %v720_v45 }
 0x5a8   :  { %v726_v47 = vmul.f32 1.442695, %v724_v46 }
 0x5aa   :  { %2472 = vpow2.f32 %v726_v47 }
 0x5ad   :  { %v723_v48 = vpop.xlane.xlu0 %722 }
 0x5ae   :  { %v725_v49 = vsub.f32 %v717_v37, %v723_v48 }
 0x5b0   :  { %v728_v50 = vmul.f32 1.442695, %v725_v49 }
 0x5b2   :  { %2474 = vpow2.f32 %v728_v50 }
 0x5b7   :  { %v2473_v51 = vpop.eup %2472 }
 0x5b8   :  { %v730_v52 = vsel %vm500_vm7, %v2473_v51, 0.0 }
 0x5b9   :  { %731 = vadd.xlane.f32.xlu0 %v730_v52 }
 0x5bf   :  { %v2475_v53 = vpop.eup %2474 }
 0x5c0   :  { %v733_v54 = vsel %vm500_vm7, %v2475_v53, 0.0 }
 0x5c1   :  { %734 = vadd.xlane.f32.xlu1 %v733_v54 }
 0x5cf   :  { %947 = vrot.lane.b32.xlu0 %v2814_v13, %s2682_s7 }
 0x5d2   :  { %997 = vrot.lane.b32.xlu1 %v2836_v36, %s2682_s7 }
 0x5d3   :  { %995 = vrot.lane.b32.xlu0 %v2845_v42, %s2673_s25 }
 0x5d6   :  { %945 = vrot.lane.b32.xlu1 %v2822_v22, %s2673_s25 }
 0x642   :  { %v732_v55 = vpop.xlane.xlu0 %731 }
 0x643   :  { %2476 = vrcp.f32 %v732_v55 }
 0x646   :  { %v948_v5 = vpop.permute.xlu0 %947 }
 0x647   :  { %v953_v19 = vsel %vm405_vm6, %v948_v5, 0 }
 0x64a   :  { %v735_v56 = vpop.xlane.xlu1 %734  ;;  %v996_v6 = vpop.permute.xlu0 %995 }
 0x64b   :  { %2478 = vrcp.f32 %v735_v56 }
 0x64e   :  { %v998_v3 = vpop.permute.xlu1 %997 }
 0x64f   :  { %v2921_v4 = vsel %vm405_vm6, %v998_v3, 0 }
 0x650   :  { %v2477_v57 = vpop.eup %2476 }
 0x651   :  { %v738_v58 = vmul.f32 %v2477_v57, %v2473_v51 }
 0x652   :  { %v946_v23 = vpop.permute.xlu1 %945 }
 0x653   :  { %v740_v59 = vpack.c.bf16 %v738_v58, %v738_v58 }
 0x655   :  { %2252 = vmatmul.mubr.msk.bf16.vlgmr.msra.gmra.mxu1 %vm500_vm7, %v740_v59 }
 0x656   :  { %2256 = vmatpush3.bf16.msra.mxu1 %v2873_v11  ;;  %2257 = vmatprep.mubr.msk.bf16.mxu1 %vm2681_vm0, %v2680_v38 }
 0x657   :  { %2269 = vmatprep.subr.bf16.mxu1 %v2680_v38 }
 0x658   :  { %v2479_v60 = vpop.eup %2478 }
 0x659   :  { %v739_v61 = vmul.f32 %v2479_v60, %v2475_v53 }
 0x65b   :  { %v741_v63 = vpack.c.bf16 %v739_v61, %v739_v61 }
 0x65d   :  { %2258 = vmatmul.mubr.msk.bf16.vlgmr.msra.gmra.mxu1 %vm500_vm7, %v741_v63 }
 0x65e   :  { %2270 = vmatpush3.bf16.msra.mxu1 %v2388_v62  ;;  %2273 = vmatprep.mubr.msk.bf16.mxu1 %vm2681_vm0, %v2680_v38 }
 0x65f   :  { %2271 = vmatprep.subr.bf16.mxu1 %v2680_v38 }
 0x662   :  { %2272 = vmatpush3.bf16.msra.mxu1 %v2389_v0 }
 0x663   :  { %2283 = vmatprep.subr.bf16.mxu1 %v2680_v38 }
 0x665   :  { %2274 = vmatmul.mubr.msk.bf16.vlgmr.msra.gmra.mxu1 %vm405_vm6, %v621_v25 }
 0x666   :  { %2284 = vmatpush3.bf16.xpose.msra.mxu1 %v2921_v4  ;;  %2285 = vmatprep.mubr.msk.bf16.mxu1 %vm2681_vm0, %v2680_v38 }
 0x667   :  { %2295 = vmatprep.subr.bf16.mxu1 %v2680_v38 }
 0x66d   :  { %2286 = vmatmul.mubr.msk.bf16.vlgmr.msra.gmra.mxu1 %vm405_vm6, %v996_v6  ;;  %v2392_v6 = vld [vmem:[#allocation7 + $0x28] sm:$0xff]  }
 0x66e   :  { %2297 = vmatprep.mubr.msk.bf16.mxu1 %vm2681_vm0, %v2680_v38 }
 0x715   :  { %v779_v9 = vpop.f32.mrf.mxu1 }
 0x717   :  { %v2253_v10 = vpop.f32.mrf.mxu1 }
 0x719   :  { %v782_v11 = vpop.f32.mrf.mxu1 }
 0x71b   :  { %v2254_v12 = vpop.f32.mrf.mxu1 }
 0x71d   :  { %v822_v14 = vpop.f32.mrf.mxu1 }
 0x71e   :  { %v828_v15 = vpack.c.bf16 %v822_v14, %v779_v9 }
 0x71f   :  { %v2259_v18 = vpop.f32.mrf.mxu1 }
 0x720   :  { %2266 = vmatmul.mubr.msk.bf16.vlgmr.msra.gmra.mxu0 %vm405_vm6, %v828_v15 }
 0x721   :  { %2278 = vmatpush3.bf16.xpose.msra.mxu0 %v953_v19  ;;  %v825_v16 = vpop.f32.mrf.mxu1  ;;  %2279 = vmatprep.mubr.msk.bf16.mxu0 %vm2681_vm0, %v2680_v38 }
 0x722   :  { %2289 = vmatprep.subr.bf16.mxu0 %v2680_v38 }
 0x723   :  { %v2260_v20 = vpop.f32.mrf.mxu1 }
 0x725   :  { %v2938_v21 = vpop.f32.mrf.mxu1 }
 0x727   :  { %v2275_v24 = vpop.f32.mrf.mxu1 }
 0x728   :  { %2280 = vmatmul.mubr.msk.bf16.vlgmr.msra.gmra.mxu0 %vm405_vm6, %v946_v23 }
 0x729   :  { %v2941_v25 = vpop.f32.mrf.mxu1  ;;  %2291 = vmatprep.mubr.msk.bf16.mxu0 %vm2681_vm0, %v2680_v38 }
 0x72b   :  { %v2276_v26 = vpop.f32.mrf.mxu1 }
 0x72d   :  { %v1039_v27 = vpop.f32.mrf.mxu1 }
 0x72e   :  { %v1046_v28 = vsel %vm2791_vm1, -inf, %v1039_v27 }
 0x72f   :  { %v2287_v29 = vpop.f32.mrf.mxu1  ;;  %v1050_v30 = vsel %vm500_vm7, %v1046_v28, -inf }
 0x730   :  { %1051 = vmax.xlane.f32.xlu0 %v1050_v30 }
 0x731   :  { %v1042_v31 = vpop.f32.mrf.mxu1 }
 0x733   :  { %v2288_v32 = vpop.f32.mrf.mxu1 }
 0x7b9   :  { %v1052_v33 = vpop.xlane.xlu0 %1051 }
 0x7ba   :  { %v1054_v34 = vsub.f32 %v1046_v28, %v1052_v33 }
 0x7bc   :  { %v1057_v35 = vmul.f32 1.442695, %v1054_v34 }
 0x7be   :  { %2480 = vpow2.f32 %v1057_v35 }
 0x7cb   :  { %v2481_v48 = vpop.eup %2480 }
 0x7cc   :  { %v1062_v51 = vsel %vm500_vm7, %v2481_v48, 0.0 }
 0x7e0   :  { %v2948_v37 = vpop.f32.mrf.mxu0 }
 0x7e2   :  { %v2267_v41 = vpop.f32.mrf.mxu0 }
 0x7e4   :  { %v2950_v40 = vpop.f32.mrf.mxu0 }
 0x7e5   :  { %v942_v34 = vadd.f32 %v2941_v25, %v2950_v40 }
 0x7e6   :  { %v2268_v43 = vpop.f32.mrf.mxu0 }
 0x7e8   :  { %v989_v39 = vpop.f32.mrf.mxu0 }
 0x7e9   :  { %v1045_v45 = vsel %vm2791_vm1, -inf, %v989_v39 }
 0x7ea   :  { %v2281_v46 = vpop.f32.mrf.mxu0  ;;  %v1047_v47 = vsel %vm500_vm7, %v1045_v45, -inf }
 0x7eb   :  { %1048 = vmax.xlane.f32.xlu1 %v1047_v47 }
 0x7ec   :  { %v992_v49 = vpop.f32.mrf.mxu0 }
 0x7ee   :  { %v2282_v50 = vpop.f32.mrf.mxu0 }
 0x7ef   :  { %1063 = vadd.xlane.f32.xlu1 %v1062_v51 }
 0x800   :  { %1119 = vrot.lane.b32.xlu1 %v2836_v36, %s2683_s20 }
 0x804   :  { %1230 = vrot.lane.b32.xlu1 %v2822_v22, %s2683_s20 }
 0x874   :  { %v1049_v52 = vpop.xlane.xlu1 %1048 }
 0x875   :  { %v1053_v53 = vsub.f32 %v1045_v45, %v1049_v52 }
 0x877   :  { %v1055_v54 = vmul.f32 1.442695, %v1053_v53 }
 0x878   :  { %v1064_v55 = vpop.xlane.xlu1 %1063 }
 0x879   :  { %2482 = vpow2.f32 %v1055_v54 }
 0x87a   :  { %2484 = vrcp.f32 %v1064_v55 }
 0x87c   :  { %v1120_v56 = vpop.permute.xlu1 %1119 }
 0x87d   :  { %v1125_v57 = vsel %vm351_vm8, %v1120_v56, 0  ;;  %v2394_v56 = vld [vmem:[#allocation7 + $0x38] sm:$0xff]  }
 0x87e   :  { %2296 = vmatpush3.bf16.msra.mxu1 %v1125_v57 }
 0x87f   :  { %2309 = vmatprep.subr.bf16.mxu1 %v2680_v38 }
 0x880   :  { %v1231_v22 = vpop.permute.xlu1 %1230 }
 0x886   :  { %v2483_v58 = vpop.eup %2482 }
 0x887   :  { %v2485_v59 = vpop.eup %2484  ;;  %v1059_v60 = vsel %vm500_vm7, %v2483_v58, 0.0 }
 0x888   :  { %1060 = vadd.xlane.f32.xlu0 %v1059_v60  ;;  %v1068_v36 = vmul.f32 %v2485_v59, %v2481_v48 }
 0x88a   :  { %v1070_v61 = vpack.c.bf16 %v1068_v36, %v1068_v36 }
 0x88c   :  { %2298 = vmatmul.mubr.msk.bf16.vlgmr.msra.gmra.mxu1 %vm500_vm7, %v1070_v61 }
 0x88d   :  { %2310 = vmatpush3.bf16.xpose.msra.mxu1 %v953_v19  ;;  %2311 = vmatprep.mubr.msk.bf16.mxu1 %vm2681_vm0, %v2680_v38  ;;  %v2393_v19 = vld [vmem:[#allocation7 + $0x20] sm:$0xff]  }
 0x88e   :  { %2321 = vmatprep.subr.bf16.mxu1 %v2680_v38 }
 0x894   :  { %2312 = vmatmul.mubr.msk.bf16.vlgmr.msra.gmra.mxu1 %vm405_vm6, %v1231_v22 }
 0x895   :  { %2323 = vmatprep.mubr.msk.bf16.mxu1 %vm2681_vm0, %v2680_v38 }
 0x89e   :  { %1071 = vrot.lane.b32.xlu0 %v2814_v13, %s2683_s20 }
 0x8a2   :  { %1275 = vrot.lane.b32.xlu0 %v2845_v42, %s2683_s20 }
 0x911   :  { %v1061_v62 = vpop.xlane.xlu0 %1060 }
 0x912   :  { %2486 = vrcp.f32 %v1061_v62 }
 0x915   :  { %v1072_v63 = vpop.permute.xlu0 %1071 }
 0x916   :  { %v1077_v0 = vsel %vm351_vm8, %v1072_v63, 0  ;;  %v2395_v63 = vld [vmem:[#allocation7 + $0x30] sm:$0xff]  }
 0x917   :  { %2290 = vmatpush3.bf16.msra.mxu0 %v1077_v0  ;;  %2322 = vmatpush3.bf16.msra.mxu1 %v1077_v0 }
 0x918   :  { %2301 = vmatprep.subr.bf16.mxu0 %v2680_v38  ;;  %2333 = vmatprep.subr.bf16.mxu1 %v2680_v38 }
 0x919   :  { %v1276_v27 = vpop.permute.xlu0 %1275 }
 0x91f   :  { %v2487_v3 = vpop.eup %2486 }
 0x920   :  { %v1067_v5 = vmul.f32 %v2487_v3, %v2483_v58 }
 0x922   :  { %v1069_v7 = vpack.c.bf16 %v1067_v5, %v1067_v5 }
 0x924   :  { %2292 = vmatmul.mubr.msk.bf16.vlgmr.msra.gmra.mxu0 %vm500_vm7, %v1069_v7  ;;  %v2396_v7 = vld [vmem:[#allocation8 + $0xe0] ss:$16 sps:$4 sm:$0xff]  }
 0x925   :  { %2302 = vmatpush3.bf16.msra.mxu0 %v2392_v6  ;;  %2305 = vmatprep.mubr.msk.bf16.mxu0 %vm2681_vm0, %v2680_v38 }
 0x926   :  { %2303 = vmatprep.subr.bf16.mxu0 %v2680_v38 }
 0x929   :  { %2304 = vmatpush3.bf16.msra.mxu0 %v2393_v19 }
 0x92a   :  { %2315 = vmatprep.subr.bf16.mxu0 %v2680_v38 }
 0x94c   :  { %v1161_v13 = vpop.f32.mrf.mxu1 }
 0x94e   :  { %v2299_v42 = vpop.f32.mrf.mxu1 }
 0x94f   :  { %v2399_v42 = vld [vmem:[#allocation8 + $0xe8] ss:$16 sps:$4 sm:$0xff]  }
 0x950   :  { %v1164_v8 = vpop.f32.mrf.mxu1 }
 0x951   :  { %v2401_v8 = vld [vmem:[#allocation8 + $0xec] ss:$16 sps:$4 sm:$0xff]  }
 0x952   :  { %v2300_v9 = vpop.f32.mrf.mxu1 }
 0x954   :  { %v1269_v10 = vpop.f32.mrf.mxu1 }
 0x955   :  { %v1320_v11 = vsel %vm2791_vm1, -inf, %v1269_v10 }
 0x956   :  { %v2313_v12 = vpop.f32.mrf.mxu1  ;;  %v1322_v14 = vsel %vm500_vm7, %v1320_v11, -inf }
 0x957   :  { %1323 = vmax.xlane.f32.xlu1 %v1322_v14 }
 0x958   :  { %v1272_v15 = vpop.f32.mrf.mxu1 }
 0x95a   :  { %v2314_v18 = vpop.f32.mrf.mxu1 }
 0x9e0   :  { %v1324_v28 = vpop.xlane.xlu1 %1323 }
 0x9e1   :  { %v1328_v29 = vsub.f32 %v1320_v11, %v1324_v28  ;;  %v2408_v28 = vld [vmem:[#allocation8 + $0xa0] ss:$16 sps:$4 sm:$0xff]  }
 0x9e3   :  { %v1330_v30 = vmul.f32 1.442695, %v1328_v29  ;;  %v2411_v29 = vld [vmem:[#allocation8 + $0xa8] ss:$16 sps:$4 sm:$0xff]  }
 0x9e4   :  { %v1113_v16 = vpop.f32.mrf.mxu0 }
 0x9e5   :  { %v1167_v20 = vpack.c.bf16 %v1161_v13, %v1113_v16  ;;  %2488 = vpow2.f32 %v1330_v30  ;;  %v2398_v13 = vld [vmem:[#allocation8 + $0xe4] ss:$16 sps:$4 sm:$0xff]  }
 0x9e6   :  { %v2293_v23 = vpop.f32.mrf.mxu0  ;;  %v2416_v30 = vld [vmem:[#allocation8 + $0x84] ss:$16 sps:$4 sm:$0xff]  }
 0x9e7   :  { %2306 = vmatmul.mubr.msk.bf16.vlgmr.msra.gmra.mxu0 %vm405_vm6, %v1167_v20  ;;  %v2404_v20 = vld [vmem:[#allocation8 + $0xc4] ss:$16 sps:$4 sm:$0xff]   ;;  %v2407_v23 = vld [vmem:[#allocation8 + $0xcc] ss:$16 sps:$4 sm:$0xff]  }
 0x9e8   :  { %2316 = vmatpush3.bf16.xpose.msra.mxu0 %v2921_v4  ;;  %v1116_v24 = vpop.f32.mrf.mxu0  ;;  %2317 = vmatprep.mubr.msk.bf16.mxu0 %vm2681_vm0, %v2680_v38  ;;  %v939_v4 = vadd.f32 %v2938_v21, %v2948_v37 }
 0x9e9   :  { %2327 = vmatprep.subr.bf16.mxu0 %v2680_v38  ;;  %v2402_v24 = vld [vmem:[#allocation8 + $0xc0] ss:$16 sps:$4 sm:$0xff]  }
 0x9ea   :  { %v2294_v26 = vpop.f32.mrf.mxu0 }
 0x9eb   :  { %v2405_v26 = vld [vmem:[#allocation8 + $0xc8] ss:$16 sps:$4 sm:$0xff]  }
 0x9ef   :  { %2318 = vmatmul.mubr.msk.bf16.vlgmr.msra.gmra.mxu0 %vm405_vm6, %v1276_v27  ;;  %v2413_v27 = vld [vmem:[#allocation8 + $0xac] ss:$16 sps:$4 sm:$0xff]  }
 0x9f0   :  { %2328 = vmatpush3.bf16.msra.mxu0 %v1125_v57  ;;  %2329 = vmatprep.mubr.msk.bf16.mxu0 %vm2681_vm0, %v2680_v38 }
 0x9f1   :  { %1713 = vmatprep.subr.bf16.mxu0 %v2398_v13  ;;  %v2453_v13 = vld [vmem:[#allocation10 + $0x18] sm:$0xff]  }
 0x9f2   :  { %v2489_v48 = vpop.eup %2488 }
 0x9f3   :  { %v1334_v37 = vsel %vm500_vm7, %v2489_v48, 0.0 }
 0xaa7   :  { %v1221_v31 = vpop.f32.mrf.mxu0 }
 0xaa8   :  { %v1228_v32 = vadd.f32 %v1221_v31, %v939_v4  ;;  %v2417_v4 = vld [vmem:[#allocation8 + $0x88] ss:$16 sps:$4 sm:$0xff]   ;;  %v2419_v31 = vld [vmem:[#allocation8 + $0x8c] ss:$16 sps:$4 sm:$0xff]  }
 0xaa9   :  { %v2307_v33 = vpop.f32.mrf.mxu0 }
 0xaaa   :  { %v2425_v33 = vld [vmem:[#allocation8 + $0x6c] ss:$16 sps:$4 sm:$0xff]  }
 0xaab   :  { %v1224_v35 = vpop.f32.mrf.mxu0 }
 0xaac   :  { %v1229_v41 = vadd.f32 %v1224_v35, %v942_v34  ;;  %v2420_v34 = vld [vmem:[#allocation8 + $0x60] ss:$16 sps:$4 sm:$0xff]   ;;  %v2423_v35 = vld [vmem:[#allocation8 + $0x68] ss:$16 sps:$4 sm:$0xff]  }
 0xaad   :  { %v2308_v43 = vpop.f32.mrf.mxu0 }
 0xaae   :  { %v2431_v43 = vld [vmem:[#allocation8 + $0x4c] ss:$16 sps:$4 sm:$0xff]  }
 0xaaf   :  { %v1314_v39 = vpop.f32.mrf.mxu0 }
 0xab0   :  { %v1321_v45 = vsel %vm2791_vm1, -inf, %v1314_v39  ;;  %v2426_v39 = vld [vmem:[#allocation8 + $0x40] ss:$16 sps:$4 sm:$0xff]  }
 0xab1   :  { %v2319_v46 = vpop.f32.mrf.mxu0  ;;  %v1325_v47 = vsel %vm500_vm7, %v1321_v45, -inf }
 0xab2   :  { %1326 = vmax.xlane.f32.xlu0 %v1325_v47  ;;  %v2434_v46 = vld [vmem:[#allocation8 + $0x24] ss:$16 sps:$4 sm:$0xff]   ;;  %v2437_v47 = vld [vmem:[#allocation8 + $0x2c] ss:$16 sps:$4 sm:$0xff]  }
 0xab3   :  { %v1317_v49 = vpop.f32.mrf.mxu0 }
 0xab4   :  { %v2435_v49 = vld [vmem:[#allocation8 + $0x28] ss:$16 sps:$4 sm:$0xff]  }
 0xab5   :  { %v2320_v21 = vpop.f32.mrf.mxu0 }
 0xab6   :  { %1335 = vadd.xlane.f32.xlu0 %v1334_v37  ;;  %v2440_v21 = vld [vmem:[#allocation8 + $0x4] ss:$16 sps:$4 sm:$0xff]   ;;  %v2443_v37 = vld [vmem:[#allocation8 + $0xc] ss:$16 sps:$4 sm:$0xff]  }
 0xb3b   :  { %v1327_v50 = vpop.xlane.xlu0 %1326 }
 0xb3c   :  { %v1329_v51 = vsub.f32 %v1321_v45, %v1327_v50  ;;  %v2429_v45 = vld [vmem:[#allocation8 + $0x48] ss:$16 sps:$4 sm:$0xff]   ;;  %v2438_v50 = vld [vmem:[#allocation8] ss:$16 sps:$4 sm:$0xff]  }
 0xb3e   :  { %v1332_v25 = vmul.f32 1.442695, %v1329_v51  ;;  %v2441_v51 = vld [vmem:[#allocation8 + $0x8] ss:$16 sps:$4 sm:$0xff]  }
 0xb3f   :  { %v1336_v40 = vpop.xlane.xlu0 %1335 }
 0xb40   :  { %2490 = vpow2.f32 %v1332_v25 }
 0xb41   :  { %2492 = vrcp.f32 %v1336_v40 }
 0xb4d   :  { %v2491_v52 = vpop.eup %2490 }
 0xb4e   :  { %v2493_v53 = vpop.eup %2492  ;;  %v1337_v44 = vsel %vm500_vm7, %v2491_v52, 0.0 }
 0xb4f   :  { %1338 = vadd.xlane.f32.xlu1 %v1337_v44  ;;  %v1342_v54 = vmul.f32 %v2493_v53, %v2489_v48  ;;  %v2432_v48 = vld [vmem:[#allocation8 + $0x20] ss:$16 sps:$4 sm:$0xff]  }
 0xb51   :  { %v1344_v55 = vpack.c.bf16 %v1342_v54, %v1342_v54 }
 0xb53   :  { %2324 = vmatmul.mubr.msk.bf16.vlgmr.msra.gmra.mxu1 %vm500_vm7, %v1344_v55 }
 0xb54   :  { %2337 = vmatprep.mubr.msk.bf16.mxu1 %vm2681_vm0, %v2680_v38  ;;  %2334 = vmatpush3.bf16.msra.mxu1 %v2394_v56 }
 0xb55   :  { %2335 = vmatprep.subr.bf16.mxu1 %v2680_v38 }
 0xb58   :  { %2336 = vmatpush3.bf16.msra.mxu1 %v2395_v63  ;;  %v2446_v63 = vld [vmem:[#allocation10 + $0x70] sm:$0xff]  }
 0xb59   :  { %1756 = vmatprep.subr.bf16.mxu1 %v2401_v8  ;;  %v2455_v8 = vld [vmem:[#allocation10 + $0x10] sm:$0xff]  }
 0xbd8   :  { %v1339_v57 = vpop.xlane.xlu1 %1338 }
 0xbd9   :  { %2494 = vrcp.f32 %v1339_v57 }
 0xbe6   :  { %v2495_v58 = vpop.eup %2494 }
 0xbe7   :  { %v1343_v59 = vmul.f32 %v2495_v58, %v2491_v52  ;;  %v2081_v58 = vld [vmem:[%s3031_s2] ss:$0 sm:$0xff]  ;;  %s2684_s2 = smov [#allocation13]  }
 0xbe8   :  { %s2013_s3 = sshll.u32 %s2684_s2, 4  ;;  %s2014_s3 = int_to_ptr.vmem [resolvable:$true] %s2013_s3 }
 0xbe9   :  { %v1345_v60 = vpack.c.bf16 %v1343_v59, %v1343_v59  ;;  %s2636_s27 = scalar_lea.vmem %s2014_s3, 128  ;;  %p2641_p3 = scmp.lt.s32.totalorder %s2014_s3, %s2014_s3 }
 0xbea   :  { %p2637_p2 = scmp.ne.s32.totalorder %s2014_s3, %s2636_s27  ;;  %p2642_p4 = scmp.lt.s32.totalorder %s2636_s27, %s2636_s27 }
 0xbeb   :  { %2330 = vmatmul.mubr.msk.bf16.vlgmr.msra.gmra.mxu0 %vm500_vm7, %v1345_v60 }
 0xbec   :  { %1745 = vmatprep.mubr.bf16.mxu0 %v2678_v17  ;;  %1714 = vmatpush1.bf16.msra.mxu0 %v2396_v7  ;;  %v2452_v7 = vld [vmem:[#allocation10 + $0x58] sm:$0xff]   ;;  %p2643_p5 = por %p2642_p4, %p2641_p3 }
 0xbed   :  { %1715 = vmatprep.subr.bf16.mxu0 %v2404_v20 }
 0xbee   :  { %p2644_p6 = pnand %p2643_p5, %p2637_p2 }
 0xbf0   :  { %1716 = vmatpush1.bf16.msra.mxu0 %v2402_v24 }
 0xc13   :  { %v1383_v36 = vpop.f32.mrf.mxu1 }
 0xc15   :  { %v2325_v61 = vpop.f32.mrf.mxu1 }
 0xc17   :  { %v1386_v22 = vpop.f32.mrf.mxu1 }
 0xc18   :  { %v2444_v22 = vld [vmem:[#allocation10 + $0x78] sm:$0xff]  }
 0xc19   :  { %v2326_v62 = vpop.f32.mrf.mxu1 }
 0xc1a   :  { %v2445_v62 = vld [vmem:[#allocation10 + $0x38] sm:$0xff]  }
 0xcab   :  { %v1426_v0 = vpop.f32.mrf.mxu0 }
 0xcac   :  { %v1432_v3 = vpack.c.bf16 %v1426_v0, %v1383_v36  ;;  %v2447_v0 = vld [vmem:[#allocation10 + $0x30] sm:$0xff]  }
 0xcad   :  { %v2331_v5 = vpop.f32.mrf.mxu0 }
 0xcae   :  { %2338 = vmatmul.mubr.msk.bf16.vlgmr.msra.gmra.mxu1 %vm405_vm6, %v1432_v3  ;;  %v2448_v3 = vld [vmem:[#allocation10 + $0x68] sm:$0xff]  }
 0xcaf   :  { %v1429_v38 = vpop.f32.mrf.mxu0  ;;  %1788 = vmatprep.mubr.bf16.mxu1 %v2678_v17  ;;  %1757 = vmatpush1.bf16.msra.mxu1 %v2399_v42  ;;  %v2449_v5 = vld [vmem:[#allocation10 + $0x28] sm:$0xff]   ;;  %v2454_v42 = vld [vmem:[#allocation10 + $0x50] sm:$0xff]  }
 0xcb0   :  { %1758 = vmatprep.subr.bf16.mxu1 %v2407_v23  ;;  %v2450_v38 = vld [vmem:[#allocation10 + $0x60] sm:$0xff]  }
 0xcb1   :  { %v2332_v6 = vpop.f32.mrf.mxu0 }
 0xcb2   :  { %v2451_v6 = vld [vmem:[#allocation10 + $0x20] sm:$0xff]  }
 0xcb3   :  { %1759 = vmatpush1.bf16.msra.mxu1 %v2405_v26 }
 0xcb4   :  { %1760 = vmatprep.subr.bf16.mxu1 %v2413_v27 }
 0xcb7   :  { %1761 = vmatpush1.bf16.msra.mxu1 %v2411_v29 }
 0xcb8   :  { %1762 = vmatprep.subr.bf16.mxu1 %v2419_v31 }
 0xcbb   :  { %1763 = vmatpush1.bf16.msra.mxu1 %v2417_v4 }
 0xcbc   :  { %1764 = vmatprep.subr.bf16.mxu1 %v2425_v33 }
 0xcbf   :  { %1765 = vmatpush1.bf16.msra.mxu1 %v2423_v35 }
 0xcc0   :  { %1766 = vmatprep.subr.bf16.mxu1 %v2431_v43 }
 0xcc3   :  { %1767 = vmatpush1.bf16.msra.mxu1 %v2429_v45 }
 0xcc4   :  { %1768 = vmatprep.subr.bf16.mxu1 %v2437_v47 }
 0xcc7   :  { %1769 = vmatpush1.bf16.msra.mxu1 %v2435_v49 }
 0xcc8   :  { %1770 = vmatprep.subr.bf16.mxu1 %v2443_v37 }
 0xccb   :  { %1771 = vmatpush1.bf16.msra.mxu1 %v2441_v51 }
 0xd6e   :  { %v1486_v9 = vpop.f32.mrf.mxu1 }
 0xd6f   :  { %v1493_v10 = vadd.f32 %v1486_v9, %v1228_v32  ;;  %v2422_v32 = vld [vmem:[#allocation8 + $0x64] ss:$16 sps:$4 sm:$0xff]   ;;  %v2456_v9 = vld [vmem:[#allocation10 + $0x48] sm:$0xff]  }
 0xd70   :  { %v2339_v11 = vpop.f32.mrf.mxu1 }
 0xd71   :  { %v3007_v12 = vadd.f32 %v2763_v1, %v1493_v10  ;;  %v2410_v1 = vld [vmem:[#allocation8 + $0xa4] ss:$16 sps:$4 sm:$0xff]   ;;  %v2457_v10 = vld [vmem:[#allocation10 + $0x8] sm:$0xff]  }
 0xd72   :  { %v1489_v14 = vpop.f32.mrf.mxu1  ;;  %1717 = vmatprep.subr.bf16.mxu0 %v2410_v1  ;;  %v2458_v11 = vld [vmem:[#allocation10 + $0x40] sm:$0xff]  }
 0xd73   :  { %v1494_v15 = vadd.f32 %v1489_v14, %v1229_v41  ;;  %v1498_v17 = vmul.f32 %v3007_v12, %v3007_v12  ;;  %1718 = vmatpush1.bf16.msra.mxu0 %v2408_v28  ;;  %v2428_v41 = vld [vmem:[#allocation8 + $0x44] ss:$16 sps:$4 sm:$0xff]  }
 0xd74   :  { %v2340_v18 = vpop.f32.mrf.mxu1  ;;  %1719 = vmatprep.subr.bf16.mxu0 %v2416_v30  ;;  %v2459_v14 = vld [vmem:[#allocation10] sm:$0xff]  }
 0xd75   :  { %v3012_v19 = vadd.f32 %v2765_v2, %v1494_v15  ;;  %1500 = vadd.xlane.f32.xlu0 %v1498_v17  ;;  %v2414_v2 = vld [vmem:[#allocation8 + $0x80] ss:$16 sps:$4 sm:$0xff]  }
 0xd77   :  { %v1499_v16 = vmul.f32 %v3012_v19, %v3012_v19  ;;  %1720 = vmatpush1.bf16.msra.mxu0 %v2414_v2 }
 0xd78   :  { %1721 = vmatprep.subr.bf16.mxu0 %v2422_v32 }
 0xd79   :  { %1502 = vadd.xlane.f32.xlu1 %v1499_v16 }
 0xd7b   :  { %1722 = vmatpush1.bf16.msra.mxu0 %v2420_v34 }
 0xd7c   :  { %1723 = vmatprep.subr.bf16.mxu0 %v2428_v41 }
 0xd7f   :  { %1724 = vmatpush1.bf16.msra.mxu0 %v2426_v39 }
 0xd80   :  { %1725 = vmatprep.subr.bf16.mxu0 %v2434_v46 }
 0xd83   :  { %1726 = vmatpush1.bf16.msra.mxu0 %v2432_v48 }
 0xd84   :  { %1727 = vmatprep.subr.bf16.mxu0 %v2440_v21 }
 0xd87   :  { %1728 = vmatpush1.bf16.msra.mxu0 %v2438_v50 }
 0xd88   :  { %2191 = vmatprep.subr.bf16.mxu0 %v2444_v22 }
 0xdfe   :  { %v1501_v25 = vpop.xlane.xlu0 %1500 }
 0xdff   :  { %v1504_v40 = vmul.f32 0.0078125, %v1501_v25 }
 0xe01   :  { %v1506_v52 = vadd.f32 1e-05, %v1504_v40 }
 0xe02   :  { %v1503_v53 = vpop.xlane.xlu1 %1502 }
 0xe03   :  { %2496 = vrsqrt.f32 %v1506_v52  ;;  %v1505_v44 = vmul.f32 0.0078125, %v1503_v53 }
 0xe05   :  { %v1507_v54 = vadd.f32 1e-05, %v1505_v44 }
 0xe07   :  { %2498 = vrsqrt.f32 %v1507_v54 }
 0xe10   :  { %v2497_v55 = vpop.eup %2496 }
 0xe11   :  { %v1510_v56 = vmul.f32 %v2497_v55, %v3007_v12 }
 0xe13   :  { %v1518_v60 = vmul.f32 %v2081_v58, %v1510_v56 }
 0xe14   :  { %v2499_v57 = vpop.eup %2498 }
 0xe15   :  { %v1511_v59 = vmul.f32 %v2499_v57, %v3012_v19 }
 0xe17   :  { %v1519_v36 = vmul.f32 %v2081_v58, %v1511_v59 }
 0xe19   :  { %v1520_v61 = vpack.c.bf16 %v1519_v36, %v1518_v60 }
 0xe1b   :  { %1746 = vmatmul.mubr.bf16.vlgmr.msra.gmra.mxu0 %v1520_v61  ;;  %1789 = vmatmul.mubr.bf16.vlgmr.msra.gmra.mxu1 %v1520_v61 }
 0xe1c   :  { %2192 = vmatpush3.bf16.msra.mxu0 %v2445_v62 }
 0xe1d   :  { %2193 = vmatprep.subr.bf16.mxu0 %v2446_v63 }
 0xe20   :  { %2194 = vmatpush3.bf16.msra.mxu0 %v2447_v0 }
 0xe21   :  { %2195 = vmatprep.subr.bf16.mxu0 %v2448_v3 }
 0xe24   :  { %2196 = vmatpush3.bf16.msra.mxu0 %v2449_v5 }
 0xe25   :  { %2197 = vmatprep.subr.bf16.mxu0 %v2450_v38 }
 0xe28   :  { %2198 = vmatpush3.bf16.msra.mxu0 %v2451_v6 }
 0xe29   :  { %2199 = vmatprep.subr.bf16.mxu0 %v2452_v7 }
 0xe2c   :  { %2200 = vmatpush3.bf16.msra.mxu0 %v2453_v13 }
 0xe2d   :  { %2201 = vmatprep.subr.bf16.mxu0 %v2454_v42 }
 0xe30   :  { %2202 = vmatpush3.bf16.msra.mxu0 %v2455_v8 }
 0xe31   :  { %2203 = vmatprep.subr.bf16.mxu0 %v2456_v9 }
 0xe34   :  { %2204 = vmatpush3.bf16.msra.mxu0 %v2457_v10 }
 0xe35   :  { %2205 = vmatprep.subr.bf16.mxu0 %v2458_v11 }
 0xe38   :  { %2206 = vmatpush3.bf16.msra.mxu0 %v2459_v14 }
 0xedb   :  { %v1747_v15 = vpop.f32.mrf.mxu0  ;;  %v1790_v32 = vpop.f32.mrf.mxu1 }
 0xedc   :  { %v2114_v17 = vmul.f32 -1.442695, %v1747_v15 }
 0xedd   :  { %v1749_v18 = vpop.f32.mrf.mxu0  ;;  %v1792_v33 = vpop.f32.mrf.mxu1 }
 0xede   :  { %2500 = vpow2.f32 %v2114_v17  ;;  %v2115_v16 = vmul.f32 -1.442695, %v1749_v18 }
 0xedf   :  { %v1751_v20 = vpop.f32.mrf.mxu0  ;;  %v1794_v43 = vpop.f32.mrf.mxu1 }
 0xee0   :  { %2502 = vpow2.f32 %v2115_v16  ;;  %v2116_v23 = vmul.f32 -1.442695, %v1751_v20 }
 0xee1   :  { %v1753_v24 = vpop.f32.mrf.mxu0  ;;  %v1796_v21 = vpop.f32.mrf.mxu1 }
 0xee2   :  { %2504 = vpow2.f32 %v2116_v23  ;;  %v2117_v26 = vmul.f32 -1.442695, %v1753_v24 }
 0xee4   :  { %2506 = vpow2.f32 %v2117_v26 }
 0xeeb   :  { %v2501_v1 = vpop.eup %2500 }
 0xeec   :  { %v1811_v28 = vadd.f32 1.0, %v2501_v1 }
 0xeed   :  { %v2503_v27 = vpop.eup %2502 }
 0xeee   :  { %v1812_v29 = vadd.f32 1.0, %v2503_v27 }
 0xeef   :  { %v2505_v2 = vpop.eup %2504 }
 0xef0   :  { %2508 = vrcp.f32 %v1812_v29  ;;  %v1813_v30 = vadd.f32 1.0, %v2505_v2 }
 0xef1   :  { %v2507_v4 = vpop.eup %2506  ;;  %2510 = vrcp.f32 %v1811_v28 }
 0xef2   :  { %2512 = vrcp.f32 %v1813_v30  ;;  %v1814_v31 = vadd.f32 1.0, %v2507_v4 }
 0xef4   :  { %2514 = vrcp.f32 %v1814_v31 }
 0xefd   :  { %v2509_v34 = vpop.eup %2508 }
 0xefe   :  { %v2511_v35 = vpop.eup %2510  ;;  %v1824_v39 = vmul.f32 %v2509_v34, %v1749_v18 }
 0xeff   :  { %v2513_v41 = vpop.eup %2512  ;;  %v1823_v47 = vmul.f32 %v2511_v35, %v1747_v15 }
 0xf00   :  { %v1825_v45 = vmul.f32 %v2513_v41, %v1751_v20  ;;  %v1828_v37 = vmul.f32 %v1824_v39, %v1792_v33 }
 0xf01   :  { %v2515_v46 = vpop.eup %2514  ;;  %v1827_v51 = vmul.f32 %v1823_v47, %v1790_v32 }
 0xf02   :  { %v1826_v48 = vmul.f32 %v2515_v46, %v1753_v24  ;;  %v1829_v49 = vmul.f32 %v1825_v45, %v1794_v43 }
 0xf04   :  { %v1830_v50 = vmul.f32 %v1826_v48, %v1796_v21  ;;  %v1831_v40 = vpack.c.bf16 %v1829_v49, %v1827_v51 }
 0xf06   :  { %v1832_v25 = vpack.c.bf16 %v1830_v50, %v1828_v37 }
 0xf08   :  { %1993 = vmatprep.mubr.bf16.mxu0 %v1832_v25 }
 0xf09   :  { %1994 = vmatmul.mubr.bf16.vlgmr.msra.gmra.mxu0 %v1831_v40 }
 0xfc9   :  { %v2207_v52 = vpop.f32.mrf.mxu0 }
 0xfcb   :  { %v2208_v53 = vpop.f32.mrf.mxu0 }
 0xfcc   :  { %v2209_v54 = vadd.f32 %v2208_v53, %v2207_v52 }
 0xfcd   :  { %v2210_v44 = vpop.f32.mrf.mxu0 }
 0xfce   :  { %v2002_v57 = vadd.f32 %v2209_v54, %v3007_v12 }
 0xfcf   :  { %v2211_v55 = vpop.f32.mrf.mxu0 }
 0xfd0   :  { %v2212_v56 = vadd.f32 %v2211_v55, %v2210_v44 }
 0xfd2   :  { %v2003_v58 = vadd.f32 %v2212_v56, %v3012_v19 }
 0xfd4   :  { %v2145_v59 = vpack.c.bf16 %v2003_v58, %v2002_v57 }
 0xfd6   :  { %2146 = vst [vmem:[#allocation13] sm:$0xff] %v2145_v59  }
 0xfd7   :  { %2647 = shalt.err (!%p2644_p6)
}
 0xfd8   :  { %2019 = dma.vmem_to_hbm [thread:$0]  %s2014_s3, 128, %s3038_s9, [#allocation4], %s2673_s25, %s2673_s25, %s2674_s26  }
 0xfd9   :  { %2664 = dma.done.wait [#allocation4], 128  }
 0xfda   :  { %2665 = vsyncadd [#allocation4], 4294967168 }
 0xfdb   :  { %2023 = vsyncpa [#allocation3], 1 }
 0xfdc   :  { %2024 = vsyncpa [#allocation6], 1 }
 0xfdd   :  { %2025 = vsyncpa [#allocation9], 1 }
 0xfde   :  { %2026 = vsyncpa [#allocation12], 1 }
 0xfdf   :  { %2027 = vsyncpa [#allocation4], 1 }

</bundles_post_ra>
